<compile_context>
chip_gen: v7x
topology: tpu7x:2x2x1
jax: 0.10.0
libtpu: 0.0.40
codegen_flags: <defaults>
</compile_context>

<pallas_src>
import functools
import math

import jax
import jax.numpy as jnp
from jax.experimental import pallas as pl
from jax.experimental.pallas import tpu as pltpu


# ----------------------------------------------------------------------------
# In-kernel elementwise helpers (float32).
# ----------------------------------------------------------------------------
_GELU_C = 0.7978845608028654  # sqrt(2/pi)


def _gelu(x):
    # tanh-approx GELU (tanh runs on the otherwise idle EUP slot).
    return 0.5 * x * (1.0 + jnp.tanh(_GELU_C * (x + 0.044715 * x * x * x)))


def _silu(x):
    # x * sigmoid(x); divide replaced by EUP approximate reciprocal.
    return x * pl.reciprocal(1.0 + jnp.exp(-x), approx=True)


def _softplus(x):  # matches F.softplus (stable form)
    return jnp.maximum(x, 0.0) + jnp.log(1.0 + jnp.exp(-jnp.abs(x)))


def _pick_block(dim, max_tile):
    """Return (block, padded_dim): full-dim block when small (always legal),
    otherwise a `max_tile` tile with the dim zero-padded to a multiple."""
    if dim <= max_tile:
        return dim, dim
    padded = ((dim + max_tile - 1) // max_tile) * max_tile
    return max_tile, padded


# ----------------------------------------------------------------------------
# Kernel: LayerNorm over the last dim (eps = 1e-5, biased variance, like torch).
# ----------------------------------------------------------------------------
def _layernorm_kernel(x_ref, g_ref, b_ref, o_ref):
    x = x_ref[...].astype(jnp.float32)
    mu = jnp.mean(x, axis=-1, keepdims=True)
    xc = x - mu
    var = jnp.mean(xc * xc, axis=-1, keepdims=True)
    inv = jax.lax.rsqrt(var + 1e-5)
    o_ref[...] = (xc * inv * g_ref[...].astype(jnp.float32)
                  + b_ref[...].astype(jnp.float32)).astype(o_ref.dtype)


def layernorm(x, gamma, beta, *, tm=512):
    *lead, d = x.shape
    m = 1
    for v in lead:
        m *= v
    x2 = x.reshape(m, d)
    bm, mp = _pick_block(m, tm)
    if mp != m:
        x2 = jnp.pad(x2, ((0, mp - m), (0, 0)))
    out = pl.pallas_call(
        _layernorm_kernel,
        out_shape=jax.ShapeDtypeStruct((mp, d), jnp.float32),
        grid=(mp // bm,),
        in_specs=[pl.BlockSpec((bm, d), lambda i: (i, 0)),
                  pl.BlockSpec((1, d), lambda i: (0, 0)),
                  pl.BlockSpec((1, d), lambda i: (0, 0))],
        out_specs=pl.BlockSpec((bm, d), lambda i: (i, 0)),
        compiler_params=pltpu.CompilerParams(dimension_semantics=("parallel",)),
    )(x2, gamma.reshape(1, d), beta.reshape(1, d))
    if mp != m:
        out = out[:m]
    return out.reshape(*lead, d)


# ----------------------------------------------------------------------------
# Kernel: tiled Linear y = act(x @ Wt + b) [+ residual], bf16 MXU, f32 accum.
# ----------------------------------------------------------------------------
def _linear_kernel(x_ref, w_ref, b_ref, *rest, activation, has_residual):
    if has_residual:
        r_ref, o_ref, acc_ref = rest
    else:
        o_ref, acc_ref = rest

    @pl.when(pl.program_id(2) == 0)
    def _():
        acc_ref[...] = jnp.zeros_like(acc_ref)

    acc_ref[...] += jnp.dot(x_ref[...].astype(jnp.bfloat16),
                            w_ref[...].astype(jnp.bfloat16),
                            preferred_element_type=jnp.float32)

    @pl.when(pl.program_id(2) == pl.num_programs(2) - 1)
    def _():
        y = acc_ref[...] + b_ref[...].astype(jnp.float32)
        if activation == "gelu":
            y = _gelu(y)
        elif activation == "silu":
            y = _silu(y)
        elif activation == "softplus":
            y = _softplus(y)
        if has_residual:
            y = y + r_ref[...].astype(jnp.float32)
        o_ref[...] = y.astype(o_ref.dtype)


def linear(x, w_t, bias=None, activation="none", residual=None,
           tm=256, tn=256, tk=512):
    """w_t is (K, N), pre-transposed once and stored in bf16.

    Tiles (256, 256, 512) fit comfortably inside the v7x 32 MiB scoped-VMEM
    default when double-buffered; they can be raised to 512-wide on v5e/v6e.
    """
    *lead, k = x.shape
    m = 1
    for v in lead:
        m *= v
    n = w_t.shape[1]
    x2 = x.reshape(m, k)
    bm, mp = _pick_block(m, tm)
    bn, npad = _pick_block(n, tn)
    bk, kp = _pick_block(k, tk)
    if (mp, kp) != (m, k):
        x2 = jnp.pad(x2, ((0, mp - m), (0, kp - k)))
    w2 = w_t if (kp, npad) == (k, n) else jnp.pad(w_t, ((0, kp - k), (0, npad - n)))
    b2 = bias if bias is not None else jnp.zeros((n,), jnp.float32)
    b2 = b2.reshape(1, n).astype(jnp.float32)
    if npad != n:
        b2 = jnp.pad(b2, ((0, 0), (0, npad - n)))

    args = [x2, w2, b2]
    in_specs = [pl.BlockSpec((bm, bk), lambda i, j, kk: (i, kk)),
                pl.BlockSpec((bk, bn), lambda i, j, kk: (kk, j)),
                pl.BlockSpec((1, bn), lambda i, j, kk: (0, j))]
    has_res = residual is not None
    if has_res:
        r2 = residual.reshape(m, n).astype(jnp.float32)
        if (mp, npad) != (m, n):
            r2 = jnp.pad(r2, ((0, mp - m), (0, npad - n)))
        args.append(r2)
        in_specs.append(pl.BlockSpec((bm, bn), lambda i, j, kk: (i, j)))

    out = pl.pallas_call(
        functools.partial(_linear_kernel, activation=activation,
                          has_residual=has_res),
        out_shape=jax.ShapeDtypeStruct((mp, npad), jnp.float32),
        grid=(mp // bm, npad // bn, kp // bk),
        in_specs=in_specs,
        out_specs=pl.BlockSpec((bm, bn), lambda i, j, kk: (i, j)),
        scratch_shapes=[pltpu.VMEM((bm, bn), jnp.float32)],
        compiler_params=pltpu.CompilerParams(
            dimension_semantics=("parallel", "parallel", "arbitrary")),
    )(*args)
    if (mp, npad) != (m, n):
        out = out[:m, :n]
    return out.reshape(*lead, n)


# ----------------------------------------------------------------------------
# Kernel: causal multi-query attention, flash-style online softmax.
# q: (B, H, S, dh);  k, v: (B, S, dh) shared across heads (no per-head copies).
# ----------------------------------------------------------------------------
def _mqa_flash_kernel(q_ref, k_ref, v_ref, o_ref, m_sc, l_sc, acc_sc, *, scale):
    qi = pl.program_id(2)
    ki = pl.program_id(3)
    tq = q_ref.shape[2]
    tkv = k_ref.shape[1]

    @pl.when(ki == 0)
    def _():
        m_sc[...] = jnp.zeros_like(m_sc) - 1e30
        l_sc[...] = jnp.zeros_like(l_sc)
        acc_sc[...] = jnp.zeros_like(acc_sc)

    # Skip kv tiles that lie entirely in the causal future of this q tile.
    @pl.when(ki * tkv <= qi * tq + (tq - 1))
    def _():
        q = q_ref[0, 0].astype(jnp.bfloat16)                # (tq, dh)
        kk = k_ref[0].astype(jnp.bfloat16)                  # (tkv, dh)
        s = jax.lax.dot_general(q, kk, (((1,), (1,)), ((), ())),
                                preferred_element_type=jnp.float32) * scale
        qg = qi * tq + jax.lax.broadcasted_iota(jnp.int32, (tq, tkv), 0)
        kg = ki * tkv + jax.lax.broadcasted_iota(jnp.int32, (tq, tkv), 1)
        s = jnp.where(kg > qg, -1e30, s)
        m_prev = m_sc[...]
        m_new = jnp.maximum(m_prev, jnp.max(s, axis=-1, keepdims=True))
        alpha = jnp.exp(m_prev - m_new)
        p = jnp.exp(s - m_new)
        l_sc[...] = alpha * l_sc[...] + jnp.sum(p, axis=-1, keepdims=True)
        acc_sc[...] = alpha * acc_sc[...] + jnp.dot(
            p.astype(jnp.bfloat16), v_ref[0].astype(jnp.bfloat16),
            preferred_element_type=jnp.float32)
        m_sc[...] = m_new

    @pl.when(ki == pl.num_programs(3) - 1)
    def _():
        o_ref[0, 0] = (acc_sc[...] * pl.reciprocal(l_sc[...], approx=True)
                       ).astype(o_ref.dtype)


def _seq_tile(s, t):
    return t if (s > t and s % t == 0) else s


def flash_mqa(q, k, v, *, scale):
    b, h, s, dh = q.shape
    tq = _seq_tile(s, 128)
    tkv = _seq_tile(s, 128)
    return pl.pallas_call(
        functools.partial(_mqa_flash_kernel, scale=scale),
        out_shape=jax.ShapeDtypeStruct((b, h, s, dh), jnp.float32),
        grid=(b, h, s // tq, s // tkv),
        in_specs=[pl.BlockSpec((1, 1, tq, dh), lambda bi, hi, qi, ki: (bi, hi, qi, 0)),
                  pl.BlockSpec((1, tkv, dh), lambda bi, hi, qi, ki: (bi, ki, 0)),
                  pl.BlockSpec((1, tkv, dh), lambda bi, hi, qi, ki: (bi, ki, 0))],
        out_specs=pl.BlockSpec((1, 1, tq, dh), lambda bi, hi, qi, ki: (bi, hi, qi, 0)),
        scratch_shapes=[pltpu.VMEM((tq, 1), jnp.float32),
                        pltpu.VMEM((tq, 1), jnp.float32),
                        pltpu.VMEM((tq, dh), jnp.float32)],
        compiler_params=pltpu.CompilerParams(
            dimension_semantics=("parallel", "parallel", "parallel", "arbitrary")),
    )(q, k, v)


# ----------------------------------------------------------------------------
# Kernel: depthwise causal Conv1d (+bias) fused with SiLU, channels-last.
# The causal left-pad is built inside VMEM (no XLA pad / extra HBM round trip).
# ----------------------------------------------------------------------------
def _conv_silu_kernel(x_ref, w_ref, b_ref, o_ref, *, k_size):
    x = x_ref[0].astype(jnp.float32)                        # (S, C), seq on sublanes
    s = x.shape[0]
    xp = jnp.concatenate(
        [jnp.zeros((k_size - 1, x.shape[1]), jnp.float32), x], axis=0)
    acc = jnp.zeros_like(x) + b_ref[...].astype(jnp.float32)
    for kk in range(k_size):                                # static unroll (k_size = 4)
        tap = w_ref[kk:kk + 1, :].astype(jnp.float32)       # (1, C)
        acc = acc + xp[kk:kk + s, :] * tap
    o_ref[0] = _silu(acc).astype(o_ref.dtype)


def conv1d_silu(x, w_kc, b_1c):
    b, s, c = x.shape
    ksz = w_kc.shape[0]
    return pl.pallas_call(
        functools.partial(_conv_silu_kernel, k_size=ksz),
        out_shape=jax.ShapeDtypeStruct((b, s, c), jnp.float32),
        grid=(b,),
        in_specs=[pl.BlockSpec((1, s, c), lambda i: (i, 0, 0)),
                  pl.BlockSpec((ksz, c), lambda i: (0, 0)),
                  pl.BlockSpec((1, c), lambda i: (0, 0))],
        out_specs=pl.BlockSpec((1, s, c), lambda i: (i, 0, 0)),
        compiler_params=pltpu.CompilerParams(dimension_semantics=("parallel",)),
    )(x, w_kc, b_1c)


# ----------------------------------------------------------------------------
# Kernel: Mamba selective scan, fused with (+ u*D) and the SiLU(res) gate.
# Seq-chunked grid; state (B, N, Din) carried in VMEM scratch so the big
# channel dim Din sits on the lane axis (lane-dense hot loop); per-step ref
# indexing keeps the recurrence in registers.
# ----------------------------------------------------------------------------
def _scan_kernel(u_ref, delta_ref, A_ref, B_ref, C_ref, D_ref, res_ref,
                 o_ref, state_ref, *, ts):
    @pl.when(pl.program_id(0) == 0)
    def _():
        state_ref[...] = jnp.zeros_like(state_ref)

    A_T = A_ref[...].astype(jnp.float32)        # (N, Din), Din on lanes
    Dv = D_ref[...].astype(jnp.float32)         # (1, Din)

    def step(i, xst):
        d_i = delta_ref[i].astype(jnp.float32)  # (B, Din)
        u_i = u_ref[i].astype(jnp.float32)      # (B, Din)
        b_i = B_ref[i].astype(jnp.float32)      # (B, N)
        c_i = C_ref[i].astype(jnp.float32)      # (B, N)
        r_i = res_ref[i].astype(jnp.float32)    # (B, Din)
        dA = jnp.exp(d_i[:, None, :] * A_T[None, :, :])        # (B, N, Din)
        dBu = (d_i * u_i)[:, None, :] * b_i[:, :, None]        # (B, N, Din)
        xst = dA * xst + dBu
        y = jnp.sum(xst * c_i[:, :, None], axis=1) + u_i * Dv  # (B, Din), sublane reduce
        o_ref[i] = (y * _silu(r_i)).astype(o_ref.dtype)
        return xst

    xst = state_ref[...]
    if ts <= 16:
        for i in range(ts):                     # full static unroll for short chunks
            xst = step(i, xst)
    else:
        xst = jax.lax.fori_loop(0, ts, step, xst, unroll=4)
    state_ref[...] = xst


def selective_scan(u, delta, a_t, bm, cm, dv, res):
    s, b, din = u.shape
    n = bm.shape[-1]
    ts = s
    for cand in (128, 64, 32, 16, 8):           # chunk size must divide S
        if s > cand and s % cand == 0:
            ts = cand
            break
    spec_d = pl.BlockSpec((ts, b, din), lambda i: (i, 0, 0))
    spec_n = pl.BlockSpec((ts, b, n), lambda i: (i, 0, 0))
    return pl.pallas_call(
        functools.partial(_scan_kernel, ts=ts),
        out_shape=jax.ShapeDtypeStruct((s, b, din), jnp.float32),
        grid=(s // ts,),
        in_specs=[spec_d, spec_d,
                  pl.BlockSpec((n, din), lambda i: (0, 0)),
                  spec_n, spec_n,
                  pl.BlockSpec((1, din), lambda i: (0, 0)),
                  spec_d],
        out_specs=spec_d,
        scratch_shapes=[pltpu.VMEM((b, n, din), jnp.float32)],
        compiler_params=pltpu.CompilerParams(dimension_semantics=("arbitrary",)),
    )(u, delta, a_t, bm, cm, dv, res)


# ----------------------------------------------------------------------------
# Module forwards (glue: reshapes / splits; compute + residual adds in Pallas).
# ----------------------------------------------------------------------------
def mamba_block(x, q, *, d_state, dt_rank, residual):
    xr = linear(x, q["mamba_in_proj_wT"])                     # (B,S,2*Din), no bias
    dim_inner = xr.shape[-1] // 2
    # TODO(synk): emit the xm/res and x_dbl splits as separate kernel outputs
    # instead of XLA lane slices.
    xm, res = xr[..., :dim_inner], xr[..., dim_inner:]

    xm = conv1d_silu(xm, q["mamba_conv_w_kc"], q["mamba_conv_b_1c"])

    x_dbl = linear(xm, q["mamba_x_proj_wT"])                  # (B,S,dt_rank+2N), no bias
    delta = linear(x_dbl[..., :dt_rank], q["mamba_dt_proj_wT"],
                   q["mamba_dt_proj_b"], activation="softplus")
    bmat = x_dbl[..., dt_rank:dt_rank + d_state]
    cmat = x_dbl[..., dt_rank + d_state:]

    to_sm = lambda t: jnp.transpose(t, (1, 0, 2))             # (B,S,.) -> (S,B,.)
    y = selective_scan(to_sm(xm), to_sm(delta), q["mamba_A_T"],
                       to_sm(bmat), to_sm(cmat), q["mamba_D_1d"], to_sm(res))
    y = jnp.transpose(y, (1, 0, 2))                           # back to (B,S,Din)

    # residual (the LN'ed block input) fused into the out-projection kernel
    return linear(y, q["mamba_out_proj_wT"], residual=residual)


def multi_query_attention(x, q, heads):
    b, s, d = x.shape
    dh = d // heads
    qkv = linear(x, q["mqa_wqkv_wT"], q["mqa_wqkv_b"])        # (B,S,D+2*dh)
    qh = qkv[..., :d].reshape(b, s, heads, dh).transpose(0, 2, 1, 3)   # (B,H,S,dh)
    k = qkv[..., d:d + dh]                                    # (B,S,dh) shared by all heads
    v = qkv[..., d + dh:]
    ctx = flash_mqa(qh, k, v, scale=1.0 / math.sqrt(dh))      # (B,H,S,dh)
    ctx = ctx.transpose(0, 2, 1, 3).reshape(b, s, d)
    return linear(ctx, q["mqa_out_wT"], q["mqa_out_b"])


def transformer_block(x, q, heads):
    # NOTE: TransformerBlock itself has no internal residuals.
    a = multi_query_attention(x, q, heads)
    a = layernorm(a, q["tb_ln_g"], q["tb_ln_b"])
    a = linear(a, q["tb_ff_w1T"], q["tb_ff_b1"], activation="gelu")
    return linear(a, q["tb_ff_w2T"], q["tb_ff_b2"], residual=x)   # + outer residual fused


def feedforward_outer(x, q):
    h = linear(x, q["ff_w1T"], q["ff_b1"], activation="gelu")
    return linear(h, q["ff_w2T"], q["ff_b2"], residual=x)         # + outer residual fused


def mamba_transformer_block(x, q, *, heads, d_state, dt_rank):
    # TODO(synk): dropout layers are treated as identity (eval-mode semantics).
    x = layernorm(x, q["ln_g"], q["ln_b"])
    x = mamba_block(x, q, d_state=d_state, dt_rank=dt_rank, residual=x)
    x = layernorm(x, q["ln_g"], q["ln_b"])
    x = transformer_block(x, q, heads)
    x = layernorm(x, q["ln_g"], q["ln_b"])
    x = feedforward_outer(x, q)
    return x


# ----------------------------------------------------------------------------
# Deterministic parameter init (torch layout) + one-time kernel-ready prep
# (weights pre-transposed to (K, N) and cast to bf16 exactly once).
# ----------------------------------------------------------------------------
def init_params(key, dim, heads, dim_head, d_state, ff_mult=4, expand=2, d_conv=4):
    dim_inner = dim * expand
    dt_rank = math.ceil(dim / 16)
    inner = dim * ff_mult
    keys = iter(jax.random.split(key, 32))

    def dense(out_f, in_f):
        s = 1.0 / math.sqrt(in_f)
        return jax.random.uniform(next(keys), (out_f, in_f), jnp.float32, -s, s)

    def vec(n, fan_in):
        s = 1.0 / math.sqrt(fan_in)
        return jax.random.uniform(next(keys), (n,), jnp.float32, -s, s)

    p = {}
    p["ln_g"], p["ln_b"] = jnp.ones((dim,), jnp.float32), jnp.zeros((dim,), jnp.float32)
    # Mamba block
    p["mamba_in_proj_w"] = dense(2 * dim_inner, dim)                 # bias=False
    p["mamba_conv_w"] = dense(dim_inner, d_conv)                     # depthwise (C, k)
    p["mamba_conv_b"] = vec(dim_inner, d_conv)
    p["mamba_x_proj_w"] = dense(dt_rank + 2 * d_state, dim_inner)    # bias=False
    p["mamba_dt_proj_w"] = dense(dim_inner, dt_rank)
    p["mamba_dt_proj_b"] = vec(dim_inner, dt_rank)
    p["mamba_A_log"] = jnp.log(
        jnp.tile(jnp.arange(1, d_state + 1, dtype=jnp.float32)[None, :], (dim_inner, 1)))
    p["mamba_D"] = jnp.ones((dim_inner,), jnp.float32)
    p["mamba_out_proj_w"] = dense(dim, dim_inner)                    # bias=False
    # TransformerBlock: MQA + its own LayerNorm + its own FeedForward
    p["mqa_wqkv_w"] = dense(dim + 2 * dim_head, dim)
    p["mqa_wqkv_b"] = vec(dim + 2 * dim_head, dim)
    p["mqa_out_w"] = dense(dim, dim)
    p["mqa_out_b"] = vec(dim, dim)
    p["tb_ln_g"], p["tb_ln_b"] = jnp.ones((dim,), jnp.float32), jnp.zeros((dim,), jnp.float32)
    p["tb_ff_w1"], p["tb_ff_b1"] = dense(inner, dim), vec(inner, dim)
    p["tb_ff_w2"], p["tb_ff_b2"] = dense(dim, inner), vec(dim, inner)
    # outer FeedForward block
    p["ff_w1"], p["ff_b1"] = dense(inner, dim), vec(inner, dim)
    p["ff_w2"], p["ff_b2"] = dense(dim, inner), vec(dim, inner)
    return p


def prepare_params(p):
    wT = lambda w: w.T.astype(jnp.bfloat16)          # (K, N) bf16, transposed ONCE
    return {
        "ln_g": p["ln_g"], "ln_b": p["ln_b"],
        "mamba_in_proj_wT": wT(p["mamba_in_proj_w"]),
        "mamba_conv_w_kc": p["mamba_conv_w"].T.astype(jnp.float32),      # (K, C)
        "mamba_conv_b_1c": p["mamba_conv_b"].reshape(1, -1).astype(jnp.float32),
        "mamba_x_proj_wT": wT(p["mamba_x_proj_w"]),
        "mamba_dt_proj_wT": wT(p["mamba_dt_proj_w"]),
        "mamba_dt_proj_b": p["mamba_dt_proj_b"],
        "mamba_A_T": (-jnp.exp(p["mamba_A_log"])).T.astype(jnp.float32),  # (N, Din)
        "mamba_D_1d": p["mamba_D"].reshape(1, -1).astype(jnp.float32),
        "mamba_out_proj_wT": wT(p["mamba_out_proj_w"]),
        "mqa_wqkv_wT": wT(p["mqa_wqkv_w"]), "mqa_wqkv_b": p["mqa_wqkv_b"],
        "mqa_out_wT": wT(p["mqa_out_w"]), "mqa_out_b": p["mqa_out_b"],
        "tb_ln_g": p["tb_ln_g"], "tb_ln_b": p["tb_ln_b"],
        "tb_ff_w1T": wT(p["tb_ff_w1"]), "tb_ff_b1": p["tb_ff_b1"],
        "tb_ff_w2T": wT(p["tb_ff_w2"]), "tb_ff_b2": p["tb_ff_b2"],
        "ff_w1T": wT(p["ff_w1"]), "ff_b1": p["ff_b1"],
        "ff_w2T": wT(p["ff_w2"]), "ff_b2": p["ff_b2"],
    }


# ----------------------------------------------------------------------------
if __name__ == "__main__":
    # Small deterministic config: dim=32, heads=4 (dim_head=8), d_state=16, ff_mult=4
    B, S, DIM, HEADS, DIM_HEAD, D_STATE = 2, 8, 32, 4, 8, 16

    key = jax.random.PRNGKey(0)
    k_x, k_p = jax.random.split(key)
    x = jax.random.normal(k_x, (B, S, DIM), dtype=jnp.float32)   # layout: (B, S, D)
    raw = init_params(k_p, DIM, HEADS, DIM_HEAD, D_STATE)
    params = prepare_params(raw)

    fwd = jax.jit(functools.partial(mamba_transformer_block, heads=HEADS,
                                    d_state=D_STATE, dt_rank=math.ceil(DIM / 16)))
    out = jax.block_until_ready(fwd(x, params))
    assert out.shape == (B, S, DIM) and bool(jnp.all(jnp.isfinite(out)))
    print("KERNEL_OK")
</pallas_src>

<mosaic_0001>
module attributes {stable_mosaic.version = 11 : i64} {
  func.func @_layernorm_kernel(%arg0: i32, %arg1: memref<16x32xf32, #tpu.memory_space<vmem>>, %arg2: memref<1x32xf32, #tpu.memory_space<vmem>>, %arg3: memref<1x32xf32, #tpu.memory_space<vmem>>, %arg4: memref<16x32xf32, #tpu.memory_space<vmem>>) attributes {dimension_semantics = [#tpu.dimension_semantics<parallel>], iteration_bounds = array<i64: 1>, scalar_prefetch = 0 : i64, scratch_operands = 0 : i64, tpu.core_type = #tpu.core_type<tc>, window_params = [{transform_indices = @transform_0, window_bounds = array<i64: 16, 32>}, {pipeline_mode = #tpu.pipeline_mode<synchronous>, transform_indices = @transform_1, window_bounds = array<i64: 1, 32>}, {pipeline_mode = #tpu.pipeline_mode<synchronous>, transform_indices = @transform_2, window_bounds = array<i64: 1, 32>}, {transform_indices = @transform_3, window_bounds = array<i64: 16, 32>}]} {
    %c0 = arith.constant 0 : index
    %c0_0 = arith.constant 0 : index
    %0 = vector.load %arg1[%c0, %c0_0] : memref<16x32xf32, #tpu.memory_space<vmem>>, vector<16x32xf32>
    %cst = arith.constant dense<0.000000e+00> : vector<16xf32>
    %1 = vector.multi_reduction <add>, %0, %cst [1] : vector<16x32xf32> to vector<16xf32>
    %2 = vector.shape_cast %1 : vector<16xf32> to vector<16x1xf32>
    %cst_1 = arith.constant 3.200000e+01 : f32
    %3 = vector.broadcast %cst_1 : f32 to vector<16x1xf32>
    %4 = arith.divf %2, %3 : vector<16x1xf32>
    %5 = vector.broadcast %4 : vector<16x1xf32> to vector<16x32xf32>
    %6 = arith.subf %0, %5 : vector<16x32xf32>
    %7 = arith.mulf %6, %6 : vector<16x32xf32>
    %cst_2 = arith.constant dense<0.000000e+00> : vector<16xf32>
    %8 = vector.multi_reduction <add>, %7, %cst_2 [1] : vector<16x32xf32> to vector<16xf32>
    %9 = vector.shape_cast %8 : vector<16xf32> to vector<16x1xf32>
    %cst_3 = arith.constant 3.200000e+01 : f32
    %10 = vector.broadcast %cst_3 : f32 to vector<16x1xf32>
    %11 = arith.divf %9, %10 : vector<16x1xf32>
    %cst_4 = arith.constant 9.99999974E-6 : f32
    %12 = vector.broadcast %cst_4 : f32 to vector<16x1xf32>
    %13 = arith.addf %11, %12 : vector<16x1xf32>
    %14 = math.rsqrt %13 : vector<16x1xf32>
    %15 = vector.broadcast %14 : vector<16x1xf32> to vector<16x32xf32>
    %16 = arith.mulf %6, %15 : vector<16x32xf32>
    %c0_5 = arith.constant 0 : index
    %c0_6 = arith.constant 0 : index
    %17 = vector.load %arg2[%c0_5, %c0_6] : memref<1x32xf32, #tpu.memory_space<vmem>>, vector<1x32xf32>
    %18 = vector.broadcast %17 : vector<1x32xf32> to vector<16x32xf32>
    %19 = arith.mulf %16, %18 : vector<16x32xf32>
    %c0_7 = arith.constant 0 : index
    %c0_8 = arith.constant 0 : index
    %20 = vector.load %arg3[%c0_7, %c0_8] : memref<1x32xf32, #tpu.memory_space<vmem>>, vector<1x32xf32>
    %21 = vector.broadcast %20 : vector<1x32xf32> to vector<16x32xf32>
    %22 = arith.addf %19, %21 : vector<16x32xf32>
    %c0_9 = arith.constant 0 : index
    %c0_10 = arith.constant 0 : index
    %23 = vector.load %arg4[%c0_9, %c0_10] : memref<16x32xf32, #tpu.memory_space<vmem>>, vector<16x32xf32>
    tpu.vector_store %arg4[%c0_9, %c0_10], %22 {strides = array<i32>} : memref<16x32xf32, #tpu.memory_space<vmem>>, vector<16x32xf32>,
    return
  }
  func.func @transform_0(%arg0: i32) -> (i32, i32) {
    %c0_i32 = arith.constant 0 : i32
    %c0_i32_0 = arith.constant 0 : i32
    return %arg0, %c0_i32 : i32, i32
  }
  func.func @transform_1(%arg0: i32) -> (i32, i32) {
    %c0_i32 = arith.constant 0 : i32
    %c0_i32_0 = arith.constant 0 : i32
    %c0_i32_1 = arith.constant 0 : i32
    return %c0_i32, %c0_i32_0 : i32, i32
  }
  func.func @transform_2(%arg0: i32) -> (i32, i32) {
    %c0_i32 = arith.constant 0 : i32
    %c0_i32_0 = arith.constant 0 : i32
    %c0_i32_1 = arith.constant 0 : i32
    return %c0_i32, %c0_i32_0 : i32, i32
  }
  func.func @transform_3(%arg0: i32) -> (i32, i32) {
    %c0_i32 = arith.constant 0 : i32
    %c0_i32_0 = arith.constant 0 : i32
    return %arg0, %c0_i32 : i32, i32
  }
}

module attributes {stable_mosaic.version = 11 : i64} {
  func.func @_linear_kernel(%arg0: i32, %arg1: i32, %arg2: i32, %arg3: memref<16x32xf32, #tpu.memory_space<vmem>>, %arg4: memref<32x128xbf16, #tpu.memory_space<vmem>>, %arg5: memref<1x128xf32, #tpu.memory_space<vmem>>, %arg6: memref<16x128xf32, #tpu.memory_space<vmem>>, %arg7: memref<16x128xf32, #tpu.memory_space<vmem>>) attributes {dimension_semantics = [#tpu.dimension_semantics<parallel>, #tpu.dimension_semantics<parallel>, #tpu.dimension_semantics<arbitrary>], iteration_bounds = array<i64: 1, 1, 1>, scalar_prefetch = 0 : i64, scratch_operands = 1 : i64, tpu.core_type = #tpu.core_type<tc>, window_params = [{transform_indices = @transform_0, window_bounds = array<i64: 16, 32>}, {transform_indices = @transform_1, window_bounds = array<i64: 32, 128>}, {transform_indices = @transform_2, window_bounds = array<i64: 1, 128>}, {transform_indices = @transform_3, window_bounds = array<i64: 16, 128>}]} {
    %c0_i32 = arith.constant 0 : i32
    %0 = arith.cmpi eq, %arg2, %c0_i32 : i32
    %1 = arith.extui %0 : i1 to i32
    %c0_i32_0 = arith.constant 0 : i32
    %2 = arith.cmpi ne, %1, %c0_i32_0 : i32
    scf.if %2 {
      %cst_10 = arith.constant 0.000000e+00 : f32
      %13 = vector.broadcast %cst_10 : f32 to vector<16x128xf32>
      %c0_11 = arith.constant 0 : index
      %c0_12 = arith.constant 0 : index
      %14 = vector.load %arg7[%c0_11, %c0_12] : memref<16x128xf32, #tpu.memory_space<vmem>>, vector<16x128xf32>
      tpu.vector_store %arg7[%c0_11, %c0_12], %13 {strides = array<i32>} : memref<16x128xf32, #tpu.memory_space<vmem>>, vector<16x128xf32>,
    } else {
    }
    %c0 = arith.constant 0 : index
    %c0_1 = arith.constant 0 : index
    %3 = vector.load %arg7[%c0, %c0_1] : memref<16x128xf32, #tpu.memory_space<vmem>>, vector<16x128xf32>
    %c0_2 = arith.constant 0 : index
    %c0_3 = arith.constant 0 : index
    %4 = vector.load %arg3[%c0_2, %c0_3] : memref<16x32xf32, #tpu.memory_space<vmem>>, vector<16x32xf32>
    %5 = arith.truncf %4 : vector<16x32xf32> to vector<16x32xbf16>
    %c0_4 = arith.constant 0 : index
    %c0_5 = arith.constant 0 : index
    %6 = vector.load %arg4[%c0_4, %c0_5] : memref<32x128xbf16, #tpu.memory_space<vmem>>, vector<32x128xbf16>
    %cst = arith.constant dense<0.000000e+00> : vector<16x128xf32>
    %7 = tpu.matmul %5, %6, %cst {dimension_numbers = #tpu.dot_dimension_numbers<[1], [0], [0], [1], [0, 0, 1, 1], [], []>} : vector<16x32xbf16>, vector<32x128xbf16>, vector<16x128xf32> -> vector<16x128xf32>
    %8 = arith.addf %3, %7 : vector<16x128xf32>
    %c0_6 = arith.constant 0 : index
    %c0_7 = arith.constant 0 : index
    %9 = vector.load %arg7[%c0_6, %c0_7] : memref<16x128xf32, #tpu.memory_space<vmem>>, vector<16x128xf32>
    tpu.vector_store %arg7[%c0_6, %c0_7], %8 {strides = array<i32>} : memref<16x128xf32, #tpu.memory_space<vmem>>, vector<16x128xf32>,
    %c0_i32_8 = arith.constant 0 : i32
    %10 = arith.cmpi eq, %arg2, %c0_i32_8 : i32
    %11 = arith.extui %10 : i1 to i32
    %c0_i32_9 = arith.constant 0 : i32
    %12 = arith.cmpi ne, %11, %c0_i32_9 : i32
    scf.if %12 {
      %c0_10 = arith.constant 0 : index
      %c0_11 = arith.constant 0 : index
      %13 = vector.load %arg7[%c0_10, %c0_11] : memref<16x128xf32, #tpu.memory_space<vmem>>, vector<16x128xf32>
      %c0_12 = arith.constant 0 : index
      %c0_13 = arith.constant 0 : index
      %14 = vector.load %arg5[%c0_12, %c0_13] : memref<1x128xf32, #tpu.memory_space<vmem>>, vector<1x128xf32>
      %15 = vector.broadcast %14 : vector<1x128xf32> to vector<16x128xf32>
      %16 = arith.addf %13, %15 : vector<16x128xf32>
      %c0_14 = arith.constant 0 : index
      %c0_15 = arith.constant 0 : index
      %17 = vector.load %arg6[%c0_14, %c0_15] : memref<16x128xf32, #tpu.memory_space<vmem>>, vector<16x128xf32>
      tpu.vector_store %arg6[%c0_14, %c0_15], %16 {strides = array<i32>} : memref<16x128xf32, #tpu.memory_space<vmem>>, vector<16x128xf32>,
    } else {
    }
    return
  }
  func.func @transform_0(%arg0: i32, %arg1: i32, %arg2: i32) -> (i32, i32) {
    %c0_i32 = arith.constant 0 : i32
    return %arg0, %arg2 : i32, i32
  }
  func.func @transform_1(%arg0: i32, %arg1: i32, %arg2: i32) -> (i32, i32) {
    %c0_i32 = arith.constant 0 : i32
    return %arg2, %arg1 : i32, i32
  }
  func.func @transform_2(%arg0: i32, %arg1: i32, %arg2: i32) -> (i32, i32) {
    %c0_i32 = arith.constant 0 : i32
    %c0_i32_0 = arith.constant 0 : i32
    return %c0_i32, %arg1 : i32, i32
  }
  func.func @transform_3(%arg0: i32, %arg1: i32, %arg2: i32) -> (i32, i32) {
    %c0_i32 = arith.constant 0 : i32
    return %arg0, %arg1 : i32, i32
  }
}

module attributes {stable_mosaic.version = 11 : i64} {
  func.func @_conv_silu_kernel(%arg0: i32, %arg1: memref<1x8x64xf32, #tpu.memory_space<vmem>>, %arg2: memref<4x64xf32, #tpu.memory_space<vmem>>, %arg3: memref<1x64xf32, #tpu.memory_space<vmem>>, %arg4: memref<1x8x64xf32, #tpu.memory_space<vmem>>) attributes {dimension_semantics = [#tpu.dimension_semantics<parallel>], iteration_bounds = array<i64: 2>, scalar_prefetch = 0 : i64, scratch_operands = 0 : i64, tpu.core_type = #tpu.core_type<tc>, window_params = [{transform_indices = @transform_0, window_bounds = array<i64: 1, 8, 64>}, {pipeline_mode = #tpu.pipeline_mode<synchronous>, transform_indices = @transform_1, window_bounds = array<i64: 4, 64>}, {pipeline_mode = #tpu.pipeline_mode<synchronous>, transform_indices = @transform_2, window_bounds = array<i64: 1, 64>}, {transform_indices = @transform_3, window_bounds = array<i64: 1, 8, 64>}]} {
    %c0 = arith.constant 0 : index
    %c0_0 = arith.constant 0 : index
    %c0_1 = arith.constant 0 : index
    %0 = vector.load %arg1[%c0, %c0_0, %c0_1] : memref<1x8x64xf32, #tpu.memory_space<vmem>>, vector<1x8x64xf32>
    %1 = vector.shape_cast %0 : vector<1x8x64xf32> to vector<8x64xf32>
    %cst = arith.constant 0.000000e+00 : f32
    %2 = vector.broadcast %cst : f32 to vector<3x64xf32>
    %3 = tpu.concatenate %2, %1 in 0 : vector<3x64xf32>, vector<8x64xf32> -> vector<11x64xf32>
    %cst_2 = arith.constant 0.000000e+00 : f32
    %4 = vector.broadcast %cst_2 : f32 to vector<8x64xf32>
    %c0_3 = arith.constant 0 : index
    %c0_4 = arith.constant 0 : index
    %5 = vector.load %arg3[%c0_3, %c0_4] : memref<1x64xf32, #tpu.memory_space<vmem>>, vector<1x64xf32>
    %6 = vector.broadcast %5 : vector<1x64xf32> to vector<8x64xf32>
    %7 = arith.addf %4, %6 : vector<8x64xf32>
    %c0_5 = arith.constant 0 : index
    %c0_6 = arith.constant 0 : index
    %8 = vector.load %arg2[%c0_5, %c0_6] : memref<4x64xf32, #tpu.memory_space<vmem>>, vector<1x64xf32>
    %9 = vector.extract_strided_slice %3 {offsets = [0, 0], sizes = [8, 64], strides = [1, 1]} : vector<11x64xf32> to vector<8x64xf32>
    %10 = vector.broadcast %8 : vector<1x64xf32> to vector<8x64xf32>
    %11 = arith.mulf %9, %10 : vector<8x64xf32>
    %12 = arith.addf %7, %11 : vector<8x64xf32>
    %c1 = arith.constant 1 : index
    %c0_7 = arith.constant 0 : index
    %13 = vector.load %arg2[%c1, %c0_7] : memref<4x64xf32, #tpu.memory_space<vmem>>, vector<1x64xf32>
    %14 = vector.extract_strided_slice %3 {offsets = [1, 0], sizes = [8, 64], strides = [1, 1]} : vector<11x64xf32> to vector<8x64xf32>
    %15 = vector.broadcast %13 : vector<1x64xf32> to vector<8x64xf32>
    %16 = arith.mulf %14, %15 : vector<8x64xf32>
    %17 = arith.addf %12, %16 : vector<8x64xf32>
    %c2 = arith.constant 2 : index
    %c0_8 = arith.constant 0 : index
    %18 = vector.load %arg2[%c2, %c0_8] : memref<4x64xf32, #tpu.memory_space<vmem>>, vector<1x64xf32>
    %19 = vector.extract_strided_slice %3 {offsets = [2, 0], sizes = [8, 64], strides = [1, 1]} : vector<11x64xf32> to vector<8x64xf32>
    %20 = vector.broadcast %18 : vector<1x64xf32> to vector<8x64xf32>
    %21 = arith.mulf %19, %20 : vector<8x64xf32>
    %22 = arith.addf %17, %21 : vector<8x64xf32>
    %c3 = arith.constant 3 : index
    %c0_9 = arith.constant 0 : index
    %23 = vector.load %arg2[%c3, %c0_9] : memref<4x64xf32, #tpu.memory_space<vmem>>, vector<1x64xf32>
    %24 = vector.extract_strided_slice %3 {offsets = [3, 0], sizes = [8, 64], strides = [1, 1]} : vector<11x64xf32> to vector<8x64xf32>
    %25 = vector.broadcast %23 : vector<1x64xf32> to vector<8x64xf32>
    %26 = arith.mulf %24, %25 : vector<8x64xf32>
    %27 = arith.addf %22, %26 : vector<8x64xf32>
    %cst_10 = arith.constant 0.000000e+00 : f32
    %28 = vector.broadcast %cst_10 : f32 to vector<8x64xf32>
    %29 = arith.subf %28, %27 : vector<8x64xf32>
    %30 = math.exp %29 : vector<8x64xf32>
    %cst_11 = arith.constant 1.000000e+00 : f32
    %31 = vector.broadcast %cst_11 : f32 to vector<8x64xf32>
    %32 = arith.addf %31, %30 : vector<8x64xf32>
    %33 = tpu.reciprocal %32 {approx = true} : vector<8x64xf32> -> vector<8x64xf32>
    %34 = arith.mulf %27, %33 : vector<8x64xf32>
    %c0_12 = arith.constant 0 : index
    %c0_13 = arith.constant 0 : index
    %c0_14 = arith.constant 0 : index
    %35 = vector.load %arg4[%c0_12, %c0_13, %c0_14] : memref<1x8x64xf32, #tpu.memory_space<vmem>>, vector<1x8x64xf32>
    %36 = vector.shape_cast %35 : vector<1x8x64xf32> to vector<8x64xf32>
    %37 = vector.shape_cast %34 : vector<8x64xf32> to vector<1x8x64xf32>
    tpu.vector_store %arg4[%c0_12, %c0_13, %c0_14], %37 {strides = array<i32>} : memref<1x8x64xf32, #tpu.memory_space<vmem>>, vector<1x8x64xf32>,
    return
  }
  func.func @transform_0(%arg0: i32) -> (i32, i32, i32) {
    %c0_i32 = arith.constant 0 : i32
    %c0_i32_0 = arith.constant 0 : i32
    %c0_i32_1 = arith.constant 0 : i32
    return %arg0, %c0_i32, %c0_i32_0 : i32, i32, i32
  }
  func.func @transform_1(%arg0: i32) -> (i32, i32) {
    %c0_i32 = arith.constant 0 : i32
    %c0_i32_0 = arith.constant 0 : i32
    %c0_i32_1 = arith.constant 0 : i32
    return %c0_i32, %c0_i32_0 : i32, i32
  }
  func.func @transform_2(%arg0: i32) -> (i32, i32) {
    %c0_i32 = arith.constant 0 : i32
    %c0_i32_0 = arith.constant 0 : i32
    %c0_i32_1 = arith.constant 0 : i32
    return %c0_i32, %c0_i32_0 : i32, i32
  }
  func.func @transform_3(%arg0: i32) -> (i32, i32, i32) {
    %c0_i32 = arith.constant 0 : i32
    %c0_i32_0 = arith.constant 0 : i32
    %c0_i32_1 = arith.constant 0 : i32
    return %arg0, %c0_i32, %c0_i32_0 : i32, i32, i32
  }
}

module attributes {stable_mosaic.version = 11 : i64} {
  func.func @_linear_kernel(%arg0: i32, %arg1: i32, %arg2: i32, %arg3: memref<16x64xf32, #tpu.memory_space<vmem>>, %arg4: memref<64x34xbf16, #tpu.memory_space<vmem>>, %arg5: memref<1x34xf32, #tpu.memory_space<vmem>>, %arg6: memref<16x34xf32, #tpu.memory_space<vmem>>, %arg7: memref<16x34xf32, #tpu.memory_space<vmem>>) attributes {dimension_semantics = [#tpu.dimension_semantics<parallel>, #tpu.dimension_semantics<parallel>, #tpu.dimension_semantics<arbitrary>], iteration_bounds = array<i64: 1, 1, 1>, scalar_prefetch = 0 : i64, scratch_operands = 1 : i64, tpu.core_type = #tpu.core_type<tc>, window_params = [{transform_indices = @transform_0, window_bounds = array<i64: 16, 64>}, {transform_indices = @transform_1, window_bounds = array<i64: 64, 34>}, {transform_indices = @transform_2, window_bounds = array<i64: 1, 34>}, {transform_indices = @transform_3, window_bounds = array<i64: 16, 34>}]} {
    %c0_i32 = arith.constant 0 : i32
    %0 = arith.cmpi eq, %arg2, %c0_i32 : i32
    %1 = arith.extui %0 : i1 to i32
    %c0_i32_0 = arith.constant 0 : i32
    %2 = arith.cmpi ne, %1, %c0_i32_0 : i32
    scf.if %2 {
      %cst_10 = arith.constant 0.000000e+00 : f32
      %13 = vector.broadcast %cst_10 : f32 to vector<16x34xf32>
      %c0_11 = arith.constant 0 : index
      %c0_12 = arith.constant 0 : index
      %14 = vector.load %arg7[%c0_11, %c0_12] : memref<16x34xf32, #tpu.memory_space<vmem>>, vector<16x34xf32>
      tpu.vector_store %arg7[%c0_11, %c0_12], %13 {strides = array<i32>} : memref<16x34xf32, #tpu.memory_space<vmem>>, vector<16x34xf32>,
    } else {
    }
    %c0 = arith.constant 0 : index
    %c0_1 = arith.constant 0 : index
    %3 = vector.load %arg7[%c0, %c0_1] : memref<16x34xf32, #tpu.memory_space<vmem>>, vector<16x34xf32>
    %c0_2 = arith.constant 0 : index
    %c0_3 = arith.constant 0 : index
    %4 = vector.load %arg3[%c0_2, %c0_3] : memref<16x64xf32, #tpu.memory_space<vmem>>, vector<16x64xf32>
    %5 = arith.truncf %4 : vector<16x64xf32> to vector<16x64xbf16>
    %c0_4 = arith.constant 0 : index
    %c0_5 = arith.constant 0 : index
    %6 = vector.load %arg4[%c0_4, %c0_5] : memref<64x34xbf16, #tpu.memory_space<vmem>>, vector<64x34xbf16>
    %cst = arith.constant dense<0.000000e+00> : vector<16x34xf32>
    %7 = tpu.matmul %5, %6, %cst {dimension_numbers = #tpu.dot_dimension_numbers<[1], [0], [0], [1], [0, 0, 1, 1], [], []>} : vector<16x64xbf16>, vector<64x34xbf16>, vector<16x34xf32> -> vector<16x34xf32>
    %8 = arith.addf %3, %7 : vector<16x34xf32>
    %c0_6 = arith.constant 0 : index
    %c0_7 = arith.constant 0 : index
    %9 = vector.load %arg7[%c0_6, %c0_7] : memref<16x34xf32, #tpu.memory_space<vmem>>, vector<16x34xf32>
    tpu.vector_store %arg7[%c0_6, %c0_7], %8 {strides = array<i32>} : memref<16x34xf32, #tpu.memory_space<vmem>>, vector<16x34xf32>,
    %c0_i32_8 = arith.constant 0 : i32
    %10 = arith.cmpi eq, %arg2, %c0_i32_8 : i32
    %11 = arith.extui %10 : i1 to i32
    %c0_i32_9 = arith.constant 0 : i32
    %12 = arith.cmpi ne, %11, %c0_i32_9 : i32
    scf.if %12 {
      %c0_10 = arith.constant 0 : index
      %c0_11 = arith.constant 0 : index
      %13 = vector.load %arg7[%c0_10, %c0_11] : memref<16x34xf32, #tpu.memory_space<vmem>>, vector<16x34xf32>
      %c0_12 = arith.constant 0 : index
      %c0_13 = arith.constant 0 : index
      %14 = vector.load %arg5[%c0_12, %c0_13] : memref<1x34xf32, #tpu.memory_space<vmem>>, vector<1x34xf32>
      %15 = vector.broadcast %14 : vector<1x34xf32> to vector<16x34xf32>
      %16 = arith.addf %13, %15 : vector<16x34xf32>
      %c0_14 = arith.constant 0 : index
      %c0_15 = arith.constant 0 : index
      %17 = vector.load %arg6[%c0_14, %c0_15] : memref<16x34xf32, #tpu.memory_space<vmem>>, vector<16x34xf32>
      tpu.vector_store %arg6[%c0_14, %c0_15], %16 {strides = array<i32>} : memref<16x34xf32, #tpu.memory_space<vmem>>, vector<16x34xf32>,
    } else {
    }
    return
  }
  func.func @transform_0(%arg0: i32, %arg1: i32, %arg2: i32) -> (i32, i32) {
    %c0_i32 = arith.constant 0 : i32
    return %arg0, %arg2 : i32, i32
  }
  func.func @transform_1(%arg0: i32, %arg1: i32, %arg2: i32) -> (i32, i32) {
    %c0_i32 = arith.constant 0 : i32
    return %arg2, %arg1 : i32, i32
  }
  func.func @transform_2(%arg0: i32, %arg1: i32, %arg2: i32) -> (i32, i32) {
    %c0_i32 = arith.constant 0 : i32
    %c0_i32_0 = arith.constant 0 : i32
    return %c0_i32, %arg1 : i32, i32
  }
  func.func @transform_3(%arg0: i32, %arg1: i32, %arg2: i32) -> (i32, i32) {
    %c0_i32 = arith.constant 0 : i32
    return %arg0, %arg1 : i32, i32
  }
}

module attributes {stable_mosaic.version = 11 : i64} {
  func.func @_linear_kernel(%arg0: i32, %arg1: i32, %arg2: i32, %arg3: memref<16x2xf32, #tpu.memory_space<vmem>>, %arg4: memref<2x64xbf16, #tpu.memory_space<vmem>>, %arg5: memref<1x64xf32, #tpu.memory_space<vmem>>, %arg6: memref<16x64xf32, #tpu.memory_space<vmem>>, %arg7: memref<16x64xf32, #tpu.memory_space<vmem>>) attributes {dimension_semantics = [#tpu.dimension_semantics<parallel>, #tpu.dimension_semantics<parallel>, #tpu.dimension_semantics<arbitrary>], iteration_bounds = array<i64: 1, 1, 1>, scalar_prefetch = 0 : i64, scratch_operands = 1 : i64, tpu.core_type = #tpu.core_type<tc>, window_params = [{transform_indices = @transform_0, window_bounds = array<i64: 16, 2>}, {transform_indices = @transform_1, window_bounds = array<i64: 2, 64>}, {transform_indices = @transform_2, window_bounds = array<i64: 1, 64>}, {transform_indices = @transform_3, window_bounds = array<i64: 16, 64>}]} {
    %c0_i32 = arith.constant 0 : i32
    %0 = arith.cmpi eq, %arg2, %c0_i32 : i32
    %1 = arith.extui %0 : i1 to i32
    %c0_i32_0 = arith.constant 0 : i32
    %2 = arith.cmpi ne, %1, %c0_i32_0 : i32
    scf.if %2 {
      %cst_10 = arith.constant 0.000000e+00 : f32
      %13 = vector.broadcast %cst_10 : f32 to vector<16x64xf32>
      %c0_11 = arith.constant 0 : index
      %c0_12 = arith.constant 0 : index
      %14 = vector.load %arg7[%c0_11, %c0_12] : memref<16x64xf32, #tpu.memory_space<vmem>>, vector<16x64xf32>
      tpu.vector_store %arg7[%c0_11, %c0_12], %13 {strides = array<i32>} : memref<16x64xf32, #tpu.memory_space<vmem>>, vector<16x64xf32>,
    } else {
    }
    %c0 = arith.constant 0 : index
    %c0_1 = arith.constant 0 : index
    %3 = vector.load %arg7[%c0, %c0_1] : memref<16x64xf32, #tpu.memory_space<vmem>>, vector<16x64xf32>
    %c0_2 = arith.constant 0 : index
    %c0_3 = arith.constant 0 : index
    %4 = vector.load %arg3[%c0_2, %c0_3] : memref<16x2xf32, #tpu.memory_space<vmem>>, vector<16x2xf32>
    %5 = arith.truncf %4 : vector<16x2xf32> to vector<16x2xbf16>
    %c0_4 = arith.constant 0 : index
    %c0_5 = arith.constant 0 : index
    %6 = vector.load %arg4[%c0_4, %c0_5] : memref<2x64xbf16, #tpu.memory_space<vmem>>, vector<2x64xbf16>
    %cst = arith.constant dense<0.000000e+00> : vector<16x64xf32>
    %7 = tpu.matmul %5, %6, %cst {dimension_numbers = #tpu.dot_dimension_numbers<[1], [0], [0], [1], [0, 0, 1, 1], [], []>} : vector<16x2xbf16>, vector<2x64xbf16>, vector<16x64xf32> -> vector<16x64xf32>
    %8 = arith.addf %3, %7 : vector<16x64xf32>
    %c0_6 = arith.constant 0 : index
    %c0_7 = arith.constant 0 : index
    %9 = vector.load %arg7[%c0_6, %c0_7] : memref<16x64xf32, #tpu.memory_space<vmem>>, vector<16x64xf32>
    tpu.vector_store %arg7[%c0_6, %c0_7], %8 {strides = array<i32>} : memref<16x64xf32, #tpu.memory_space<vmem>>, vector<16x64xf32>,
    %c0_i32_8 = arith.constant 0 : i32
    %10 = arith.cmpi eq, %arg2, %c0_i32_8 : i32
    %11 = arith.extui %10 : i1 to i32
    %c0_i32_9 = arith.constant 0 : i32
    %12 = arith.cmpi ne, %11, %c0_i32_9 : i32
    scf.if %12 {
      %c0_10 = arith.constant 0 : index
      %c0_11 = arith.constant 0 : index
      %13 = vector.load %arg7[%c0_10, %c0_11] : memref<16x64xf32, #tpu.memory_space<vmem>>, vector<16x64xf32>
      %c0_12 = arith.constant 0 : index
      %c0_13 = arith.constant 0 : index
      %14 = vector.load %arg5[%c0_12, %c0_13] : memref<1x64xf32, #tpu.memory_space<vmem>>, vector<1x64xf32>
      %15 = vector.broadcast %14 : vector<1x64xf32> to vector<16x64xf32>
      %16 = arith.addf %13, %15 : vector<16x64xf32>
      %cst_14 = arith.constant 0.000000e+00 : f32
      %17 = vector.broadcast %cst_14 : f32 to vector<16x64xf32>
      %18 = arith.maximumf %16, %17 : vector<16x64xf32>
      %19 = math.absf %16 : vector<16x64xf32>
      %cst_15 = arith.constant 0.000000e+00 : f32
      %20 = vector.broadcast %cst_15 : f32 to vector<16x64xf32>
      %21 = arith.subf %20, %19 : vector<16x64xf32>
      %22 = math.exp %21 : vector<16x64xf32>
      %cst_16 = arith.constant 1.000000e+00 : f32
      %23 = vector.broadcast %cst_16 : f32 to vector<16x64xf32>
      %24 = arith.addf %23, %22 : vector<16x64xf32>
      %25 = math.log %24 : vector<16x64xf32>
      %26 = arith.addf %18, %25 : vector<16x64xf32>
      %c0_17 = arith.constant 0 : index
      %c0_18 = arith.constant 0 : index
      %27 = vector.load %arg6[%c0_17, %c0_18] : memref<16x64xf32, #tpu.memory_space<vmem>>, vector<16x64xf32>
      tpu.vector_store %arg6[%c0_17, %c0_18], %26 {strides = array<i32>} : memref<16x64xf32, #tpu.memory_space<vmem>>, vector<16x64xf32>,
    } else {
    }
    return
  }
  func.func @transform_0(%arg0: i32, %arg1: i32, %arg2: i32) -> (i32, i32) {
    %c0_i32 = arith.constant 0 : i32
    return %arg0, %arg2 : i32, i32
  }
  func.func @transform_1(%arg0: i32, %arg1: i32, %arg2: i32) -> (i32, i32) {
    %c0_i32 = arith.constant 0 : i32
    return %arg2, %arg1 : i32, i32
  }
  func.func @transform_2(%arg0: i32, %arg1: i32, %arg2: i32) -> (i32, i32) {
    %c0_i32 = arith.constant 0 : i32
    %c0_i32_0 = arith.constant 0 : i32
    return %c0_i32, %arg1 : i32, i32
  }
  func.func @transform_3(%arg0: i32, %arg1: i32, %arg2: i32) -> (i32, i32) {
    %c0_i32 = arith.constant 0 : i32
    return %arg0, %arg1 : i32, i32
  }
}

module attributes {stable_mosaic.version = 11 : i64} {
  func.func @_linear_kernel(%arg0: i32, %arg1: i32, %arg2: i32, %arg3: memref<16x64xf32, #tpu.memory_space<vmem>>, %arg4: memref<64x32xbf16, #tpu.memory_space<vmem>>, %arg5: memref<1x32xf32, #tpu.memory_space<vmem>>, %arg6: memref<16x32xf32, #tpu.memory_space<vmem>>, %arg7: memref<16x32xf32, #tpu.memory_space<vmem>>, %arg8: memref<16x32xf32, #tpu.memory_space<vmem>>) attributes {dimension_semantics = [#tpu.dimension_semantics<parallel>, #tpu.dimension_semantics<parallel>, #tpu.dimension_semantics<arbitrary>], iteration_bounds = array<i64: 1, 1, 1>, scalar_prefetch = 0 : i64, scratch_operands = 1 : i64, tpu.core_type = #tpu.core_type<tc>, window_params = [{transform_indices = @transform_0, window_bounds = array<i64: 16, 64>}, {transform_indices = @transform_1, window_bounds = array<i64: 64, 32>}, {transform_indices = @transform_2, window_bounds = array<i64: 1, 32>}, {transform_indices = @transform_3, window_bounds = array<i64: 16, 32>}, {transform_indices = @transform_4, window_bounds = array<i64: 16, 32>}]} {
    %c0_i32 = arith.constant 0 : i32
    %0 = arith.cmpi eq, %arg2, %c0_i32 : i32
    %1 = arith.extui %0 : i1 to i32
    %c0_i32_0 = arith.constant 0 : i32
    %2 = arith.cmpi ne, %1, %c0_i32_0 : i32
    scf.if %2 {
      %cst_10 = arith.constant 0.000000e+00 : f32
      %13 = vector.broadcast %cst_10 : f32 to vector<16x32xf32>
      %c0_11 = arith.constant 0 : index
      %c0_12 = arith.constant 0 : index
      %14 = vector.load %arg8[%c0_11, %c0_12] : memref<16x32xf32, #tpu.memory_space<vmem>>, vector<16x32xf32>
      tpu.vector_store %arg8[%c0_11, %c0_12], %13 {strides = array<i32>} : memref<16x32xf32, #tpu.memory_space<vmem>>, vector<16x32xf32>,
    } else {
    }
    %c0 = arith.constant 0 : index
    %c0_1 = arith.constant 0 : index
    %3 = vector.load %arg8[%c0, %c0_1] : memref<16x32xf32, #tpu.memory_space<vmem>>, vector<16x32xf32>
    %c0_2 = arith.constant 0 : index
    %c0_3 = arith.constant 0 : index
    %4 = vector.load %arg3[%c0_2, %c0_3] : memref<16x64xf32, #tpu.memory_space<vmem>>, vector<16x64xf32>
    %5 = arith.truncf %4 : vector<16x64xf32> to vector<16x64xbf16>
    %c0_4 = arith.constant 0 : index
    %c0_5 = arith.constant 0 : index
    %6 = vector.load %arg4[%c0_4, %c0_5] : memref<64x32xbf16, #tpu.memory_space<vmem>>, vector<64x32xbf16>
    %cst = arith.constant dense<0.000000e+00> : vector<16x32xf32>
    %7 = tpu.matmul %5, %6, %cst {dimension_numbers = #tpu.dot_dimension_numbers<[1], [0], [0], [1], [0, 0, 1, 1], [], []>} : vector<16x64xbf16>, vector<64x32xbf16>, vector<16x32xf32> -> vector<16x32xf32>
    %8 = arith.addf %3, %7 : vector<16x32xf32>
    %c0_6 = arith.constant 0 : index
    %c0_7 = arith.constant 0 : index
    %9 = vector.load %arg8[%c0_6, %c0_7] : memref<16x32xf32, #tpu.memory_space<vmem>>, vector<16x32xf32>
    tpu.vector_store %arg8[%c0_6, %c0_7], %8 {strides = array<i32>} : memref<16x32xf32, #tpu.memory_space<vmem>>, vector<16x32xf32>,
    %c0_i32_8 = arith.constant 0 : i32
    %10 = arith.cmpi eq, %arg2, %c0_i32_8 : i32
    %11 = arith.extui %10 : i1 to i32
    %c0_i32_9 = arith.constant 0 : i32
    %12 = arith.cmpi ne, %11, %c0_i32_9 : i32
    scf.if %12 {
      %c0_10 = arith.constant 0 : index
      %c0_11 = arith.constant 0 : index
      %13 = vector.load %arg8[%c0_10, %c0_11] : memref<16x32xf32, #tpu.memory_space<vmem>>, vector<16x32xf32>
      %c0_12 = arith.constant 0 : index
      %c0_13 = arith.constant 0 : index
      %14 = vector.load %arg5[%c0_12, %c0_13] : memref<1x32xf32, #tpu.memory_space<vmem>>, vector<1x32xf32>
      %15 = vector.broadcast %14 : vector<1x32xf32> to vector<16x32xf32>
      %16 = arith.addf %13, %15 : vector<16x32xf32>
      %c0_14 = arith.constant 0 : index
      %c0_15 = arith.constant 0 : index
      %17 = vector.load %arg6[%c0_14, %c0_15] : memref<16x32xf32, #tpu.memory_space<vmem>>, vector<16x32xf32>
      %18 = arith.addf %16, %17 : vector<16x32xf32>
      %c0_16 = arith.constant 0 : index
      %c0_17 = arith.constant 0 : index
      %19 = vector.load %arg7[%c0_16, %c0_17] : memref<16x32xf32, #tpu.memory_space<vmem>>, vector<16x32xf32>
      tpu.vector_store %arg7[%c0_16, %c0_17], %18 {strides = array<i32>} : memref<16x32xf32, #tpu.memory_space<vmem>>, vector<16x32xf32>,
    } else {
    }
    return
  }
  func.func @transform_0(%arg0: i32, %arg1: i32, %arg2: i32) -> (i32, i32) {
    %c0_i32 = arith.constant 0 : i32
    return %arg0, %arg2 : i32, i32
  }
  func.func @transform_1(%arg0: i32, %arg1: i32, %arg2: i32) -> (i32, i32) {
    %c0_i32 = arith.constant 0 : i32
    return %arg2, %arg1 : i32, i32
  }
  func.func @transform_2(%arg0: i32, %arg1: i32, %arg2: i32) -> (i32, i32) {
    %c0_i32 = arith.constant 0 : i32
    %c0_i32_0 = arith.constant 0 : i32
    return %c0_i32, %arg1 : i32, i32
  }
  func.func @transform_3(%arg0: i32, %arg1: i32, %arg2: i32) -> (i32, i32) {
    %c0_i32 = arith.constant 0 : i32
    return %arg0, %arg1 : i32, i32
  }
  func.func @transform_4(%arg0: i32, %arg1: i32, %arg2: i32) -> (i32, i32) {
    %c0_i32 = arith.constant 0 : i32
    return %arg0, %arg1 : i32, i32
  }
}

module attributes {stable_mosaic.version = 11 : i64} {
  func.func @_scan_kernel(%arg0: i32, %arg1: memref<8x2x64xf32, #tpu.memory_space<vmem>>, %arg2: memref<8x2x64xf32, #tpu.memory_space<vmem>>, %arg3: memref<16x64xf32, #tpu.memory_space<vmem>>, %arg4: memref<8x2x16xf32, #tpu.memory_space<vmem>>, %arg5: memref<8x2x16xf32, #tpu.memory_space<vmem>>, %arg6: memref<1x64xf32, #tpu.memory_space<vmem>>, %arg7: memref<8x2x64xf32, #tpu.memory_space<vmem>>, %arg8: memref<8x2x64xf32, #tpu.memory_space<vmem>>, %arg9: memref<2x16x64xf32, #tpu.memory_space<vmem>>) attributes {dimension_semantics = [#tpu.dimension_semantics<arbitrary>], iteration_bounds = array<i64: 1>, scalar_prefetch = 0 : i64, scratch_operands = 1 : i64, tpu.core_type = #tpu.core_type<tc>, window_params = [{transform_indices = @transform_0, window_bounds = array<i64: 8, 2, 64>}, {transform_indices = @transform_1, window_bounds = array<i64: 8, 2, 64>}, {pipeline_mode = #tpu.pipeline_mode<synchronous>, transform_indices = @transform_2, window_bounds = array<i64: 16, 64>}, {transform_indices = @transform_3, window_bounds = array<i64: 8, 2, 16>}, {transform_indices = @transform_4, window_bounds = array<i64: 8, 2, 16>}, {pipeline_mode = #tpu.pipeline_mode<synchronous>, transform_indices = @transform_5, window_bounds = array<i64: 1, 64>}, {transform_indices = @transform_6, window_bounds = array<i64: 8, 2, 64>}, {transform_indices = @transform_7, window_bounds = array<i64: 8, 2, 64>}]} {
    %c0_i32 = arith.constant 0 : i32
    %0 = arith.cmpi eq, %arg0, %c0_i32 : i32
    %1 = arith.extui %0 : i1 to i32
    %c0_i32_0 = arith.constant 0 : i32
    %2 = arith.cmpi ne, %1, %c0_i32_0 : i32
    scf.if %2 {
      %cst_170 = arith.constant 0.000000e+00 : f32
      %343 = vector.broadcast %cst_170 : f32 to vector<2x16x64xf32>
      %c0_171 = arith.constant 0 : index
      %c0_172 = arith.constant 0 : index
      %c0_173 = arith.constant 0 : index
      %344 = vector.load %arg9[%c0_171, %c0_172, %c0_173] : memref<2x16x64xf32, #tpu.memory_space<vmem>>, vector<2x16x64xf32>
      tpu.vector_store %arg9[%c0_171, %c0_172, %c0_173], %343 {strides = array<i32>} : memref<2x16x64xf32, #tpu.memory_space<vmem>>, vector<2x16x64xf32>,
    } else {
    }
    %c0 = arith.constant 0 : index
    %c0_1 = arith.constant 0 : index
    %3 = vector.load %arg3[%c0, %c0_1] : memref<16x64xf32, #tpu.memory_space<vmem>>, vector<16x64xf32>
    %c0_2 = arith.constant 0 : index
    %c0_3 = arith.constant 0 : index
    %4 = vector.load %arg6[%c0_2, %c0_3] : memref<1x64xf32, #tpu.memory_space<vmem>>, vector<1x64xf32>
    %c0_4 = arith.constant 0 : index
    %c0_5 = arith.constant 0 : index
    %c0_6 = arith.constant 0 : index
    %5 = vector.load %arg9[%c0_4, %c0_5, %c0_6] : memref<2x16x64xf32, #tpu.memory_space<vmem>>, vector<2x16x64xf32>
    %c0_7 = arith.constant 0 : index
    %c0_8 = arith.constant 0 : index
    %c0_9 = arith.constant 0 : index
    %6 = vector.load %arg2[%c0_7, %c0_8, %c0_9] : memref<8x2x64xf32, #tpu.memory_space<vmem>>, vector<1x2x64xf32>
    %7 = vector.shape_cast %6 : vector<1x2x64xf32> to vector<2x64xf32>
    %c0_10 = arith.constant 0 : index
    %c0_11 = arith.constant 0 : index
    %c0_12 = arith.constant 0 : index
    %8 = vector.load %arg1[%c0_10, %c0_11, %c0_12] : memref<8x2x64xf32, #tpu.memory_space<vmem>>, vector<1x2x64xf32>
    %9 = vector.shape_cast %8 : vector<1x2x64xf32> to vector<2x64xf32>
    %c0_13 = arith.constant 0 : index
    %c0_14 = arith.constant 0 : index
    %c0_15 = arith.constant 0 : index
    %10 = vector.load %arg4[%c0_13, %c0_14, %c0_15] : memref<8x2x16xf32, #tpu.memory_space<vmem>>, vector<1x2x16xf32>
    %11 = vector.shape_cast %10 : vector<1x2x16xf32> to vector<2x16xf32>
    %c0_16 = arith.constant 0 : index
    %c0_17 = arith.constant 0 : index
    %c0_18 = arith.constant 0 : index
    %12 = vector.load %arg5[%c0_16, %c0_17, %c0_18] : memref<8x2x16xf32, #tpu.memory_space<vmem>>, vector<1x2x16xf32>
    %13 = vector.shape_cast %12 : vector<1x2x16xf32> to vector<2x16xf32>
    %c0_19 = arith.constant 0 : index
    %c0_20 = arith.constant 0 : index
    %c0_21 = arith.constant 0 : index
    %14 = vector.load %arg7[%c0_19, %c0_20, %c0_21] : memref<8x2x64xf32, #tpu.memory_space<vmem>>, vector<1x2x64xf32>
    %15 = vector.shape_cast %14 : vector<1x2x64xf32> to vector<2x64xf32>
    %16 = vector.shape_cast %7 : vector<2x64xf32> to vector<2x1x64xf32>
    %17 = vector.shape_cast %3 : vector<16x64xf32> to vector<1x16x64xf32>
    %18 = vector.broadcast %16 : vector<2x1x64xf32> to vector<2x16x64xf32>
    %19 = vector.broadcast %17 : vector<1x16x64xf32> to vector<2x16x64xf32>
    %20 = arith.mulf %18, %19 : vector<2x16x64xf32>
    %21 = math.exp %20 : vector<2x16x64xf32>
    %22 = arith.mulf %7, %9 : vector<2x64xf32>
    %23 = vector.shape_cast %22 : vector<2x64xf32> to vector<2x1x64xf32>
    %24 = vector.shape_cast %11 : vector<2x16xf32> to vector<2x16x1xf32>
    %25 = vector.broadcast %23 : vector<2x1x64xf32> to vector<2x16x64xf32>
    %26 = vector.broadcast %24 : vector<2x16x1xf32> to vector<2x16x64xf32>
    %27 = arith.mulf %25, %26 : vector<2x16x64xf32>
    %28 = arith.mulf %21, %5 : vector<2x16x64xf32>
    %29 = arith.addf %28, %27 : vector<2x16x64xf32>
    %30 = vector.shape_cast %13 : vector<2x16xf32> to vector<2x16x1xf32>
    %31 = vector.broadcast %30 : vector<2x16x1xf32> to vector<2x16x64xf32>
    %32 = arith.mulf %29, %31 : vector<2x16x64xf32>
    %cst = arith.constant dense<0.000000e+00> : vector<2x64xf32>
    %33 = vector.multi_reduction <add>, %32, %cst [1] : vector<2x16x64xf32> to vector<2x64xf32>
    %34 = vector.broadcast %4 : vector<1x64xf32> to vector<2x64xf32>
    %35 = arith.mulf %9, %34 : vector<2x64xf32>
    %36 = arith.addf %33, %35 : vector<2x64xf32>
    %cst_22 = arith.constant 0.000000e+00 : f32
    %37 = vector.broadcast %cst_22 : f32 to vector<2x64xf32>
    %38 = arith.subf %37, %15 : vector<2x64xf32>
    %39 = math.exp %38 : vector<2x64xf32>
    %cst_23 = arith.constant 1.000000e+00 : f32
    %40 = vector.broadcast %cst_23 : f32 to vector<2x64xf32>
    %41 = arith.addf %40, %39 : vector<2x64xf32>
    %42 = tpu.reciprocal %41 {approx = true} : vector<2x64xf32> -> vector<2x64xf32>
    %43 = arith.mulf %15, %42 : vector<2x64xf32>
    %44 = arith.mulf %36, %43 : vector<2x64xf32>
    %c0_24 = arith.constant 0 : index
    %c0_25 = arith.constant 0 : index
    %c0_26 = arith.constant 0 : index
    %45 = vector.load %arg8[%c0_24, %c0_25, %c0_26] : memref<8x2x64xf32, #tpu.memory_space<vmem>>, vector<1x2x64xf32>
    %46 = vector.shape_cast %45 : vector<1x2x64xf32> to vector<2x64xf32>
    %47 = vector.shape_cast %44 : vector<2x64xf32> to vector<1x2x64xf32>
    tpu.vector_store %arg8[%c0_24, %c0_25, %c0_26], %47 {strides = array<i32>} : memref<8x2x64xf32, #tpu.memory_space<vmem>>, vector<1x2x64xf32>,
    %c1 = arith.constant 1 : index
    %c0_27 = arith.constant 0 : index
    %c0_28 = arith.constant 0 : index
    %48 = vector.load %arg2[%c1, %c0_27, %c0_28] : memref<8x2x64xf32, #tpu.memory_space<vmem>>, vector<1x2x64xf32>
    %49 = vector.shape_cast %48 : vector<1x2x64xf32> to vector<2x64xf32>
    %c1_29 = arith.constant 1 : index
    %c0_30 = arith.constant 0 : index
    %c0_31 = arith.constant 0 : index
    %50 = vector.load %arg1[%c1_29, %c0_30, %c0_31] : memref<8x2x64xf32, #tpu.memory_space<vmem>>, vector<1x2x64xf32>
    %51 = vector.shape_cast %50 : vector<1x2x64xf32> to vector<2x64xf32>
    %c1_32 = arith.constant 1 : index
    %c0_33 = arith.constant 0 : index
    %c0_34 = arith.constant 0 : index
    %52 = vector.load %arg4[%c1_32, %c0_33, %c0_34] : memref<8x2x16xf32, #tpu.memory_space<vmem>>, vector<1x2x16xf32>
    %53 = vector.shape_cast %52 : vector<1x2x16xf32> to vector<2x16xf32>
    %c1_35 = arith.constant 1 : index
    %c0_36 = arith.constant 0 : index
    %c0_37 = arith.constant 0 : index
    %54 = vector.load %arg5[%c1_35, %c0_36, %c0_37] : memref<8x2x16xf32, #tpu.memory_space<vmem>>, vector<1x2x16xf32>
    %55 = vector.shape_cast %54 : vector<1x2x16xf32> to vector<2x16xf32>
    %c1_38 = arith.constant 1 : index
    %c0_39 = arith.constant 0 : index
    %c0_40 = arith.constant 0 : index
    %56 = vector.load %arg7[%c1_38, %c0_39, %c0_40] : memref<8x2x64xf32, #tpu.memory_space<vmem>>, vector<1x2x64xf32>
    %57 = vector.shape_cast %56 : vector<1x2x64xf32> to vector<2x64xf32>
    %58 = vector.shape_cast %49 : vector<2x64xf32> to vector<2x1x64xf32>
    %59 = vector.shape_cast %3 : vector<16x64xf32> to vector<1x16x64xf32>
    %60 = vector.broadcast %58 : vector<2x1x64xf32> to vector<2x16x64xf32>
    %61 = vector.broadcast %59 : vector<1x16x64xf32> to vector<2x16x64xf32>
    %62 = arith.mulf %60, %61 : vector<2x16x64xf32>
    %63 = math.exp %62 : vector<2x16x64xf32>
    %64 = arith.mulf %49, %51 : vector<2x64xf32>
    %65 = vector.shape_cast %64 : vector<2x64xf32> to vector<2x1x64xf32>
    %66 = vector.shape_cast %53 : vector<2x16xf32> to vector<2x16x1xf32>
    %67 = vector.broadcast %65 : vector<2x1x64xf32> to vector<2x16x64xf32>
    %68 = vector.broadcast %66 : vector<2x16x1xf32> to vector<2x16x64xf32>
    %69 = arith.mulf %67, %68 : vector<2x16x64xf32>
    %70 = arith.mulf %63, %29 : vector<2x16x64xf32>
    %71 = arith.addf %70, %69 : vector<2x16x64xf32>
    %72 = vector.shape_cast %55 : vector<2x16xf32> to vector<2x16x1xf32>
    %73 = vector.broadcast %72 : vector<2x16x1xf32> to vector<2x16x64xf32>
    %74 = arith.mulf %71, %73 : vector<2x16x64xf32>
    %cst_41 = arith.constant dense<0.000000e+00> : vector<2x64xf32>
    %75 = vector.multi_reduction <add>, %74, %cst_41 [1] : vector<2x16x64xf32> to vector<2x64xf32>
    %76 = vector.broadcast %4 : vector<1x64xf32> to vector<2x64xf32>
    %77 = arith.mulf %51, %76 : vector<2x64xf32>
    %78 = arith.addf %75, %77 : vector<2x64xf32>
    %cst_42 = arith.constant 0.000000e+00 : f32
    %79 = vector.broadcast %cst_42 : f32 to vector<2x64xf32>
    %80 = arith.subf %79, %57 : vector<2x64xf32>
    %81 = math.exp %80 : vector<2x64xf32>
    %cst_43 = arith.constant 1.000000e+00 : f32
    %82 = vector.broadcast %cst_43 : f32 to vector<2x64xf32>
    %83 = arith.addf %82, %81 : vector<2x64xf32>
    %84 = tpu.reciprocal %83 {approx = true} : vector<2x64xf32> -> vector<2x64xf32>
    %85 = arith.mulf %57, %84 : vector<2x64xf32>
    %86 = arith.mulf %78, %85 : vector<2x64xf32>
    %c1_44 = arith.constant 1 : index
    %c0_45 = arith.constant 0 : index
    %c0_46 = arith.constant 0 : index
    %87 = vector.load %arg8[%c1_44, %c0_45, %c0_46] : memref<8x2x64xf32, #tpu.memory_space<vmem>>, vector<1x2x64xf32>
    %88 = vector.shape_cast %87 : vector<1x2x64xf32> to vector<2x64xf32>
    %89 = vector.shape_cast %86 : vector<2x64xf32> to vector<1x2x64xf32>
    tpu.vector_store %arg8[%c1_44, %c0_45, %c0_46], %89 {strides = array<i32>} : memref<8x2x64xf32, #tpu.memory_space<vmem>>, vector<1x2x64xf32>,
    %c2 = arith.constant 2 : index
    %c0_47 = arith.constant 0 : index
    %c0_48 = arith.constant 0 : index
    %90 = vector.load %arg2[%c2, %c0_47, %c0_48] : memref<8x2x64xf32, #tpu.memory_space<vmem>>, vector<1x2x64xf32>
    %91 = vector.shape_cast %90 : vector<1x2x64xf32> to vector<2x64xf32>
    %c2_49 = arith.constant 2 : index
    %c0_50 = arith.constant 0 : index
    %c0_51 = arith.constant 0 : index
    %92 = vector.load %arg1[%c2_49, %c0_50, %c0_51] : memref<8x2x64xf32, #tpu.memory_space<vmem>>, vector<1x2x64xf32>
    %93 = vector.shape_cast %92 : vector<1x2x64xf32> to vector<2x64xf32>
    %c2_52 = arith.constant 2 : index
    %c0_53 = arith.constant 0 : index
    %c0_54 = arith.constant 0 : index
    %94 = vector.load %arg4[%c2_52, %c0_53, %c0_54] : memref<8x2x16xf32, #tpu.memory_space<vmem>>, vector<1x2x16xf32>
    %95 = vector.shape_cast %94 : vector<1x2x16xf32> to vector<2x16xf32>
    %c2_55 = arith.constant 2 : index
    %c0_56 = arith.constant 0 : index
    %c0_57 = arith.constant 0 : index
    %96 = vector.load %arg5[%c2_55, %c0_56, %c0_57] : memref<8x2x16xf32, #tpu.memory_space<vmem>>, vector<1x2x16xf32>
    %97 = vector.shape_cast %96 : vector<1x2x16xf32> to vector<2x16xf32>
    %c2_58 = arith.constant 2 : index
    %c0_59 = arith.constant 0 : index
    %c0_60 = arith.constant 0 : index
    %98 = vector.load %arg7[%c2_58, %c0_59, %c0_60] : memref<8x2x64xf32, #tpu.memory_space<vmem>>, vector<1x2x64xf32>
    %99 = vector.shape_cast %98 : vector<1x2x64xf32> to vector<2x64xf32>
    %100 = vector.shape_cast %91 : vector<2x64xf32> to vector<2x1x64xf32>
    %101 = vector.shape_cast %3 : vector<16x64xf32> to vector<1x16x64xf32>
    %102 = vector.broadcast %100 : vector<2x1x64xf32> to vector<2x16x64xf32>
    %103 = vector.broadcast %101 : vector<1x16x64xf32> to vector<2x16x64xf32>
    %104 = arith.mulf %102, %103 : vector<2x16x64xf32>
    %105 = math.exp %104 : vector<2x16x64xf32>
    %106 = arith.mulf %91, %93 : vector<2x64xf32>
    %107 = vector.shape_cast %106 : vector<2x64xf32> to vector<2x1x64xf32>
    %108 = vector.shape_cast %95 : vector<2x16xf32> to vector<2x16x1xf32>
    %109 = vector.broadcast %107 : vector<2x1x64xf32> to vector<2x16x64xf32>
    %110 = vector.broadcast %108 : vector<2x16x1xf32> to vector<2x16x64xf32>
    %111 = arith.mulf %109, %110 : vector<2x16x64xf32>
    %112 = arith.mulf %105, %71 : vector<2x16x64xf32>
    %113 = arith.addf %112, %111 : vector<2x16x64xf32>
    %114 = vector.shape_cast %97 : vector<2x16xf32> to vector<2x16x1xf32>
    %115 = vector.broadcast %114 : vector<2x16x1xf32> to vector<2x16x64xf32>
    %116 = arith.mulf %113, %115 : vector<2x16x64xf32>
    %cst_61 = arith.constant dense<0.000000e+00> : vector<2x64xf32>
    %117 = vector.multi_reduction <add>, %116, %cst_61 [1] : vector<2x16x64xf32> to vector<2x64xf32>
    %118 = vector.broadcast %4 : vector<1x64xf32> to vector<2x64xf32>
    %119 = arith.mulf %93, %118 : vector<2x64xf32>
    %120 = arith.addf %117, %119 : vector<2x64xf32>
    %cst_62 = arith.constant 0.000000e+00 : f32
    %121 = vector.broadcast %cst_62 : f32 to vector<2x64xf32>
    %122 = arith.subf %121, %99 : vector<2x64xf32>
    %123 = math.exp %122 : vector<2x64xf32>
    %cst_63 = arith.constant 1.000000e+00 : f32
    %124 = vector.broadcast %cst_63 : f32 to vector<2x64xf32>
    %125 = arith.addf %124, %123 : vector<2x64xf32>
    %126 = tpu.reciprocal %125 {approx = true} : vector<2x64xf32> -> vector<2x64xf32>
    %127 = arith.mulf %99, %126 : vector<2x64xf32>
    %128 = arith.mulf %120, %127 : vector<2x64xf32>
    %c2_64 = arith.constant 2 : index
    %c0_65 = arith.constant 0 : index
    %c0_66 = arith.constant 0 : index
    %129 = vector.load %arg8[%c2_64, %c0_65, %c0_66] : memref<8x2x64xf32, #tpu.memory_space<vmem>>, vector<1x2x64xf32>
    %130 = vector.shape_cast %129 : vector<1x2x64xf32> to vector<2x64xf32>
    %131 = vector.shape_cast %128 : vector<2x64xf32> to vector<1x2x64xf32>
    tpu.vector_store %arg8[%c2_64, %c0_65, %c0_66], %131 {strides = array<i32>} : memref<8x2x64xf32, #tpu.memory_space<vmem>>, vector<1x2x64xf32>,
    %c3 = arith.constant 3 : index
    %c0_67 = arith.constant 0 : index
    %c0_68 = arith.constant 0 : index
    %132 = vector.load %arg2[%c3, %c0_67, %c0_68] : memref<8x2x64xf32, #tpu.memory_space<vmem>>, vector<1x2x64xf32>
    %133 = vector.shape_cast %132 : vector<1x2x64xf32> to vector<2x64xf32>
    %c3_69 = arith.constant 3 : index
    %c0_70 = arith.constant 0 : index
    %c0_71 = arith.constant 0 : index
    %134 = vector.load %arg1[%c3_69, %c0_70, %c0_71] : memref<8x2x64xf32, #tpu.memory_space<vmem>>, vector<1x2x64xf32>
    %135 = vector.shape_cast %134 : vector<1x2x64xf32> to vector<2x64xf32>
    %c3_72 = arith.constant 3 : index
    %c0_73 = arith.constant 0 : index
    %c0_74 = arith.constant 0 : index
    %136 = vector.load %arg4[%c3_72, %c0_73, %c0_74] : memref<8x2x16xf32, #tpu.memory_space<vmem>>, vector<1x2x16xf32>
    %137 = vector.shape_cast %136 : vector<1x2x16xf32> to vector<2x16xf32>
    %c3_75 = arith.constant 3 : index
    %c0_76 = arith.constant 0 : index
    %c0_77 = arith.constant 0 : index
    %138 = vector.load %arg5[%c3_75, %c0_76, %c0_77] : memref<8x2x16xf32, #tpu.memory_space<vmem>>, vector<1x2x16xf32>
    %139 = vector.shape_cast %138 : vector<1x2x16xf32> to vector<2x16xf32>
    %c3_78 = arith.constant 3 : index
    %c0_79 = arith.constant 0 : index
    %c0_80 = arith.constant 0 : index
    %140 = vector.load %arg7[%c3_78, %c0_79, %c0_80] : memref<8x2x64xf32, #tpu.memory_space<vmem>>, vector<1x2x64xf32>
    %141 = vector.shape_cast %140 : vector<1x2x64xf32> to vector<2x64xf32>
    %142 = vector.shape_cast %133 : vector<2x64xf32> to vector<2x1x64xf32>
    %143 = vector.shape_cast %3 : vector<16x64xf32> to vector<1x16x64xf32>
    %144 = vector.broadcast %142 : vector<2x1x64xf32> to vector<2x16x64xf32>
    %145 = vector.broadcast %143 : vector<1x16x64xf32> to vector<2x16x64xf32>
    %146 = arith.mulf %144, %145 : vector<2x16x64xf32>
    %147 = math.exp %146 : vector<2x16x64xf32>
    %148 = arith.mulf %133, %135 : vector<2x64xf32>
    %149 = vector.shape_cast %148 : vector<2x64xf32> to vector<2x1x64xf32>
    %150 = vector.shape_cast %137 : vector<2x16xf32> to vector<2x16x1xf32>
    %151 = vector.broadcast %149 : vector<2x1x64xf32> to vector<2x16x64xf32>
    %152 = vector.broadcast %150 : vector<2x16x1xf32> to vector<2x16x64xf32>
    %153 = arith.mulf %151, %152 : vector<2x16x64xf32>
    %154 = arith.mulf %147, %113 : vector<2x16x64xf32>
    %155 = arith.addf %154, %153 : vector<2x16x64xf32>
    %156 = vector.shape_cast %139 : vector<2x16xf32> to vector<2x16x1xf32>
    %157 = vector.broadcast %156 : vector<2x16x1xf32> to vector<2x16x64xf32>
    %158 = arith.mulf %155, %157 : vector<2x16x64xf32>
    %cst_81 = arith.constant dense<0.000000e+00> : vector<2x64xf32>
    %159 = vector.multi_reduction <add>, %158, %cst_81 [1] : vector<2x16x64xf32> to vector<2x64xf32>
    %160 = vector.broadcast %4 : vector<1x64xf32> to vector<2x64xf32>
    %161 = arith.mulf %135, %160 : vector<2x64xf32>
    %162 = arith.addf %159, %161 : vector<2x64xf32>
    %cst_82 = arith.constant 0.000000e+00 : f32
    %163 = vector.broadcast %cst_82 : f32 to vector<2x64xf32>
    %164 = arith.subf %163, %141 : vector<2x64xf32>
    %165 = math.exp %164 : vector<2x64xf32>
    %cst_83 = arith.constant 1.000000e+00 : f32
    %166 = vector.broadcast %cst_83 : f32 to vector<2x64xf32>
    %167 = arith.addf %166, %165 : vector<2x64xf32>
    %168 = tpu.reciprocal %167 {approx = true} : vector<2x64xf32> -> vector<2x64xf32>
    %169 = arith.mulf %141, %168 : vector<2x64xf32>
    %170 = arith.mulf %162, %169 : vector<2x64xf32>
    %c3_84 = arith.constant 3 : index
    %c0_85 = arith.constant 0 : index
    %c0_86 = arith.constant 0 : index
    %171 = vector.load %arg8[%c3_84, %c0_85, %c0_86] : memref<8x2x64xf32, #tpu.memory_space<vmem>>, vector<1x2x64xf32>
    %172 = vector.shape_cast %171 : vector<1x2x64xf32> to vector<2x64xf32>
    %173 = vector.shape_cast %170 : vector<2x64xf32> to vector<1x2x64xf32>
    tpu.vector_store %arg8[%c3_84, %c0_85, %c0_86], %173 {strides = array<i32>} : memref<8x2x64xf32, #tpu.memory_space<vmem>>, vector<1x2x64xf32>,
    %c4 = arith.constant 4 : index
    %c0_87 = arith.constant 0 : index
    %c0_88 = arith.constant 0 : index
    %174 = vector.load %arg2[%c4, %c0_87, %c0_88] : memref<8x2x64xf32, #tpu.memory_space<vmem>>, vector<1x2x64xf32>
    %175 = vector.shape_cast %174 : vector<1x2x64xf32> to vector<2x64xf32>
    %c4_89 = arith.constant 4 : index
    %c0_90 = arith.constant 0 : index
    %c0_91 = arith.constant 0 : index
    %176 = vector.load %arg1[%c4_89, %c0_90, %c0_91] : memref<8x2x64xf32, #tpu.memory_space<vmem>>, vector<1x2x64xf32>
    %177 = vector.shape_cast %176 : vector<1x2x64xf32> to vector<2x64xf32>
    %c4_92 = arith.constant 4 : index
    %c0_93 = arith.constant 0 : index
    %c0_94 = arith.constant 0 : index
    %178 = vector.load %arg4[%c4_92, %c0_93, %c0_94] : memref<8x2x16xf32, #tpu.memory_space<vmem>>, vector<1x2x16xf32>
    %179 = vector.shape_cast %178 : vector<1x2x16xf32> to vector<2x16xf32>
    %c4_95 = arith.constant 4 : index
    %c0_96 = arith.constant 0 : index
    %c0_97 = arith.constant 0 : index
    %180 = vector.load %arg5[%c4_95, %c0_96, %c0_97] : memref<8x2x16xf32, #tpu.memory_space<vmem>>, vector<1x2x16xf32>
    %181 = vector.shape_cast %180 : vector<1x2x16xf32> to vector<2x16xf32>
    %c4_98 = arith.constant 4 : index
    %c0_99 = arith.constant 0 : index
    %c0_100 = arith.constant 0 : index
    %182 = vector.load %arg7[%c4_98, %c0_99, %c0_100] : memref<8x2x64xf32, #tpu.memory_space<vmem>>, vector<1x2x64xf32>
    %183 = vector.shape_cast %182 : vector<1x2x64xf32> to vector<2x64xf32>
    %184 = vector.shape_cast %175 : vector<2x64xf32> to vector<2x1x64xf32>
    %185 = vector.shape_cast %3 : vector<16x64xf32> to vector<1x16x64xf32>
    %186 = vector.broadcast %184 : vector<2x1x64xf32> to vector<2x16x64xf32>
    %187 = vector.broadcast %185 : vector<1x16x64xf32> to vector<2x16x64xf32>
    %188 = arith.mulf %186, %187 : vector<2x16x64xf32>
    %189 = math.exp %188 : vector<2x16x64xf32>
    %190 = arith.mulf %175, %177 : vector<2x64xf32>
    %191 = vector.shape_cast %190 : vector<2x64xf32> to vector<2x1x64xf32>
    %192 = vector.shape_cast %179 : vector<2x16xf32> to vector<2x16x1xf32>
    %193 = vector.broadcast %191 : vector<2x1x64xf32> to vector<2x16x64xf32>
    %194 = vector.broadcast %192 : vector<2x16x1xf32> to vector<2x16x64xf32>
    %195 = arith.mulf %193, %194 : vector<2x16x64xf32>
    %196 = arith.mulf %189, %155 : vector<2x16x64xf32>
    %197 = arith.addf %196, %195 : vector<2x16x64xf32>
    %198 = vector.shape_cast %181 : vector<2x16xf32> to vector<2x16x1xf32>
    %199 = vector.broadcast %198 : vector<2x16x1xf32> to vector<2x16x64xf32>
    %200 = arith.mulf %197, %199 : vector<2x16x64xf32>
    %cst_101 = arith.constant dense<0.000000e+00> : vector<2x64xf32>
    %201 = vector.multi_reduction <add>, %200, %cst_101 [1] : vector<2x16x64xf32> to vector<2x64xf32>
    %202 = vector.broadcast %4 : vector<1x64xf32> to vector<2x64xf32>
    %203 = arith.mulf %177, %202 : vector<2x64xf32>
    %204 = arith.addf %201, %203 : vector<2x64xf32>
    %cst_102 = arith.constant 0.000000e+00 : f32
    %205 = vector.broadcast %cst_102 : f32 to vector<2x64xf32>
    %206 = arith.subf %205, %183 : vector<2x64xf32>
    %207 = math.exp %206 : vector<2x64xf32>
    %cst_103 = arith.constant 1.000000e+00 : f32
    %208 = vector.broadcast %cst_103 : f32 to vector<2x64xf32>
    %209 = arith.addf %208, %207 : vector<2x64xf32>
    %210 = tpu.reciprocal %209 {approx = true} : vector<2x64xf32> -> vector<2x64xf32>
    %211 = arith.mulf %183, %210 : vector<2x64xf32>
    %212 = arith.mulf %204, %211 : vector<2x64xf32>
    %c4_104 = arith.constant 4 : index
    %c0_105 = arith.constant 0 : index
    %c0_106 = arith.constant 0 : index
    %213 = vector.load %arg8[%c4_104, %c0_105, %c0_106] : memref<8x2x64xf32, #tpu.memory_space<vmem>>, vector<1x2x64xf32>
    %214 = vector.shape_cast %213 : vector<1x2x64xf32> to vector<2x64xf32>
    %215 = vector.shape_cast %212 : vector<2x64xf32> to vector<1x2x64xf32>
    tpu.vector_store %arg8[%c4_104, %c0_105, %c0_106], %215 {strides = array<i32>} : memref<8x2x64xf32, #tpu.memory_space<vmem>>, vector<1x2x64xf32>,
    %c5 = arith.constant 5 : index
    %c0_107 = arith.constant 0 : index
    %c0_108 = arith.constant 0 : index
    %216 = vector.load %arg2[%c5, %c0_107, %c0_108] : memref<8x2x64xf32, #tpu.memory_space<vmem>>, vector<1x2x64xf32>
    %217 = vector.shape_cast %216 : vector<1x2x64xf32> to vector<2x64xf32>
    %c5_109 = arith.constant 5 : index
    %c0_110 = arith.constant 0 : index
    %c0_111 = arith.constant 0 : index
    %218 = vector.load %arg1[%c5_109, %c0_110, %c0_111] : memref<8x2x64xf32, #tpu.memory_space<vmem>>, vector<1x2x64xf32>
    %219 = vector.shape_cast %218 : vector<1x2x64xf32> to vector<2x64xf32>
    %c5_112 = arith.constant 5 : index
    %c0_113 = arith.constant 0 : index
    %c0_114 = arith.constant 0 : index
    %220 = vector.load %arg4[%c5_112, %c0_113, %c0_114] : memref<8x2x16xf32, #tpu.memory_space<vmem>>, vector<1x2x16xf32>
    %221 = vector.shape_cast %220 : vector<1x2x16xf32> to vector<2x16xf32>
    %c5_115 = arith.constant 5 : index
    %c0_116 = arith.constant 0 : index
    %c0_117 = arith.constant 0 : index
    %222 = vector.load %arg5[%c5_115, %c0_116, %c0_117] : memref<8x2x16xf32, #tpu.memory_space<vmem>>, vector<1x2x16xf32>
    %223 = vector.shape_cast %222 : vector<1x2x16xf32> to vector<2x16xf32>
    %c5_118 = arith.constant 5 : index
    %c0_119 = arith.constant 0 : index
    %c0_120 = arith.constant 0 : index
    %224 = vector.load %arg7[%c5_118, %c0_119, %c0_120] : memref<8x2x64xf32, #tpu.memory_space<vmem>>, vector<1x2x64xf32>
    %225 = vector.shape_cast %224 : vector<1x2x64xf32> to vector<2x64xf32>
    %226 = vector.shape_cast %217 : vector<2x64xf32> to vector<2x1x64xf32>
    %227 = vector.shape_cast %3 : vector<16x64xf32> to vector<1x16x64xf32>
    %228 = vector.broadcast %226 : vector<2x1x64xf32> to vector<2x16x64xf32>
    %229 = vector.broadcast %227 : vector<1x16x64xf32> to vector<2x16x64xf32>
    %230 = arith.mulf %228, %229 : vector<2x16x64xf32>
    %231 = math.exp %230 : vector<2x16x64xf32>
    %232 = arith.mulf %217, %219 : vector<2x64xf32>
    %233 = vector.shape_cast %232 : vector<2x64xf32> to vector<2x1x64xf32>
    %234 = vector.shape_cast %221 : vector<2x16xf32> to vector<2x16x1xf32>
    %235 = vector.broadcast %233 : vector<2x1x64xf32> to vector<2x16x64xf32>
    %236 = vector.broadcast %234 : vector<2x16x1xf32> to vector<2x16x64xf32>
    %237 = arith.mulf %235, %236 : vector<2x16x64xf32>
    %238 = arith.mulf %231, %197 : vector<2x16x64xf32>
    %239 = arith.addf %238, %237 : vector<2x16x64xf32>
    %240 = vector.shape_cast %223 : vector<2x16xf32> to vector<2x16x1xf32>
    %241 = vector.broadcast %240 : vector<2x16x1xf32> to vector<2x16x64xf32>
    %242 = arith.mulf %239, %241 : vector<2x16x64xf32>
    %cst_121 = arith.constant dense<0.000000e+00> : vector<2x64xf32>
    %243 = vector.multi_reduction <add>, %242, %cst_121 [1] : vector<2x16x64xf32> to vector<2x64xf32>
    %244 = vector.broadcast %4 : vector<1x64xf32> to vector<2x64xf32>
    %245 = arith.mulf %219, %244 : vector<2x64xf32>
    %246 = arith.addf %243, %245 : vector<2x64xf32>
    %cst_122 = arith.constant 0.000000e+00 : f32
    %247 = vector.broadcast %cst_122 : f32 to vector<2x64xf32>
    %248 = arith.subf %247, %225 : vector<2x64xf32>
    %249 = math.exp %248 : vector<2x64xf32>
    %cst_123 = arith.constant 1.000000e+00 : f32
    %250 = vector.broadcast %cst_123 : f32 to vector<2x64xf32>
    %251 = arith.addf %250, %249 : vector<2x64xf32>
    %252 = tpu.reciprocal %251 {approx = true} : vector<2x64xf32> -> vector<2x64xf32>
    %253 = arith.mulf %225, %252 : vector<2x64xf32>
    %254 = arith.mulf %246, %253 : vector<2x64xf32>
    %c5_124 = arith.constant 5 : index
    %c0_125 = arith.constant 0 : index
    %c0_126 = arith.constant 0 : index
    %255 = vector.load %arg8[%c5_124, %c0_125, %c0_126] : memref<8x2x64xf32, #tpu.memory_space<vmem>>, vector<1x2x64xf32>
    %256 = vector.shape_cast %255 : vector<1x2x64xf32> to vector<2x64xf32>
    %257 = vector.shape_cast %254 : vector<2x64xf32> to vector<1x2x64xf32>
    tpu.vector_store %arg8[%c5_124, %c0_125, %c0_126], %257 {strides = array<i32>} : memref<8x2x64xf32, #tpu.memory_space<vmem>>, vector<1x2x64xf32>,
    %c6 = arith.constant 6 : index
    %c0_127 = arith.constant 0 : index
    %c0_128 = arith.constant 0 : index
    %258 = vector.load %arg2[%c6, %c0_127, %c0_128] : memref<8x2x64xf32, #tpu.memory_space<vmem>>, vector<1x2x64xf32>
    %259 = vector.shape_cast %258 : vector<1x2x64xf32> to vector<2x64xf32>
    %c6_129 = arith.constant 6 : index
    %c0_130 = arith.constant 0 : index
    %c0_131 = arith.constant 0 : index
    %260 = vector.load %arg1[%c6_129, %c0_130, %c0_131] : memref<8x2x64xf32, #tpu.memory_space<vmem>>, vector<1x2x64xf32>
    %261 = vector.shape_cast %260 : vector<1x2x64xf32> to vector<2x64xf32>
    %c6_132 = arith.constant 6 : index
    %c0_133 = arith.constant 0 : index
    %c0_134 = arith.constant 0 : index
    %262 = vector.load %arg4[%c6_132, %c0_133, %c0_134] : memref<8x2x16xf32, #tpu.memory_space<vmem>>, vector<1x2x16xf32>
    %263 = vector.shape_cast %262 : vector<1x2x16xf32> to vector<2x16xf32>
    %c6_135 = arith.constant 6 : index
    %c0_136 = arith.constant 0 : index
    %c0_137 = arith.constant 0 : index
    %264 = vector.load %arg5[%c6_135, %c0_136, %c0_137] : memref<8x2x16xf32, #tpu.memory_space<vmem>>, vector<1x2x16xf32>
    %265 = vector.shape_cast %264 : vector<1x2x16xf32> to vector<2x16xf32>
    %c6_138 = arith.constant 6 : index
    %c0_139 = arith.constant 0 : index
    %c0_140 = arith.constant 0 : index
    %266 = vector.load %arg7[%c6_138, %c0_139, %c0_140] : memref<8x2x64xf32, #tpu.memory_space<vmem>>, vector<1x2x64xf32>
    %267 = vector.shape_cast %266 : vector<1x2x64xf32> to vector<2x64xf32>
    %268 = vector.shape_cast %259 : vector<2x64xf32> to vector<2x1x64xf32>
    %269 = vector.shape_cast %3 : vector<16x64xf32> to vector<1x16x64xf32>
    %270 = vector.broadcast %268 : vector<2x1x64xf32> to vector<2x16x64xf32>
    %271 = vector.broadcast %269 : vector<1x16x64xf32> to vector<2x16x64xf32>
    %272 = arith.mulf %270, %271 : vector<2x16x64xf32>
    %273 = math.exp %272 : vector<2x16x64xf32>
    %274 = arith.mulf %259, %261 : vector<2x64xf32>
    %275 = vector.shape_cast %274 : vector<2x64xf32> to vector<2x1x64xf32>
    %276 = vector.shape_cast %263 : vector<2x16xf32> to vector<2x16x1xf32>
    %277 = vector.broadcast %275 : vector<2x1x64xf32> to vector<2x16x64xf32>
    %278 = vector.broadcast %276 : vector<2x16x1xf32> to vector<2x16x64xf32>
    %279 = arith.mulf %277, %278 : vector<2x16x64xf32>
    %280 = arith.mulf %273, %239 : vector<2x16x64xf32>
    %281 = arith.addf %280, %279 : vector<2x16x64xf32>
    %282 = vector.shape_cast %265 : vector<2x16xf32> to vector<2x16x1xf32>
    %283 = vector.broadcast %282 : vector<2x16x1xf32> to vector<2x16x64xf32>
    %284 = arith.mulf %281, %283 : vector<2x16x64xf32>
    %cst_141 = arith.constant dense<0.000000e+00> : vector<2x64xf32>
    %285 = vector.multi_reduction <add>, %284, %cst_141 [1] : vector<2x16x64xf32> to vector<2x64xf32>
    %286 = vector.broadcast %4 : vector<1x64xf32> to vector<2x64xf32>
    %287 = arith.mulf %261, %286 : vector<2x64xf32>
    %288 = arith.addf %285, %287 : vector<2x64xf32>
    %cst_142 = arith.constant 0.000000e+00 : f32
    %289 = vector.broadcast %cst_142 : f32 to vector<2x64xf32>
    %290 = arith.subf %289, %267 : vector<2x64xf32>
    %291 = math.exp %290 : vector<2x64xf32>
    %cst_143 = arith.constant 1.000000e+00 : f32
    %292 = vector.broadcast %cst_143 : f32 to vector<2x64xf32>
    %293 = arith.addf %292, %291 : vector<2x64xf32>
    %294 = tpu.reciprocal %293 {approx = true} : vector<2x64xf32> -> vector<2x64xf32>
    %295 = arith.mulf %267, %294 : vector<2x64xf32>
    %296 = arith.mulf %288, %295 : vector<2x64xf32>
    %c6_144 = arith.constant 6 : index
    %c0_145 = arith.constant 0 : index
    %c0_146 = arith.constant 0 : index
    %297 = vector.load %arg8[%c6_144, %c0_145, %c0_146] : memref<8x2x64xf32, #tpu.memory_space<vmem>>, vector<1x2x64xf32>
    %298 = vector.shape_cast %297 : vector<1x2x64xf32> to vector<2x64xf32>
    %299 = vector.shape_cast %296 : vector<2x64xf32> to vector<1x2x64xf32>
    tpu.vector_store %arg8[%c6_144, %c0_145, %c0_146], %299 {strides = array<i32>} : memref<8x2x64xf32, #tpu.memory_space<vmem>>, vector<1x2x64xf32>,
    %c7 = arith.constant 7 : index
    %c0_147 = arith.constant 0 : index
    %c0_148 = arith.constant 0 : index
    %300 = vector.load %arg2[%c7, %c0_147, %c0_148] : memref<8x2x64xf32, #tpu.memory_space<vmem>>, vector<1x2x64xf32>
    %301 = vector.shape_cast %300 : vector<1x2x64xf32> to vector<2x64xf32>
    %c7_149 = arith.constant 7 : index
    %c0_150 = arith.constant 0 : index
    %c0_151 = arith.constant 0 : index
    %302 = vector.load %arg1[%c7_149, %c0_150, %c0_151] : memref<8x2x64xf32, #tpu.memory_space<vmem>>, vector<1x2x64xf32>
    %303 = vector.shape_cast %302 : vector<1x2x64xf32> to vector<2x64xf32>
    %c7_152 = arith.constant 7 : index
    %c0_153 = arith.constant 0 : index
    %c0_154 = arith.constant 0 : index
    %304 = vector.load %arg4[%c7_152, %c0_153, %c0_154] : memref<8x2x16xf32, #tpu.memory_space<vmem>>, vector<1x2x16xf32>
    %305 = vector.shape_cast %304 : vector<1x2x16xf32> to vector<2x16xf32>
    %c7_155 = arith.constant 7 : index
    %c0_156 = arith.constant 0 : index
    %c0_157 = arith.constant 0 : index
    %306 = vector.load %arg5[%c7_155, %c0_156, %c0_157] : memref<8x2x16xf32, #tpu.memory_space<vmem>>, vector<1x2x16xf32>
    %307 = vector.shape_cast %306 : vector<1x2x16xf32> to vector<2x16xf32>
    %c7_158 = arith.constant 7 : index
    %c0_159 = arith.constant 0 : index
    %c0_160 = arith.constant 0 : index
    %308 = vector.load %arg7[%c7_158, %c0_159, %c0_160] : memref<8x2x64xf32, #tpu.memory_space<vmem>>, vector<1x2x64xf32>
    %309 = vector.shape_cast %308 : vector<1x2x64xf32> to vector<2x64xf32>
    %310 = vector.shape_cast %301 : vector<2x64xf32> to vector<2x1x64xf32>
    %311 = vector.shape_cast %3 : vector<16x64xf32> to vector<1x16x64xf32>
    %312 = vector.broadcast %310 : vector<2x1x64xf32> to vector<2x16x64xf32>
    %313 = vector.broadcast %311 : vector<1x16x64xf32> to vector<2x16x64xf32>
    %314 = arith.mulf %312, %313 : vector<2x16x64xf32>
    %315 = math.exp %314 : vector<2x16x64xf32>
    %316 = arith.mulf %301, %303 : vector<2x64xf32>
    %317 = vector.shape_cast %316 : vector<2x64xf32> to vector<2x1x64xf32>
    %318 = vector.shape_cast %305 : vector<2x16xf32> to vector<2x16x1xf32>
    %319 = vector.broadcast %317 : vector<2x1x64xf32> to vector<2x16x64xf32>
    %320 = vector.broadcast %318 : vector<2x16x1xf32> to vector<2x16x64xf32>
    %321 = arith.mulf %319, %320 : vector<2x16x64xf32>
    %322 = arith.mulf %315, %281 : vector<2x16x64xf32>
    %323 = arith.addf %322, %321 : vector<2x16x64xf32>
    %324 = vector.shape_cast %307 : vector<2x16xf32> to vector<2x16x1xf32>
    %325 = vector.broadcast %324 : vector<2x16x1xf32> to vector<2x16x64xf32>
    %326 = arith.mulf %323, %325 : vector<2x16x64xf32>
    %cst_161 = arith.constant dense<0.000000e+00> : vector<2x64xf32>
    %327 = vector.multi_reduction <add>, %326, %cst_161 [1] : vector<2x16x64xf32> to vector<2x64xf32>
    %328 = vector.broadcast %4 : vector<1x64xf32> to vector<2x64xf32>
    %329 = arith.mulf %303, %328 : vector<2x64xf32>
    %330 = arith.addf %327, %329 : vector<2x64xf32>
    %cst_162 = arith.constant 0.000000e+00 : f32
    %331 = vector.broadcast %cst_162 : f32 to vector<2x64xf32>
    %332 = arith.subf %331, %309 : vector<2x64xf32>
    %333 = math.exp %332 : vector<2x64xf32>
    %cst_163 = arith.constant 1.000000e+00 : f32
    %334 = vector.broadcast %cst_163 : f32 to vector<2x64xf32>
    %335 = arith.addf %334, %333 : vector<2x64xf32>
    %336 = tpu.reciprocal %335 {approx = true} : vector<2x64xf32> -> vector<2x64xf32>
    %337 = arith.mulf %309, %336 : vector<2x64xf32>
    %338 = arith.mulf %330, %337 : vector<2x64xf32>
    %c7_164 = arith.constant 7 : index
    %c0_165 = arith.constant 0 : index
    %c0_166 = arith.constant 0 : index
    %339 = vector.load %arg8[%c7_164, %c0_165, %c0_166] : memref<8x2x64xf32, #tpu.memory_space<vmem>>, vector<1x2x64xf32>
    %340 = vector.shape_cast %339 : vector<1x2x64xf32> to vector<2x64xf32>
    %341 = vector.shape_cast %338 : vector<2x64xf32> to vector<1x2x64xf32>
    tpu.vector_store %arg8[%c7_164, %c0_165, %c0_166], %341 {strides = array<i32>} : memref<8x2x64xf32, #tpu.memory_space<vmem>>, vector<1x2x64xf32>,
    %c0_167 = arith.constant 0 : index
    %c0_168 = arith.constant 0 : index
    %c0_169 = arith.constant 0 : index
    %342 = vector.load %arg9[%c0_167, %c0_168, %c0_169] : memref<2x16x64xf32, #tpu.memory_space<vmem>>, vector<2x16x64xf32>
    tpu.vector_store %arg9[%c0_167, %c0_168, %c0_169], %323 {strides = array<i32>} : memref<2x16x64xf32, #tpu.memory_space<vmem>>, vector<2x16x64xf32>,
    return
  }
  func.func @transform_0(%arg0: i32) -> (i32, i32, i32) {
    %c0_i32 = arith.constant 0 : i32
    %c0_i32_0 = arith.constant 0 : i32
    %c0_i32_1 = arith.constant 0 : i32
    return %arg0, %c0_i32, %c0_i32_0 : i32, i32, i32
  }
  func.func @transform_1(%arg0: i32) -> (i32, i32, i32) {
    %c0_i32 = arith.constant 0 : i32
    %c0_i32_0 = arith.constant 0 : i32
    %c0_i32_1 = arith.constant 0 : i32
    return %arg0, %c0_i32, %c0_i32_0 : i32, i32, i32
  }
  func.func @transform_2(%arg0: i32) -> (i32, i32) {
    %c0_i32 = arith.constant 0 : i32
    %c0_i32_0 = arith.constant 0 : i32
    %c0_i32_1 = arith.constant 0 : i32
    return %c0_i32, %c0_i32_0 : i32, i32
  }
  func.func @transform_3(%arg0: i32) -> (i32, i32, i32) {
    %c0_i32 = arith.constant 0 : i32
    %c0_i32_0 = arith.constant 0 : i32
    %c0_i32_1 = arith.constant 0 : i32
    return %arg0, %c0_i32, %c0_i32_0 : i32, i32, i32
  }
  func.func @transform_4(%arg0: i32) -> (i32, i32, i32) {
    %c0_i32 = arith.constant 0 : i32
    %c0_i32_0 = arith.constant 0 : i32
    %c0_i32_1 = arith.constant 0 : i32
    return %arg0, %c0_i32, %c0_i32_0 : i32, i32, i32
  }
  func.func @transform_5(%arg0: i32) -> (i32, i32) {
    %c0_i32 = arith.constant 0 : i32
    %c0_i32_0 = arith.constant 0 : i32
    %c0_i32_1 = arith.constant 0 : i32
    return %c0_i32, %c0_i32_0 : i32, i32
  }
  func.func @transform_6(%arg0: i32) -> (i32, i32, i32) {
    %c0_i32 = arith.constant 0 : i32
    %c0_i32_0 = arith.constant 0 : i32
    %c0_i32_1 = arith.constant 0 : i32
    return %arg0, %c0_i32, %c0_i32_0 : i32, i32, i32
  }
  func.func @transform_7(%arg0: i32) -> (i32, i32, i32) {
    %c0_i32 = arith.constant 0 : i32
    %c0_i32_0 = arith.constant 0 : i32
    %c0_i32_1 = arith.constant 0 : i32
    return %arg0, %c0_i32, %c0_i32_0 : i32, i32, i32
  }
}

module attributes {stable_mosaic.version = 11 : i64} {
  func.func @_linear_kernel(%arg0: i32, %arg1: i32, %arg2: i32, %arg3: memref<16x32xf32, #tpu.memory_space<vmem>>, %arg4: memref<32x48xbf16, #tpu.memory_space<vmem>>, %arg5: memref<1x48xf32, #tpu.memory_space<vmem>>, %arg6: memref<16x48xf32, #tpu.memory_space<vmem>>, %arg7: memref<16x48xf32, #tpu.memory_space<vmem>>) attributes {dimension_semantics = [#tpu.dimension_semantics<parallel>, #tpu.dimension_semantics<parallel>, #tpu.dimension_semantics<arbitrary>], iteration_bounds = array<i64: 1, 1, 1>, scalar_prefetch = 0 : i64, scratch_operands = 1 : i64, tpu.core_type = #tpu.core_type<tc>, window_params = [{transform_indices = @transform_0, window_bounds = array<i64: 16, 32>}, {transform_indices = @transform_1, window_bounds = array<i64: 32, 48>}, {transform_indices = @transform_2, window_bounds = array<i64: 1, 48>}, {transform_indices = @transform_3, window_bounds = array<i64: 16, 48>}]} {
    %c0_i32 = arith.constant 0 : i32
    %0 = arith.cmpi eq, %arg2, %c0_i32 : i32
    %1 = arith.extui %0 : i1 to i32
    %c0_i32_0 = arith.constant 0 : i32
    %2 = arith.cmpi ne, %1, %c0_i32_0 : i32
    scf.if %2 {
      %cst_10 = arith.constant 0.000000e+00 : f32
      %13 = vector.broadcast %cst_10 : f32 to vector<16x48xf32>
      %c0_11 = arith.constant 0 : index
      %c0_12 = arith.constant 0 : index
      %14 = vector.load %arg7[%c0_11, %c0_12] : memref<16x48xf32, #tpu.memory_space<vmem>>, vector<16x48xf32>
      tpu.vector_store %arg7[%c0_11, %c0_12], %13 {strides = array<i32>} : memref<16x48xf32, #tpu.memory_space<vmem>>, vector<16x48xf32>,
    } else {
    }
    %c0 = arith.constant 0 : index
    %c0_1 = arith.constant 0 : index
    %3 = vector.load %arg7[%c0, %c0_1] : memref<16x48xf32, #tpu.memory_space<vmem>>, vector<16x48xf32>
    %c0_2 = arith.constant 0 : index
    %c0_3 = arith.constant 0 : index
    %4 = vector.load %arg3[%c0_2, %c0_3] : memref<16x32xf32, #tpu.memory_space<vmem>>, vector<16x32xf32>
    %5 = arith.truncf %4 : vector<16x32xf32> to vector<16x32xbf16>
    %c0_4 = arith.constant 0 : index
    %c0_5 = arith.constant 0 : index
    %6 = vector.load %arg4[%c0_4, %c0_5] : memref<32x48xbf16, #tpu.memory_space<vmem>>, vector<32x48xbf16>
    %cst = arith.constant dense<0.000000e+00> : vector<16x48xf32>
    %7 = tpu.matmul %5, %6, %cst {dimension_numbers = #tpu.dot_dimension_numbers<[1], [0], [0], [1], [0, 0, 1, 1], [], []>} : vector<16x32xbf16>, vector<32x48xbf16>, vector<16x48xf32> -> vector<16x48xf32>
    %8 = arith.addf %3, %7 : vector<16x48xf32>
    %c0_6 = arith.constant 0 : index
    %c0_7 = arith.constant 0 : index
    %9 = vector.load %arg7[%c0_6, %c0_7] : memref<16x48xf32, #tpu.memory_space<vmem>>, vector<16x48xf32>
    tpu.vector_store %arg7[%c0_6, %c0_7], %8 {strides = array<i32>} : memref<16x48xf32, #tpu.memory_space<vmem>>, vector<16x48xf32>,
    %c0_i32_8 = arith.constant 0 : i32
    %10 = arith.cmpi eq, %arg2, %c0_i32_8 : i32
    %11 = arith.extui %10 : i1 to i32
    %c0_i32_9 = arith.constant 0 : i32
    %12 = arith.cmpi ne, %11, %c0_i32_9 : i32
    scf.if %12 {
      %c0_10 = arith.constant 0 : index
      %c0_11 = arith.constant 0 : index
      %13 = vector.load %arg7[%c0_10, %c0_11] : memref<16x48xf32, #tpu.memory_space<vmem>>, vector<16x48xf32>
      %c0_12 = arith.constant 0 : index
      %c0_13 = arith.constant 0 : index
      %14 = vector.load %arg5[%c0_12, %c0_13] : memref<1x48xf32, #tpu.memory_space<vmem>>, vector<1x48xf32>
      %15 = vector.broadcast %14 : vector<1x48xf32> to vector<16x48xf32>
      %16 = arith.addf %13, %15 : vector<16x48xf32>
      %c0_14 = arith.constant 0 : index
      %c0_15 = arith.constant 0 : index
      %17 = vector.load %arg6[%c0_14, %c0_15] : memref<16x48xf32, #tpu.memory_space<vmem>>, vector<16x48xf32>
      tpu.vector_store %arg6[%c0_14, %c0_15], %16 {strides = array<i32>} : memref<16x48xf32, #tpu.memory_space<vmem>>, vector<16x48xf32>,
    } else {
    }
    return
  }
  func.func @transform_0(%arg0: i32, %arg1: i32, %arg2: i32) -> (i32, i32) {
    %c0_i32 = arith.constant 0 : i32
    return %arg0, %arg2 : i32, i32
  }
  func.func @transform_1(%arg0: i32, %arg1: i32, %arg2: i32) -> (i32, i32) {
    %c0_i32 = arith.constant 0 : i32
    return %arg2, %arg1 : i32, i32
  }
  func.func @transform_2(%arg0: i32, %arg1: i32, %arg2: i32) -> (i32, i32) {
    %c0_i32 = arith.constant 0 : i32
    %c0_i32_0 = arith.constant 0 : i32
    return %c0_i32, %arg1 : i32, i32
  }
  func.func @transform_3(%arg0: i32, %arg1: i32, %arg2: i32) -> (i32, i32) {
    %c0_i32 = arith.constant 0 : i32
    return %arg0, %arg1 : i32, i32
  }
}

module attributes {stable_mosaic.version = 11 : i64} {
  func.func @_mqa_flash_kernel(%arg0: i32, %arg1: i32, %arg2: i32, %arg3: i32, %arg4: memref<1x1x8x8xf32, #tpu.memory_space<vmem>>, %arg5: memref<1x8x8xf32, #tpu.memory_space<vmem>>, %arg6: memref<1x8x8xf32, #tpu.memory_space<vmem>>, %arg7: memref<1x1x8x8xf32, #tpu.memory_space<vmem>>, %arg8: memref<8x1xf32, #tpu.memory_space<vmem>>, %arg9: memref<8x1xf32, #tpu.memory_space<vmem>>, %arg10: memref<8x8xf32, #tpu.memory_space<vmem>>) attributes {dimension_semantics = [#tpu.dimension_semantics<parallel>, #tpu.dimension_semantics<parallel>, #tpu.dimension_semantics<parallel>, #tpu.dimension_semantics<arbitrary>], iteration_bounds = array<i64: 2, 4, 1, 1>, scalar_prefetch = 0 : i64, scratch_operands = 3 : i64, tpu.core_type = #tpu.core_type<tc>, window_params = [{transform_indices = @transform_0, window_bounds = array<i64: 1, 1, 8, 8>}, {transform_indices = @transform_1, window_bounds = array<i64: 1, 8, 8>}, {transform_indices = @transform_2, window_bounds = array<i64: 1, 8, 8>}, {transform_indices = @transform_3, window_bounds = array<i64: 1, 1, 8, 8>}]} {
    %c0_i32 = arith.constant 0 : i32
    %0 = arith.cmpi eq, %arg3, %c0_i32 : i32
    %1 = arith.extui %0 : i1 to i32
    %c0_i32_0 = arith.constant 0 : i32
    %2 = arith.cmpi ne, %1, %c0_i32_0 : i32
    scf.if %2 {
      %cst = arith.constant 0.000000e+00 : f32
      %12 = vector.broadcast %cst : f32 to vector<8x1xf32>
      %cst_5 = arith.constant 1.000000e+30 : f32
      %13 = vector.broadcast %cst_5 : f32 to vector<8x1xf32>
      %14 = arith.subf %12, %13 : vector<8x1xf32>
      %c0 = arith.constant 0 : index
      %c0_6 = arith.constant 0 : index
      %15 = vector.load %arg8[%c0, %c0_6] : memref<8x1xf32, #tpu.memory_space<vmem>>, vector<8x1xf32>
      tpu.vector_store %arg8[%c0, %c0_6], %14 {strides = array<i32>} : memref<8x1xf32, #tpu.memory_space<vmem>>, vector<8x1xf32>,
      %cst_7 = arith.constant 0.000000e+00 : f32
      %16 = vector.broadcast %cst_7 : f32 to vector<8x1xf32>
      %c0_8 = arith.constant 0 : index
      %c0_9 = arith.constant 0 : index
      %17 = vector.load %arg9[%c0_8, %c0_9] : memref<8x1xf32, #tpu.memory_space<vmem>>, vector<8x1xf32>
      tpu.vector_store %arg9[%c0_8, %c0_9], %16 {strides = array<i32>} : memref<8x1xf32, #tpu.memory_space<vmem>>, vector<8x1xf32>,
      %cst_10 = arith.constant 0.000000e+00 : f32
      %18 = vector.broadcast %cst_10 : f32 to vector<8x8xf32>
      %c0_11 = arith.constant 0 : index
      %c0_12 = arith.constant 0 : index
      %19 = vector.load %arg10[%c0_11, %c0_12] : memref<8x8xf32, #tpu.memory_space<vmem>>, vector<8x8xf32>
      tpu.vector_store %arg10[%c0_11, %c0_12], %18 {strides = array<i32>} : memref<8x8xf32, #tpu.memory_space<vmem>>, vector<8x8xf32>,
    } else {
    }
    %c8_i32 = arith.constant 8 : i32
    %3 = arith.muli %arg3, %c8_i32 : i32
    %c8_i32_1 = arith.constant 8 : i32
    %4 = arith.muli %arg2, %c8_i32_1 : i32
    %c7_i32 = arith.constant 7 : i32
    %5 = arith.addi %4, %c7_i32 : i32
    %6 = arith.cmpi sle, %3, %5 : i32
    %7 = arith.extui %6 : i1 to i32
    %c0_i32_2 = arith.constant 0 : i32
    %8 = arith.cmpi ne, %7, %c0_i32_2 : i32
    scf.if %8 {
      %c0 = arith.constant 0 : index
      %c0_5 = arith.constant 0 : index
      %c0_6 = arith.constant 0 : index
      %c0_7 = arith.constant 0 : index
      %12 = vector.load %arg4[%c0, %c0_5, %c0_6, %c0_7] : memref<1x1x8x8xf32, #tpu.memory_space<vmem>>, vector<1x1x8x8xf32>
      %13 = vector.shape_cast %12 : vector<1x1x8x8xf32> to vector<8x8xf32>
      %14 = arith.truncf %13 : vector<8x8xf32> to vector<8x8xbf16>
      %c0_8 = arith.constant 0 : index
      %c0_9 = arith.constant 0 : index
      %c0_10 = arith.constant 0 : index
      %15 = vector.load %arg5[%c0_8, %c0_9, %c0_10] : memref<1x8x8xf32, #tpu.memory_space<vmem>>, vector<1x8x8xf32>
      %16 = vector.shape_cast %15 : vector<1x8x8xf32> to vector<8x8xf32>
      %17 = arith.truncf %16 : vector<8x8xf32> to vector<8x8xbf16>
      %cst = arith.constant dense<0.000000e+00> : vector<8x8xf32>
      %18 = tpu.matmul %14, %17, %cst {dimension_numbers = #tpu.dot_dimension_numbers<[1], [1], [0], [0], [0, 0, 1, 0], [], []>} : vector<8x8xbf16>, vector<8x8xbf16>, vector<8x8xf32> -> vector<8x8xf32>
      %cst_11 = arith.constant 0.353553385 : f32
      %19 = vector.broadcast %cst_11 : f32 to vector<8x8xf32>
      %20 = arith.mulf %18, %19 : vector<8x8xf32>
      %c8_i32_12 = arith.constant 8 : i32
      %21 = arith.muli %arg2, %c8_i32_12 : i32
      %22 = tpu.iota {dimensions = array<i32: 0>} : vector<8x8xi32>
      %23 = vector.broadcast %21 : i32 to vector<8x8xi32>
      %24 = arith.addi %23, %22 : vector<8x8xi32>
      %c8_i32_13 = arith.constant 8 : i32
      %25 = arith.muli %arg3, %c8_i32_13 : i32
      %26 = tpu.iota {dimensions = array<i32: 1>} : vector<8x8xi32>
      %27 = vector.broadcast %25 : i32 to vector<8x8xi32>
      %28 = arith.addi %27, %26 : vector<8x8xi32>
      %29 = arith.cmpi sgt, %28, %24 : vector<8x8xi32>
      %cst_14 = arith.constant -1.000000e+30 : f32
      %30 = vector.broadcast %cst_14 : f32 to vector<8x8xf32>
      %31 = arith.select %29, %30, %20 : vector<8x8xi1>, vector<8x8xf32>
      %c0_15 = arith.constant 0 : index
      %c0_16 = arith.constant 0 : index
      %32 = vector.load %arg8[%c0_15, %c0_16] : memref<8x1xf32, #tpu.memory_space<vmem>>, vector<8x1xf32>
      %cst_17 = arith.constant dense<0xFF800000> : vector<8xf32>
      %33 = vector.multi_reduction <maximumf>, %31, %cst_17 [1] : vector<8x8xf32> to vector<8xf32>
      %34 = vector.shape_cast %33 : vector<8xf32> to vector<8x1xf32>
      %35 = arith.maximumf %32, %34 : vector<8x1xf32>
      %36 = arith.subf %32, %35 : vector<8x1xf32>
      %37 = math.exp %36 : vector<8x1xf32>
      %38 = vector.broadcast %35 : vector<8x1xf32> to vector<8x8xf32>
      %39 = arith.subf %31, %38 : vector<8x8xf32>
      %40 = math.exp %39 : vector<8x8xf32>
      %c0_18 = arith.constant 0 : index
      %c0_19 = arith.constant 0 : index
      %41 = vector.load %arg9[%c0_18, %c0_19] : memref<8x1xf32, #tpu.memory_space<vmem>>, vector<8x1xf32>
      %42 = arith.mulf %37, %41 : vector<8x1xf32>
      %cst_20 = arith.constant dense<0.000000e+00> : vector<8xf32>
      %43 = vector.multi_reduction <add>, %40, %cst_20 [1] : vector<8x8xf32> to vector<8xf32>
      %44 = vector.shape_cast %43 : vector<8xf32> to vector<8x1xf32>
      %45 = arith.addf %42, %44 : vector<8x1xf32>
      %c0_21 = arith.constant 0 : index
      %c0_22 = arith.constant 0 : index
      %46 = vector.load %arg9[%c0_21, %c0_22] : memref<8x1xf32, #tpu.memory_space<vmem>>, vector<8x1xf32>
      tpu.vector_store %arg9[%c0_21, %c0_22], %45 {strides = array<i32>} : memref<8x1xf32, #tpu.memory_space<vmem>>, vector<8x1xf32>,
      %c0_23 = arith.constant 0 : index
      %c0_24 = arith.constant 0 : index
      %47 = vector.load %arg10[%c0_23, %c0_24] : memref<8x8xf32, #tpu.memory_space<vmem>>, vector<8x8xf32>
      %48 = vector.broadcast %37 : vector<8x1xf32> to vector<8x8xf32>
      %49 = arith.mulf %48, %47 : vector<8x8xf32>
      %50 = arith.truncf %40 : vector<8x8xf32> to vector<8x8xbf16>
      %c0_25 = arith.constant 0 : index
      %c0_26 = arith.constant 0 : index
      %c0_27 = arith.constant 0 : index
      %51 = vector.load %arg6[%c0_25, %c0_26, %c0_27] : memref<1x8x8xf32, #tpu.memory_space<vmem>>, vector<1x8x8xf32>
      %52 = vector.shape_cast %51 : vector<1x8x8xf32> to vector<8x8xf32>
      %53 = arith.truncf %52 : vector<8x8xf32> to vector<8x8xbf16>
      %cst_28 = arith.constant dense<0.000000e+00> : vector<8x8xf32>
      %54 = tpu.matmul %50, %53, %cst_28 {dimension_numbers = #tpu.dot_dimension_numbers<[1], [0], [0], [1], [0, 0, 1, 1], [], []>} : vector<8x8xbf16>, vector<8x8xbf16>, vector<8x8xf32> -> vector<8x8xf32>
      %55 = arith.addf %49, %54 : vector<8x8xf32>
      %c0_29 = arith.constant 0 : index
      %c0_30 = arith.constant 0 : index
      %56 = vector.load %arg10[%c0_29, %c0_30] : memref<8x8xf32, #tpu.memory_space<vmem>>, vector<8x8xf32>
      tpu.vector_store %arg10[%c0_29, %c0_30], %55 {strides = array<i32>} : memref<8x8xf32, #tpu.memory_space<vmem>>, vector<8x8xf32>,
      %c0_31 = arith.constant 0 : index
      %c0_32 = arith.constant 0 : index
      %57 = vector.load %arg8[%c0_31, %c0_32] : memref<8x1xf32, #tpu.memory_space<vmem>>, vector<8x1xf32>
      tpu.vector_store %arg8[%c0_31, %c0_32], %35 {strides = array<i32>} : memref<8x1xf32, #tpu.memory_space<vmem>>, vector<8x1xf32>,
    } else {
    }
    %c0_i32_3 = arith.constant 0 : i32
    %9 = arith.cmpi eq, %arg3, %c0_i32_3 : i32
    %10 = arith.extui %9 : i1 to i32
    %c0_i32_4 = arith.constant 0 : i32
    %11 = arith.cmpi ne, %10, %c0_i32_4 : i32
    scf.if %11 {
      %c0 = arith.constant 0 : index
      %c0_5 = arith.constant 0 : index
      %12 = vector.load %arg10[%c0, %c0_5] : memref<8x8xf32, #tpu.memory_space<vmem>>, vector<8x8xf32>
      %c0_6 = arith.constant 0 : index
      %c0_7 = arith.constant 0 : index
      %13 = vector.load %arg9[%c0_6, %c0_7] : memref<8x1xf32, #tpu.memory_space<vmem>>, vector<8x1xf32>
      %14 = tpu.reciprocal %13 {approx = true} : vector<8x1xf32> -> vector<8x1xf32>
      %15 = vector.broadcast %14 : vector<8x1xf32> to vector<8x8xf32>
      %16 = arith.mulf %12, %15 : vector<8x8xf32>
      %c0_8 = arith.constant 0 : index
      %c0_9 = arith.constant 0 : index
      %c0_10 = arith.constant 0 : index
      %c0_11 = arith.constant 0 : index
      %17 = vector.load %arg7[%c0_8, %c0_9, %c0_10, %c0_11] : memref<1x1x8x8xf32, #tpu.memory_space<vmem>>, vector<1x1x8x8xf32>
      %18 = vector.shape_cast %17 : vector<1x1x8x8xf32> to vector<8x8xf32>
      %19 = vector.shape_cast %16 : vector<8x8xf32> to vector<1x1x8x8xf32>
      tpu.vector_store %arg7[%c0_8, %c0_9, %c0_10, %c0_11], %19 {strides = array<i32>} : memref<1x1x8x8xf32, #tpu.memory_space<vmem>>, vector<1x1x8x8xf32>,
    } else {
    }
    return
  }
  func.func @transform_0(%arg0: i32, %arg1: i32, %arg2: i32, %arg3: i32) -> (i32, i32, i32, i32) {
    %c0_i32 = arith.constant 0 : i32
    %c0_i32_0 = arith.constant 0 : i32
    return %arg0, %arg1, %arg2, %c0_i32 : i32, i32, i32, i32
  }
  func.func @transform_1(%arg0: i32, %arg1: i32, %arg2: i32, %arg3: i32) -> (i32, i32, i32) {
    %c0_i32 = arith.constant 0 : i32
    %c0_i32_0 = arith.constant 0 : i32
    return %arg0, %arg3, %c0_i32 : i32, i32, i32
  }
  func.func @transform_2(%arg0: i32, %arg1: i32, %arg2: i32, %arg3: i32) -> (i32, i32, i32) {
    %c0_i32 = arith.constant 0 : i32
    %c0_i32_0 = arith.constant 0 : i32
    return %arg0, %arg3, %c0_i32 : i32, i32, i32
  }
  func.func @transform_3(%arg0: i32, %arg1: i32, %arg2: i32, %arg3: i32) -> (i32, i32, i32, i32) {
    %c0_i32 = arith.constant 0 : i32
    %c0_i32_0 = arith.constant 0 : i32
    return %arg0, %arg1, %arg2, %c0_i32 : i32, i32, i32, i32
  }
}

module attributes {stable_mosaic.version = 11 : i64} {
  func.func @_linear_kernel(%arg0: i32, %arg1: i32, %arg2: i32, %arg3: memref<16x32xf32, #tpu.memory_space<vmem>>, %arg4: memref<32x32xbf16, #tpu.memory_space<vmem>>, %arg5: memref<1x32xf32, #tpu.memory_space<vmem>>, %arg6: memref<16x32xf32, #tpu.memory_space<vmem>>, %arg7: memref<16x32xf32, #tpu.memory_space<vmem>>) attributes {dimension_semantics = [#tpu.dimension_semantics<parallel>, #tpu.dimension_semantics<parallel>, #tpu.dimension_semantics<arbitrary>], iteration_bounds = array<i64: 1, 1, 1>, scalar_prefetch = 0 : i64, scratch_operands = 1 : i64, tpu.core_type = #tpu.core_type<tc>, window_params = [{transform_indices = @transform_0, window_bounds = array<i64: 16, 32>}, {transform_indices = @transform_1, window_bounds = array<i64: 32, 32>}, {transform_indices = @transform_2, window_bounds = array<i64: 1, 32>}, {transform_indices = @transform_3, window_bounds = array<i64: 16, 32>}]} {
    %c0_i32 = arith.constant 0 : i32
    %0 = arith.cmpi eq, %arg2, %c0_i32 : i32
    %1 = arith.extui %0 : i1 to i32
    %c0_i32_0 = arith.constant 0 : i32
    %2 = arith.cmpi ne, %1, %c0_i32_0 : i32
    scf.if %2 {
      %cst_10 = arith.constant 0.000000e+00 : f32
      %13 = vector.broadcast %cst_10 : f32 to vector<16x32xf32>
      %c0_11 = arith.constant 0 : index
      %c0_12 = arith.constant 0 : index
      %14 = vector.load %arg7[%c0_11, %c0_12] : memref<16x32xf32, #tpu.memory_space<vmem>>, vector<16x32xf32>
      tpu.vector_store %arg7[%c0_11, %c0_12], %13 {strides = array<i32>} : memref<16x32xf32, #tpu.memory_space<vmem>>, vector<16x32xf32>,
    } else {
    }
    %c0 = arith.constant 0 : index
    %c0_1 = arith.constant 0 : index
    %3 = vector.load %arg7[%c0, %c0_1] : memref<16x32xf32, #tpu.memory_space<vmem>>, vector<16x32xf32>
    %c0_2 = arith.constant 0 : index
    %c0_3 = arith.constant 0 : index
    %4 = vector.load %arg3[%c0_2, %c0_3] : memref<16x32xf32, #tpu.memory_space<vmem>>, vector<16x32xf32>
    %5 = arith.truncf %4 : vector<16x32xf32> to vector<16x32xbf16>
    %c0_4 = arith.constant 0 : index
    %c0_5 = arith.constant 0 : index
    %6 = vector.load %arg4[%c0_4, %c0_5] : memref<32x32xbf16, #tpu.memory_space<vmem>>, vector<32x32xbf16>
    %cst = arith.constant dense<0.000000e+00> : vector<16x32xf32>
    %7 = tpu.matmul %5, %6, %cst {dimension_numbers = #tpu.dot_dimension_numbers<[1], [0], [0], [1], [0, 0, 1, 1], [], []>} : vector<16x32xbf16>, vector<32x32xbf16>, vector<16x32xf32> -> vector<16x32xf32>
    %8 = arith.addf %3, %7 : vector<16x32xf32>
    %c0_6 = arith.constant 0 : index
    %c0_7 = arith.constant 0 : index
    %9 = vector.load %arg7[%c0_6, %c0_7] : memref<16x32xf32, #tpu.memory_space<vmem>>, vector<16x32xf32>
    tpu.vector_store %arg7[%c0_6, %c0_7], %8 {strides = array<i32>} : memref<16x32xf32, #tpu.memory_space<vmem>>, vector<16x32xf32>,
    %c0_i32_8 = arith.constant 0 : i32
    %10 = arith.cmpi eq, %arg2, %c0_i32_8 : i32
    %11 = arith.extui %10 : i1 to i32
    %c0_i32_9 = arith.constant 0 : i32
    %12 = arith.cmpi ne, %11, %c0_i32_9 : i32
    scf.if %12 {
      %c0_10 = arith.constant 0 : index
      %c0_11 = arith.constant 0 : index
      %13 = vector.load %arg7[%c0_10, %c0_11] : memref<16x32xf32, #tpu.memory_space<vmem>>, vector<16x32xf32>
      %c0_12 = arith.constant 0 : index
      %c0_13 = arith.constant 0 : index
      %14 = vector.load %arg5[%c0_12, %c0_13] : memref<1x32xf32, #tpu.memory_space<vmem>>, vector<1x32xf32>
      %15 = vector.broadcast %14 : vector<1x32xf32> to vector<16x32xf32>
      %16 = arith.addf %13, %15 : vector<16x32xf32>
      %c0_14 = arith.constant 0 : index
      %c0_15 = arith.constant 0 : index
      %17 = vector.load %arg6[%c0_14, %c0_15] : memref<16x32xf32, #tpu.memory_space<vmem>>, vector<16x32xf32>
      tpu.vector_store %arg6[%c0_14, %c0_15], %16 {strides = array<i32>} : memref<16x32xf32, #tpu.memory_space<vmem>>, vector<16x32xf32>,
    } else {
    }
    return
  }
  func.func @transform_0(%arg0: i32, %arg1: i32, %arg2: i32) -> (i32, i32) {
    %c0_i32 = arith.constant 0 : i32
    return %arg0, %arg2 : i32, i32
  }
  func.func @transform_1(%arg0: i32, %arg1: i32, %arg2: i32) -> (i32, i32) {
    %c0_i32 = arith.constant 0 : i32
    return %arg2, %arg1 : i32, i32
  }
  func.func @transform_2(%arg0: i32, %arg1: i32, %arg2: i32) -> (i32, i32) {
    %c0_i32 = arith.constant 0 : i32
    %c0_i32_0 = arith.constant 0 : i32
    return %c0_i32, %arg1 : i32, i32
  }
  func.func @transform_3(%arg0: i32, %arg1: i32, %arg2: i32) -> (i32, i32) {
    %c0_i32 = arith.constant 0 : i32
    return %arg0, %arg1 : i32, i32
  }
}

module attributes {stable_mosaic.version = 11 : i64} {
  func.func @_linear_kernel(%arg0: i32, %arg1: i32, %arg2: i32, %arg3: memref<16x32xf32, #tpu.memory_space<vmem>>, %arg4: memref<32x128xbf16, #tpu.memory_space<vmem>>, %arg5: memref<1x128xf32, #tpu.memory_space<vmem>>, %arg6: memref<16x128xf32, #tpu.memory_space<vmem>>, %arg7: memref<16x128xf32, #tpu.memory_space<vmem>>) attributes {dimension_semantics = [#tpu.dimension_semantics<parallel>, #tpu.dimension_semantics<parallel>, #tpu.dimension_semantics<arbitrary>], iteration_bounds = array<i64: 1, 1, 1>, scalar_prefetch = 0 : i64, scratch_operands = 1 : i64, tpu.core_type = #tpu.core_type<tc>, window_params = [{transform_indices = @transform_0, window_bounds = array<i64: 16, 32>}, {transform_indices = @transform_1, window_bounds = array<i64: 32, 128>}, {transform_indices = @transform_2, window_bounds = array<i64: 1, 128>}, {transform_indices = @transform_3, window_bounds = array<i64: 16, 128>}]} {
    %c0_i32 = arith.constant 0 : i32
    %0 = arith.cmpi eq, %arg2, %c0_i32 : i32
    %1 = arith.extui %0 : i1 to i32
    %c0_i32_0 = arith.constant 0 : i32
    %2 = arith.cmpi ne, %1, %c0_i32_0 : i32
    scf.if %2 {
      %cst_10 = arith.constant 0.000000e+00 : f32
      %13 = vector.broadcast %cst_10 : f32 to vector<16x128xf32>
      %c0_11 = arith.constant 0 : index
      %c0_12 = arith.constant 0 : index
      %14 = vector.load %arg7[%c0_11, %c0_12] : memref<16x128xf32, #tpu.memory_space<vmem>>, vector<16x128xf32>
      tpu.vector_store %arg7[%c0_11, %c0_12], %13 {strides = array<i32>} : memref<16x128xf32, #tpu.memory_space<vmem>>, vector<16x128xf32>,
    } else {
    }
    %c0 = arith.constant 0 : index
    %c0_1 = arith.constant 0 : index
    %3 = vector.load %arg7[%c0, %c0_1] : memref<16x128xf32, #tpu.memory_space<vmem>>, vector<16x128xf32>
    %c0_2 = arith.constant 0 : index
    %c0_3 = arith.constant 0 : index
    %4 = vector.load %arg3[%c0_2, %c0_3] : memref<16x32xf32, #tpu.memory_space<vmem>>, vector<16x32xf32>
    %5 = arith.truncf %4 : vector<16x32xf32> to vector<16x32xbf16>
    %c0_4 = arith.constant 0 : index
    %c0_5 = arith.constant 0 : index
    %6 = vector.load %arg4[%c0_4, %c0_5] : memref<32x128xbf16, #tpu.memory_space<vmem>>, vector<32x128xbf16>
    %cst = arith.constant dense<0.000000e+00> : vector<16x128xf32>
    %7 = tpu.matmul %5, %6, %cst {dimension_numbers = #tpu.dot_dimension_numbers<[1], [0], [0], [1], [0, 0, 1, 1], [], []>} : vector<16x32xbf16>, vector<32x128xbf16>, vector<16x128xf32> -> vector<16x128xf32>
    %8 = arith.addf %3, %7 : vector<16x128xf32>
    %c0_6 = arith.constant 0 : index
    %c0_7 = arith.constant 0 : index
    %9 = vector.load %arg7[%c0_6, %c0_7] : memref<16x128xf32, #tpu.memory_space<vmem>>, vector<16x128xf32>
    tpu.vector_store %arg7[%c0_6, %c0_7], %8 {strides = array<i32>} : memref<16x128xf32, #tpu.memory_space<vmem>>, vector<16x128xf32>,
    %c0_i32_8 = arith.constant 0 : i32
    %10 = arith.cmpi eq, %arg2, %c0_i32_8 : i32
    %11 = arith.extui %10 : i1 to i32
    %c0_i32_9 = arith.constant 0 : i32
    %12 = arith.cmpi ne, %11, %c0_i32_9 : i32
    scf.if %12 {
      %c0_10 = arith.constant 0 : index
      %c0_11 = arith.constant 0 : index
      %13 = vector.load %arg7[%c0_10, %c0_11] : memref<16x128xf32, #tpu.memory_space<vmem>>, vector<16x128xf32>
      %c0_12 = arith.constant 0 : index
      %c0_13 = arith.constant 0 : index
      %14 = vector.load %arg5[%c0_12, %c0_13] : memref<1x128xf32, #tpu.memory_space<vmem>>, vector<1x128xf32>
      %15 = vector.broadcast %14 : vector<1x128xf32> to vector<16x128xf32>
      %16 = arith.addf %13, %15 : vector<16x128xf32>
      %cst_14 = arith.constant 5.000000e-01 : f32
      %17 = vector.broadcast %cst_14 : f32 to vector<16x128xf32>
      %18 = arith.mulf %17, %16 : vector<16x128xf32>
      %cst_15 = arith.constant 4.471500e-02 : f32
      %19 = vector.broadcast %cst_15 : f32 to vector<16x128xf32>
      %20 = arith.mulf %19, %16 : vector<16x128xf32>
      %21 = arith.mulf %20, %16 : vector<16x128xf32>
      %22 = arith.mulf %21, %16 : vector<16x128xf32>
      %23 = arith.addf %16, %22 : vector<16x128xf32>
      %cst_16 = arith.constant 0.797884583 : f32
      %24 = vector.broadcast %cst_16 : f32 to vector<16x128xf32>
      %25 = arith.mulf %24, %23 : vector<16x128xf32>
      %26 = math.tanh %25 : vector<16x128xf32>
      %cst_17 = arith.constant 1.000000e+00 : f32
      %27 = vector.broadcast %cst_17 : f32 to vector<16x128xf32>
      %28 = arith.addf %27, %26 : vector<16x128xf32>
      %29 = arith.mulf %18, %28 : vector<16x128xf32>
      %c0_18 = arith.constant 0 : index
      %c0_19 = arith.constant 0 : index
      %30 = vector.load %arg6[%c0_18, %c0_19] : memref<16x128xf32, #tpu.memory_space<vmem>>, vector<16x128xf32>
      tpu.vector_store %arg6[%c0_18, %c0_19], %29 {strides = array<i32>} : memref<16x128xf32, #tpu.memory_space<vmem>>, vector<16x128xf32>,
    } else {
    }
    return
  }
  func.func @transform_0(%arg0: i32, %arg1: i32, %arg2: i32) -> (i32, i32) {
    %c0_i32 = arith.constant 0 : i32
    return %arg0, %arg2 : i32, i32
  }
  func.func @transform_1(%arg0: i32, %arg1: i32, %arg2: i32) -> (i32, i32) {
    %c0_i32 = arith.constant 0 : i32
    return %arg2, %arg1 : i32, i32
  }
  func.func @transform_2(%arg0: i32, %arg1: i32, %arg2: i32) -> (i32, i32) {
    %c0_i32 = arith.constant 0 : i32
    %c0_i32_0 = arith.constant 0 : i32
    return %c0_i32, %arg1 : i32, i32
  }
  func.func @transform_3(%arg0: i32, %arg1: i32, %arg2: i32) -> (i32, i32) {
    %c0_i32 = arith.constant 0 : i32
    return %arg0, %arg1 : i32, i32
  }
}

module attributes {stable_mosaic.version = 11 : i64} {
  func.func @_linear_kernel(%arg0: i32, %arg1: i32, %arg2: i32, %arg3: memref<16x128xf32, #tpu.memory_space<vmem>>, %arg4: memref<128x32xbf16, #tpu.memory_space<vmem>>, %arg5: memref<1x32xf32, #tpu.memory_space<vmem>>, %arg6: memref<16x32xf32, #tpu.memory_space<vmem>>, %arg7: memref<16x32xf32, #tpu.memory_space<vmem>>, %arg8: memref<16x32xf32, #tpu.memory_space<vmem>>) attributes {dimension_semantics = [#tpu.dimension_semantics<parallel>, #tpu.dimension_semantics<parallel>, #tpu.dimension_semantics<arbitrary>], iteration_bounds = array<i64: 1, 1, 1>, scalar_prefetch = 0 : i64, scratch_operands = 1 : i64, tpu.core_type = #tpu.core_type<tc>, window_params = [{transform_indices = @transform_0, window_bounds = array<i64: 16, 128>}, {transform_indices = @transform_1, window_bounds = array<i64: 128, 32>}, {transform_indices = @transform_2, window_bounds = array<i64: 1, 32>}, {transform_indices = @transform_3, window_bounds = array<i64: 16, 32>}, {transform_indices = @transform_4, window_bounds = array<i64: 16, 32>}]} {
    %c0_i32 = arith.constant 0 : i32
    %0 = arith.cmpi eq, %arg2, %c0_i32 : i32
    %1 = arith.extui %0 : i1 to i32
    %c0_i32_0 = arith.constant 0 : i32
    %2 = arith.cmpi ne, %1, %c0_i32_0 : i32
    scf.if %2 {
      %cst_10 = arith.constant 0.000000e+00 : f32
      %13 = vector.broadcast %cst_10 : f32 to vector<16x32xf32>
      %c0_11 = arith.constant 0 : index
      %c0_12 = arith.constant 0 : index
      %14 = vector.load %arg8[%c0_11, %c0_12] : memref<16x32xf32, #tpu.memory_space<vmem>>, vector<16x32xf32>
      tpu.vector_store %arg8[%c0_11, %c0_12], %13 {strides = array<i32>} : memref<16x32xf32, #tpu.memory_space<vmem>>, vector<16x32xf32>,
    } else {
    }
    %c0 = arith.constant 0 : index
    %c0_1 = arith.constant 0 : index
    %3 = vector.load %arg8[%c0, %c0_1] : memref<16x32xf32, #tpu.memory_space<vmem>>, vector<16x32xf32>
    %c0_2 = arith.constant 0 : index
    %c0_3 = arith.constant 0 : index
    %4 = vector.load %arg3[%c0_2, %c0_3] : memref<16x128xf32, #tpu.memory_space<vmem>>, vector<16x128xf32>
    %5 = arith.truncf %4 : vector<16x128xf32> to vector<16x128xbf16>
    %c0_4 = arith.constant 0 : index
    %c0_5 = arith.constant 0 : index
    %6 = vector.load %arg4[%c0_4, %c0_5] : memref<128x32xbf16, #tpu.memory_space<vmem>>, vector<128x32xbf16>
    %cst = arith.constant dense<0.000000e+00> : vector<16x32xf32>
    %7 = tpu.matmul %5, %6, %cst {dimension_numbers = #tpu.dot_dimension_numbers<[1], [0], [0], [1], [0, 0, 1, 1], [], []>} : vector<16x128xbf16>, vector<128x32xbf16>, vector<16x32xf32> -> vector<16x32xf32>
    %8 = arith.addf %3, %7 : vector<16x32xf32>
    %c0_6 = arith.constant 0 : index
    %c0_7 = arith.constant 0 : index
    %9 = vector.load %arg8[%c0_6, %c0_7] : memref<16x32xf32, #tpu.memory_space<vmem>>, vector<16x32xf32>
    tpu.vector_store %arg8[%c0_6, %c0_7], %8 {strides = array<i32>} : memref<16x32xf32, #tpu.memory_space<vmem>>, vector<16x32xf32>,
    %c0_i32_8 = arith.constant 0 : i32
    %10 = arith.cmpi eq, %arg2, %c0_i32_8 : i32
    %11 = arith.extui %10 : i1 to i32
    %c0_i32_9 = arith.constant 0 : i32
    %12 = arith.cmpi ne, %11, %c0_i32_9 : i32
    scf.if %12 {
      %c0_10 = arith.constant 0 : index
      %c0_11 = arith.constant 0 : index
      %13 = vector.load %arg8[%c0_10, %c0_11] : memref<16x32xf32, #tpu.memory_space<vmem>>, vector<16x32xf32>
      %c0_12 = arith.constant 0 : index
      %c0_13 = arith.constant 0 : index
      %14 = vector.load %arg5[%c0_12, %c0_13] : memref<1x32xf32, #tpu.memory_space<vmem>>, vector<1x32xf32>
      %15 = vector.broadcast %14 : vector<1x32xf32> to vector<16x32xf32>
      %16 = arith.addf %13, %15 : vector<16x32xf32>
      %c0_14 = arith.constant 0 : index
      %c0_15 = arith.constant 0 : index
      %17 = vector.load %arg6[%c0_14, %c0_15] : memref<16x32xf32, #tpu.memory_space<vmem>>, vector<16x32xf32>
      %18 = arith.addf %16, %17 : vector<16x32xf32>
      %c0_16 = arith.constant 0 : index
      %c0_17 = arith.constant 0 : index
      %19 = vector.load %arg7[%c0_16, %c0_17] : memref<16x32xf32, #tpu.memory_space<vmem>>, vector<16x32xf32>
      tpu.vector_store %arg7[%c0_16, %c0_17], %18 {strides = array<i32>} : memref<16x32xf32, #tpu.memory_space<vmem>>, vector<16x32xf32>,
    } else {
    }
    return
  }
  func.func @transform_0(%arg0: i32, %arg1: i32, %arg2: i32) -> (i32, i32) {
    %c0_i32 = arith.constant 0 : i32
    return %arg0, %arg2 : i32, i32
  }
  func.func @transform_1(%arg0: i32, %arg1: i32, %arg2: i32) -> (i32, i32) {
    %c0_i32 = arith.constant 0 : i32
    return %arg2, %arg1 : i32, i32
  }
  func.func @transform_2(%arg0: i32, %arg1: i32, %arg2: i32) -> (i32, i32) {
    %c0_i32 = arith.constant 0 : i32
    %c0_i32_0 = arith.constant 0 : i32
    return %c0_i32, %arg1 : i32, i32
  }
  func.func @transform_3(%arg0: i32, %arg1: i32, %arg2: i32) -> (i32, i32) {
    %c0_i32 = arith.constant 0 : i32
    return %arg0, %arg1 : i32, i32
  }
  func.func @transform_4(%arg0: i32, %arg1: i32, %arg2: i32) -> (i32, i32) {
    %c0_i32 = arith.constant 0 : i32
    return %arg0, %arg1 : i32, i32
  }
}

module attributes {stable_mosaic.version = 11 : i64} {
  func.func @_linear_kernel(%arg0: i32, %arg1: i32, %arg2: i32, %arg3: memref<16x128xf32, #tpu.memory_space<vmem>>, %arg4: memref<128x32xbf16, #tpu.memory_space<vmem>>, %arg5: memref<1x32xf32, #tpu.memory_space<vmem>>, %arg6: memref<16x32xf32, #tpu.memory_space<vmem>>, %arg7: memref<16x32xf32, #tpu.memory_space<vmem>>, %arg8: memref<16x32xf32, #tpu.memory_space<vmem>>) attributes {dimension_semantics = [#tpu.dimension_semantics<parallel>, #tpu.dimension_semantics<parallel>, #tpu.dimension_semantics<arbitrary>], iteration_bounds = array<i64: 1, 1, 1>, scalar_prefetch = 0 : i64, scratch_operands = 1 : i64, tpu.core_type = #tpu.core_type<tc>, window_params = [{transform_indices = @transform_0, window_bounds = array<i64: 16, 128>}, {transform_indices = @transform_1, window_bounds = array<i64: 128, 32>}, {transform_indices = @transform_2, window_bounds = array<i64: 1, 32>}, {transform_indices = @transform_3, window_bounds = array<i64: 16, 32>}, {transform_indices = @transform_4, window_bounds = array<i64: 16, 32>}]} {
    %c0_i32 = arith.constant 0 : i32
    %0 = arith.cmpi eq, %arg2, %c0_i32 : i32
    %1 = arith.extui %0 : i1 to i32
    %c0_i32_0 = arith.constant 0 : i32
    %2 = arith.cmpi ne, %1, %c0_i32_0 : i32
    scf.if %2 {
      %cst_10 = arith.constant 0.000000e+00 : f32
      %13 = vector.broadcast %cst_10 : f32 to vector<16x32xf32>
      %c0_11 = arith.constant 0 : index
      %c0_12 = arith.constant 0 : index
      %14 = vector.load %arg8[%c0_11, %c0_12] : memref<16x32xf32, #tpu.memory_space<vmem>>, vector<16x32xf32>
      tpu.vector_store %arg8[%c0_11, %c0_12], %13 {strides = array<i32>} : memref<16x32xf32, #tpu.memory_space<vmem>>, vector<16x32xf32>,
    } else {
    }
    %c0 = arith.constant 0 : index
    %c0_1 = arith.constant 0 : index
    %3 = vector.load %arg8[%c0, %c0_1] : memref<16x32xf32, #tpu.memory_space<vmem>>, vector<16x32xf32>
    %c0_2 = arith.constant 0 : index
    %c0_3 = arith.constant 0 : index
    %4 = vector.load %arg3[%c0_2, %c0_3] : memref<16x128xf32, #tpu.memory_space<vmem>>, vector<16x128xf32>
    %5 = arith.truncf %4 : vector<16x128xf32> to vector<16x128xbf16>
    %c0_4 = arith.constant 0 : index
    %c0_5 = arith.constant 0 : index
    %6 = vector.load %arg4[%c0_4, %c0_5] : memref<128x32xbf16, #tpu.memory_space<vmem>>, vector<128x32xbf16>
    %cst = arith.constant dense<0.000000e+00> : vector<16x32xf32>
    %7 = tpu.matmul %5, %6, %cst {dimension_numbers = #tpu.dot_dimension_numbers<[1], [0], [0], [1], [0, 0, 1, 1], [], []>} : vector<16x128xbf16>, vector<128x32xbf16>, vector<16x32xf32> -> vector<16x32xf32>
    %8 = arith.addf %3, %7 : vector<16x32xf32>
    %c0_6 = arith.constant 0 : index
    %c0_7 = arith.constant 0 : index
    %9 = vector.load %arg8[%c0_6, %c0_7] : memref<16x32xf32, #tpu.memory_space<vmem>>, vector<16x32xf32>
    tpu.vector_store %arg8[%c0_6, %c0_7], %8 {strides = array<i32>} : memref<16x32xf32, #tpu.memory_space<vmem>>, vector<16x32xf32>,
    %c0_i32_8 = arith.constant 0 : i32
    %10 = arith.cmpi eq, %arg2, %c0_i32_8 : i32
    %11 = arith.extui %10 : i1 to i32
    %c0_i32_9 = arith.constant 0 : i32
    %12 = arith.cmpi ne, %11, %c0_i32_9 : i32
    scf.if %12 {
      %c0_10 = arith.constant 0 : index
      %c0_11 = arith.constant 0 : index
      %13 = vector.load %arg8[%c0_10, %c0_11] : memref<16x32xf32, #tpu.memory_space<vmem>>, vector<16x32xf32>
      %c0_12 = arith.constant 0 : index
      %c0_13 = arith.constant 0 : index
      %14 = vector.load %arg5[%c0_12, %c0_13] : memref<1x32xf32, #tpu.memory_space<vmem>>, vector<1x32xf32>
      %15 = vector.broadcast %14 : vector<1x32xf32> to vector<16x32xf32>
      %16 = arith.addf %13, %15 : vector<16x32xf32>
      %c0_14 = arith.constant 0 : index
      %c0_15 = arith.constant 0 : index
      %17 = vector.load %arg6[%c0_14, %c0_15] : memref<16x32xf32, #tpu.memory_space<vmem>>, vector<16x32xf32>
      %18 = arith.addf %16, %17 : vector<16x32xf32>
      %c0_16 = arith.constant 0 : index
      %c0_17 = arith.constant 0 : index
      %19 = vector.load %arg7[%c0_16, %c0_17] : memref<16x32xf32, #tpu.memory_space<vmem>>, vector<16x32xf32>
      tpu.vector_store %arg7[%c0_16, %c0_17], %18 {strides = array<i32>} : memref<16x32xf32, #tpu.memory_space<vmem>>, vector<16x32xf32>,
    } else {
    }
    return
  }
  func.func @transform_0(%arg0: i32, %arg1: i32, %arg2: i32) -> (i32, i32) {
    %c0_i32 = arith.constant 0 : i32
    return %arg0, %arg2 : i32, i32
  }
  func.func @transform_1(%arg0: i32, %arg1: i32, %arg2: i32) -> (i32, i32) {
    %c0_i32 = arith.constant 0 : i32
    return %arg2, %arg1 : i32, i32
  }
  func.func @transform_2(%arg0: i32, %arg1: i32, %arg2: i32) -> (i32, i32) {
    %c0_i32 = arith.constant 0 : i32
    %c0_i32_0 = arith.constant 0 : i32
    return %c0_i32, %arg1 : i32, i32
  }
  func.func @transform_3(%arg0: i32, %arg1: i32, %arg2: i32) -> (i32, i32) {
    %c0_i32 = arith.constant 0 : i32
    return %arg0, %arg1 : i32, i32
  }
  func.func @transform_4(%arg0: i32, %arg1: i32, %arg2: i32) -> (i32, i32) {
    %c0_i32 = arith.constant 0 : i32
    return %arg0, %arg1 : i32, i32
  }
}

</mosaic_0001>

<bundles_post_ra>
// kernel: mamba_transformer_block.17
= control target key start
LH: loop header
LB: loop body
LE: loop exit
PB: predicated region body
PF: predicated region fallthrough
CT: control target
= control target key end

     0   :  { %vm16_vm0 = vcmask 261120   ;;  %s118_s0 = inlined_call_operand.vmem [shape: f32[16,32], index: 0, kind: input, shape index: {}]   ;;  %s119_s1 = inlined_call_operand.vmem [shape: f32[1,32], index: 1, kind: input, shape index: {}]   ;;  %s120_s2 = inlined_call_operand.vmem [shape: f32[1,32], index: 2, kind: input, shape index: {}]   ;;  %s121_s3 = inlined_call_operand.vmem [shape: f32[16,32], index: 3, kind: output, shape index: {}]  }
   0x1   :  { %v14_v0 = vld [vmem:[%s118_s0] sm:$0xff]  ;;  %v15_v1 = vld [vmem:[%s118_s0 + $0x8] sm:$0xff] }
   0x2   :  { %v17_v2 = vsel %vm16_vm0, %v14_v0, 0.0  ;;  %v20_v3 = vsel %vm16_vm0, %v15_v1, 0.0  ;;  %v68_v21 = vld [vmem:[%s119_s1] ss:$0 sm:$0xff] }
   0x3   :  { %18 = vadd.xlane.f32.xlu0 %v17_v2  ;;  %v69_v23 = vld [vmem:[%s120_s2] ss:$0 sm:$0xff] }
   0x7   :  { %21 = vadd.xlane.f32.xlu0 %v20_v3 }
  0x90   :  { %v19_v4 = vpop.xlane.xlu0 %18 }
  0x91   :  { %v24_v5 = vmul.f32 0.03125, %v19_v4 }
  0x93   :  { %v26_v6 = vsub.f32 %v14_v0, %v24_v5 }
  0x94   :  { %v22_v7 = vpop.xlane.xlu0 %21 }
  0x95   :  { %v25_v8 = vmul.f32 0.03125, %v22_v7  ;;  %v28_v9 = vmul.f32 %v26_v6, %v26_v6 }
  0x97   :  { %v27_v10 = vsub.f32 %v15_v1, %v25_v8  ;;  %v30_v11 = vsel %vm16_vm0, %v28_v9, 0.0 }
  0x98   :  { %31 = vadd.xlane.f32.xlu1 %v30_v11 }
  0x99   :  { %v29_v12 = vmul.f32 %v27_v10, %v27_v10 }
  0x9b   :  { %v33_v13 = vsel %vm16_vm0, %v29_v12, 0.0 }
  0x9c   :  { %34 = vadd.xlane.f32.xlu1 %v33_v13 }
 0x125   :  { %v32_v14 = vpop.xlane.xlu1 %31 }
 0x126   :  { %v36_v15 = vmul.f32 0.03125, %v32_v14 }
 0x128   :  { %v38_v16 = vadd.f32 1e-05, %v36_v15 }
 0x129   :  { %v35_v17 = vpop.xlane.xlu1 %34 }
 0x12a   :  { %70 = vrsqrt.f32 %v38_v16  ;;  %v37_v18 = vmul.f32 0.03125, %v35_v17 }
 0x12c   :  { %v39_v19 = vadd.f32 1e-05, %v37_v18 }
 0x12e   :  { %72 = vrsqrt.f32 %v39_v19 }
 0x134   :  { %v71_v20 = vpop.eup %70 }
 0x135   :  { %v42_v22 = vmul.f32 %v71_v20, %v26_v6 }
 0x137   :  { %v51_v24 = vmul.f32 %v68_v21, %v42_v22 }
 0x138   :  { %v73_v25 = vpop.eup %72 }
 0x139   :  { %v60_v26 = vadd.f32 %v69_v23, %v51_v24  ;;  %v43_v27 = vmul.f32 %v73_v25, %v27_v10 }
 0x13b   :  { %62 = vst.msk [vmem:[%s121_s3] sm:$0xff] %vm16_vm0, %v60_v26  ;;  %v52_v28 = vmul.f32 %v68_v21, %v43_v27 }
 0x13d   :  { %v61_v29 = vadd.f32 %v69_v23, %v52_v28 }
 0x13f   :  { %63 = vst.msk [vmem:[%s121_s3 + $0x8] sm:$0xff] %vm16_vm0, %v61_v29 }

// kernel: mamba_transformer_block.18
= control target key start
LH: loop header
LB: loop body
LE: loop exit
PB: predicated region body
PF: predicated region fallthrough
CT: control target
= control target key end

     0   :  { %v130_v0 = vmov 0.0   ;;  %vm131_vm0 = vmmov 0   ;;  %vm42_vm1 = vcmask 261120   ;;  %s173_s1 = inlined_call_operand.vmem [shape: bf16[32,128], index: 1, kind: input, shape index: {}]   ;;  %s174_s0 = inlined_call_operand.vmem [shape: f32[16,32], index: 0, kind: input, shape index: {}]   ;;  %s175_s2 = inlined_call_operand.vmem [shape: f32[1,128], index: 2, kind: input, shape index: {}]   ;;  %s176_s3 = inlined_call_operand.vmem [shape: f32[16,128], index: 3, kind: output, shape index: {}]  }
   0x1   :  { %118 = vmatprep.subr.bf16.mxu0 %v130_v0  ;;  %v128_v1 = vld [vmem:[%s173_s1] sm:$0xff]   ;;  %122 = vmatprep.mubr.msk.bf16.mxu0 %vm131_vm0, %v130_v0  ;;  %v129_v2 = vld [vmem:[%s173_s1 + $0x8] sm:$0xff]  }
   0x2   :  { %119 = vmatpush3.bf16.msra.mxu0 %v128_v1  ;;  %v23_v3 = vld [vmem:[%s174_s0] sm:$0xff]  ;;  %v24_v4 = vld [vmem:[%s174_s0 + $0x8] sm:$0xff] }
   0x3   :  { %120 = vmatprep.subr.bf16.mxu0 %v130_v0  ;;  %v25_v5 = vpack.c.bf16 %v24_v4, %v23_v3  ;;  %v114_v6 = vld [vmem:[%s175_s2] ss:$0 sm:$0xff] }
   0x6   :  { %121 = vmatpush3.bf16.msra.mxu0 %v129_v2 }
   0x9   :  { %123 = vmatmul.mubr.msk.bf16.vlgmr.msra.gmra.mrb[0].mxu0 %vm42_vm1, %v25_v5 }
  0xdc   :  { %v80_v7 = vpop.f32.mrb[0].mxu0 }
  0xdd   :  { %v103_v8 = vadd.f32 %v114_v6, %v80_v7  ;;  %v124_v9 = vpop.f32.mrb[1].mxu0 }
  0xde   :  { %v83_v10 = vpop.f32.mrb[2].mxu0 }
  0xdf   :  { %105 = vst [vmem:[%s176_s3] sm:$0xff] %v103_v8  ;;  %v104_v11 = vadd.f32 %v114_v6, %v83_v10  ;;  %v125_v12 = vpop.f32.mrb[3].mxu0 }
  0xe1   :  { %106 = vst [vmem:[%s176_s3 + $0x8] sm:$0xff] %v104_v11 }

// kernel: mamba_transformer_block.19
= control target key start
LH: loop header
LB: loop body
LE: loop exit
PB: predicated region body
PF: predicated region fallthrough
CT: control target
= control target key end

     0   :  { %s347_s12 = smov 0   ;;  %s387_s0 = inlined_call_operand.vmem [shape: f32[2,8,64], index: 0, kind: input, shape index: {}]   ;;  %s388_s1 = inlined_call_operand.vmem [shape: f32[4,64], index: 1, kind: input, shape index: {}]   ;;  %s389_s2 = inlined_call_operand.vmem [shape: f32[1,64], index: 2, kind: input, shape index: {}]   ;;  %s390_s3 = inlined_call_operand.vmem [shape: f32[2,8,64], index: 3, kind: output, shape index: {}]  }
   0x1 LB: > { %s293_s13 = sadd.s32 4294967295, %s325_s12   ;;  %p297_p0 = scmp.ge.s32.totalorder %s325_s12, 1  ;;  %s325_s12 = sphi %s347_s12, %s13_s12  }
   0x2   : > { %p136_p1 = scmp.lt.s32.totalorder %s325_s12, 3 }
   0x4   : > { %p137_p2 = pnand %p297_p0, %p136_p1 }
   0x5   : > { %p158_p3 = scmp.lt.s32.totalorder (!%p137_p2), %s293_s13, 1  ;;  %v302_v0 = vld [vmem:[%s388_s1 + $0x1] ss:$0 sm:$0xff] (!%p137_p2)  ;;  %vm170_vm0 = vcmask (!%p137_p2), 1042432   ;;  %v303_v2 = vld [vmem:[%s388_s1 + $0x2] ss:$0 sm:$0xff] (!%p137_p2) }
   0x6   : > { %140 = sbr.rel (%p137_p2) target bundleno = 62 (0x3e), region = 32  ;;  %v304_v3 = vld [vmem:[%s388_s1 + $0x3] ss:$0 sm:$0xff] (!%p137_p2)  ;;  %v301_v5 = vld [vmem:[%s388_s1] ss:$0 sm:$0xff] (!%p137_p2)  ;;  %vm196_vm1 = vcmask (!%p137_p2), 1046528  }
   0x7   : > { %v300_v7 = vld [vmem:[%s389_s2] ss:$0 sm:$0xff] (!%p137_p2)  ;;  %vm211_vm2 = vcmask (!%p137_p2), 1045504   ;;  %vm226_vm3 = vcmask (!%p137_p2), 1044480   ;;  %vm238_vm4 = vcmask (!%p137_p2), 523264  }
   0xd   : > { %s392_s13 = smov (!%p158_p3, %s293_s13), 1 }
   0xe   : > { %s298_s14 = sshll.u32 %s392_s13, 3 }
   0xf   : > { %s161_s17 = scalar_lea.vmem %s387_s0, %s298_s14  ;;  %s165_s30 = scalar_lea.vmem %s390_s3, %s298_s14 }
  0x10   : > { %v166_v1 = vld [vmem:[%s161_s17] sm:$0xff] }
  0x11   : > { %v168_v4 = vrot.slane %v166_v1, 5 }
  0x13   : > { %v171_v6 = vsel %vm170_vm0, 0.0, %v168_v4  ;;  %v193_v8 = vmul.f32 %v302_v0, %v168_v4  ;;  %v208_v9 = vmul.f32 %v303_v2, %v168_v4  ;;  %v223_v10 = vmul.f32 %v304_v3, %v168_v4 }
  0x14   : > { %v185_v11 = vmul.f32 %v301_v5, %v171_v6  ;;  %v192_v12 = vmul.f32 %v302_v0, %v171_v6  ;;  %v207_v13 = vmul.f32 %v303_v2, %v171_v6  ;;  %v222_v14 = vmul.f32 %v304_v3, %v171_v6 }
  0x15   : > { %v198_v15 = vrot.slane %v193_v8, 1  ;;  %v213_v16 = vrot.slane %v208_v9, 2  ;;  %v228_v17 = vrot.slane %v223_v10, 3 }
  0x16   : > { %v186_v18 = vadd.f32 %v300_v7, %v185_v11  ;;  %v197_v19 = vrot.slane %v192_v12, 1  ;;  %v212_v20 = vrot.slane %v207_v13, 2  ;;  %v227_v21 = vrot.slane %v222_v14, 3 }
  0x18   : > { %v199_v22 = vsel %vm196_vm1, %v197_v19, %v198_v15  ;;  %v214_v23 = vsel %vm211_vm2, %v212_v20, %v213_v16  ;;  %v229_v25 = vsel %vm226_vm3, %v227_v21, %v228_v17 }
  0x19   : > { %v201_v24 = vadd.f32 %v199_v22, %v186_v18 }
  0x1b   : > { %v216_v26 = vadd.f32 %v214_v23, %v201_v24 }
  0x1d   : > { %v231_v27 = vadd.f32 %v229_v25, %v216_v26 }
  0x1f   : > { %v232_v28 = vsub.f32 0.0, %v231_v27 }
  0x21   : > { %v233_v29 = vmul.f32 1.442695, %v232_v28 }
  0x23   : > { %315 = vpow2.f32 %v233_v29 }
  0x2d   : > { %v316_v30 = vpop.eup %315 }
  0x2e   : > { %v235_v31 = vadd.f32 1.0, %v316_v30 }
  0x30   : > { %317 = vrcp.f32 %v235_v31 }
  0x3a   : > { %v318_v32 = vpop.eup %317 }
  0x3b   : > { %v237_v33 = vmul.f32 %v318_v32, %v231_v27 }
  0x3d   : > { %239 = vst.msk [vmem:[%s165_s30] sm:$0xff] %vm238_vm4, %v237_v33 }
  0x3e PF: > { %s13_s12 = sadd.s32 1, %s325_s12  }
  0x3f   : > { %p10_p4 = scmp.ge.s32.totalorder %s13_s12, 4  }
  0x41   :  { %12 = sbr.rel (!%p10_p4) target bundleno = 1 (0x1), region = 62 }

// kernel: mamba_transformer_block.20
= control target key start
LH: loop header
LB: loop body
LE: loop exit
PB: predicated region body
PF: predicated region fallthrough
CT: control target
= control target key end

     0   :  { %vm19_vm0 = vcmask 277504   ;;  %v158_v0 = vmov 0.0   ;;  %vm159_vm1 = vmmov 0   ;;  %vm59_vm2 = vcmask 523264   ;;  %s213_s1 = inlined_call_operand.vmem [shape: bf16[64,34], index: 1, kind: input, shape index: {}]   ;;  %s214_s0 = inlined_call_operand.vmem [shape: f32[16,64], index: 0, kind: input, shape index: {}]   ;;  %s215_s2 = inlined_call_operand.vmem [shape: f32[1,34], index: 2, kind: input, shape index: {}]   ;;  %s216_s3 = inlined_call_operand.vmem [shape: f32[16,34], index: 3, kind: output, shape index: {}]  }
   0x1   :  { %140 = vmatprep.subr.bf16.mxu0 %v158_v0  ;;  %v154_v1 = vld [vmem:[%s213_s1] sm:$0xff]   ;;  %148 = vmatprep.mubr.msk.bf16.mxu0 %vm159_vm1, %v158_v0  ;;  %20 = vst.msk [vmem:[#allocation2] sm:$0xff] %vm19_vm0, %v158_v0  ;;  %21 = vst.msk [vmem:[#allocation2 + $0x8] sm:$0xff] %vm19_vm0, %v158_v0  ;;  %v155_v2 = vld [vmem:[%s213_s1 + $0x8] sm:$0xff]  }
   0x2   :  { %141 = vmatpush3.bf16.msra.mxu0 %v154_v1  ;;  %v156_v3 = vld [vmem:[%s213_s1 + $0x10] sm:$0xff]   ;;  %v157_v4 = vld [vmem:[%s213_s1 + $0x18] sm:$0xff]   ;;  %v24_v5 = vld [vmem:[%s214_s0] sm:$0xff] }
   0x3   :  { %142 = vmatprep.subr.bf16.mxu0 %v158_v0  ;;  %v25_v6 = vld [vmem:[%s214_s0 + $0x8] sm:$0xff]  ;;  %v134_v16 = vld [vmem:[%s215_s2] ss:$0 sm:$0xff] }
   0x4   :  { %v26_v7 = vpack.c.bf16 %v25_v6, %v24_v5 }
   0x6   :  { %143 = vmatpush3.bf16.msra.mxu0 %v155_v2 }
   0x7   :  { %144 = vmatprep.subr.bf16.mxu0 %v158_v0 }
   0x8   :  { %v22_v8 = vld [vmem:[#allocation2] sm:$0xff]  ;;  %v23_v10 = vld [vmem:[#allocation2 + $0x8] sm:$0xff] }
   0xa   :  { %145 = vmatpush3.bf16.msra.mxu0 %v156_v3 }
   0xb   :  { %146 = vmatprep.subr.bf16.mxu0 %v158_v0 }
   0xe   :  { %147 = vmatpush3.bf16.msra.mxu0 %v157_v4 }
  0x11   :  { %149 = vmatmul.mubr.msk.bf16.vlgmr.msra.gmra.mrb[0].mxu0 %vm59_vm2, %v26_v7 }
  0xe4   :  { %v97_v9 = vpop.f32.mrb[0].mxu0 }
  0xe5   :  { %v104_v11 = vadd.f32 %v97_v9, %v22_v8  ;;  %v150_v12 = vpop.f32.mrb[1].mxu0 }
  0xe6   :  { %v100_v13 = vpop.f32.mrb[2].mxu0 }
  0xe7   :  { %107 = vst.msk [vmem:[#allocation2] sm:$0xff] %vm19_vm0, %v104_v11  ;;  %v105_v14 = vadd.f32 %v100_v13, %v23_v10  ;;  %v151_v15 = vpop.f32.mrb[3].mxu0 }
  0xe9   :  { %108 = vst.msk [vmem:[#allocation2 + $0x8] sm:$0xff] %vm19_vm0, %v105_v14 }
  0xee   :  { %v112_v17 = vld [vmem:[#allocation2] sm:$0xff] }
  0xef   :  { %v121_v18 = vadd.f32 %v134_v16, %v112_v17 }
  0xf0   :  { %v113_v19 = vld [vmem:[#allocation2 + $0x8] sm:$0xff] }
  0xf1   :  { %123 = vst.msk [vmem:[%s216_s3] sm:$0xff] %vm19_vm0, %v121_v18  ;;  %v122_v20 = vadd.f32 %v134_v16, %v113_v19 }
  0xf3   :  { %124 = vst.msk [vmem:[%s216_s3 + $0x8] sm:$0xff] %vm19_vm0, %v122_v20 }

// kernel: mamba_transformer_block.21
= control target key start
LH: loop header
LB: loop body
LE: loop exit
PB: predicated region body
PF: predicated region fallthrough
CT: control target
= control target key end

     0   :  { %vm19_vm0 = vcmask 523264   ;;  %vm32_vm1 = vcmask 1040384   ;;  %v140_v0 = vmov 0.0   ;;  %vm141_vm2 = vmmov 0   ;;  %s186_s1 = inlined_call_operand.vmem [shape: bf16[2,64], index: 1, kind: input, shape index: {}]   ;;  %s187_s0 = inlined_call_operand.vmem [shape: f32[16,2], index: 0, kind: input, shape index: {}]   ;;  %s188_s2 = inlined_call_operand.vmem [shape: f32[1,64], index: 2, kind: input, shape index: {}]   ;;  %s189_s3 = inlined_call_operand.vmem [shape: f32[16,64], index: 3, kind: output, shape index: {}]  }
   0x1   :  { %20 = vst.msk [vmem:[#allocation2] sm:$0xff] %vm19_vm0, %v140_v0  ;;  %21 = vst.msk [vmem:[#allocation2 + $0x8] sm:$0xff] %vm19_vm0, %v140_v0  ;;  %124 = vmatprep.subr.bf16.mxu0 %v140_v0  ;;  %v27_v1 = vld [vmem:[%s186_s1] sm:$0x1]  ;;  %126 = vmatprep.mubr.msk.bf16.mxu0 %vm141_vm2, %v140_v0  ;;  %v25_v3 = vld [vmem:[%s187_s0 + $0x8] sm:$0xff]  ;;  %vm28_vm3 = vcmask 15360  }
   0x2   :  { %v24_v2 = vld [vmem:[%s187_s0] sm:$0xff]  ;;  %v34_v4 = vsel %vm32_vm1, %v27_v1, 0 }
   0x3   :  { %v26_v5 = vpack.c.bf16 %v25_v3, %v24_v2  ;;  %125 = vmatpush3.bf16.msra.mxu0 %v34_v4  ;;  %v121_v14 = vld [vmem:[%s188_s2] ss:$0 sm:$0xff] }
   0x6   :  { %127 = vmatmul.mubr.msk.bf16.vlgmr.msra.gmra.mrb[0].mxu0 %vm28_vm3, %v26_v5 }
   0x8   :  { %v22_v6 = vld [vmem:[#allocation2] sm:$0xff]  ;;  %v23_v8 = vld [vmem:[#allocation2 + $0x8] sm:$0xff] }
  0xd9   :  { %v70_v7 = vpop.f32.mrb[0].mxu0 }
  0xda   :  { %v77_v9 = vadd.f32 %v70_v7, %v22_v6  ;;  %v128_v10 = vpop.f32.mrb[1].mxu0 }
  0xdb   :  { %v73_v11 = vpop.f32.mrb[2].mxu0 }
  0xdc   :  { %80 = vst.msk [vmem:[#allocation2] sm:$0xff] %vm19_vm0, %v77_v9  ;;  %v78_v12 = vadd.f32 %v73_v11, %v23_v8  ;;  %v129_v13 = vpop.f32.mrb[3].mxu0 }
  0xde   :  { %81 = vst.msk [vmem:[#allocation2 + $0x8] sm:$0xff] %vm19_vm0, %v78_v12 }
  0xe3   :  { %v85_v15 = vld [vmem:[#allocation2] sm:$0xff] }
  0xe4   :  { %v94_v16 = vadd.f32 %v121_v14, %v85_v15 }
  0xe5   :  { %v86_v17 = vld [vmem:[#allocation2 + $0x8] sm:$0xff] }
  0xe6   :  { %v98_v18 = vand.u32 2147483647, %v94_v16  ;;  %v95_v19 = vadd.f32 %v121_v14, %v86_v17  ;;  %v96_v30 = vmax.f32 %v94_v16, 0.0 }
  0xe8   :  { %v100_v20 = vsub.f32 0.0, %v98_v18  ;;  %v99_v21 = vand.u32 2147483647, %v95_v19  ;;  %v97_v34 = vmax.f32 %v95_v19, 0.0 }
  0xea   :  { %v102_v22 = vmul.f32 1.442695, %v100_v20  ;;  %v101_v23 = vsub.f32 0.0, %v99_v21 }
  0xec   :  { %132 = vpow2.f32 %v102_v22  ;;  %v104_v24 = vmul.f32 1.442695, %v101_v23 }
  0xee   :  { %134 = vpow2.f32 %v104_v24 }
  0xf6   :  { %v133_v25 = vpop.eup %132 }
  0xf7   :  { %v106_v26 = vadd.f32 1.0, %v133_v25 }
  0xf8   :  { %v135_v27 = vpop.eup %134 }
  0xf9   :  { %136 = vlog2.f32 %v106_v26  ;;  %v107_v28 = vadd.f32 1.0, %v135_v27 }
  0xfb   :  { %138 = vlog2.f32 %v107_v28 }
 0x103   :  { %v137_v29 = vpop.eup %136 }
 0x104   :  { %v109_v31 = vmul.f32 0.6931472, %v137_v29 }
 0x105   :  { %v139_v32 = vpop.eup %138 }
 0x106   :  { %v112_v33 = vadd.f32 %v109_v31, %v96_v30  ;;  %v111_v35 = vmul.f32 0.6931472, %v139_v32 }
 0x108   :  { %114 = vst.msk [vmem:[%s189_s3] sm:$0xff] %vm19_vm0, %v112_v33  ;;  %v113_v36 = vadd.f32 %v111_v35, %v97_v34 }
 0x10a   :  { %115 = vst.msk [vmem:[%s189_s3 + $0x8] sm:$0xff] %vm19_vm0, %v113_v36 }

// kernel: mamba_transformer_block.23
= control target key start
LH: loop header
LB: loop body
LE: loop exit
PB: predicated region body
PF: predicated region fallthrough
CT: control target
= control target key end

     0   :  { %vm22_vm0 = vcmask 261120   ;;  %v165_v0 = vmov 0.0   ;;  %vm166_vm1 = vmmov 0   ;;  %vm62_vm2 = vcmask 523264   ;;  %s231_s1 = inlined_call_operand.vmem [shape: bf16[64,32], index: 1, kind: input, shape index: {}]   ;;  %s232_s0 = inlined_call_operand.vmem [shape: f32[16,64], index: 0, kind: input, shape index: {}]   ;;  %s233_s2 = inlined_call_operand.vmem [shape: f32[1,32], index: 2, kind: input, shape index: {}]   ;;  %s234_s3 = inlined_call_operand.vmem [shape: f32[16,32], index: 3, kind: input, shape index: {}]   ;;  %s235_s4 = inlined_call_operand.vmem [shape: f32[16,32], index: 4, kind: output, shape index: {}]  }
   0x1   :  { %147 = vmatprep.subr.bf16.mxu0 %v165_v0  ;;  %v161_v1 = vld [vmem:[%s231_s1] sm:$0xff]   ;;  %155 = vmatprep.mubr.msk.bf16.mxu0 %vm166_vm1, %v165_v0  ;;  %23 = vst.msk [vmem:[#allocation2] sm:$0xff] %vm22_vm0, %v165_v0  ;;  %24 = vst.msk [vmem:[#allocation2 + $0x8] sm:$0xff] %vm22_vm0, %v165_v0  ;;  %v162_v2 = vld [vmem:[%s231_s1 + $0x8] sm:$0xff]  }
   0x2   :  { %148 = vmatpush3.bf16.msra.mxu0 %v161_v1  ;;  %v163_v3 = vld [vmem:[%s231_s1 + $0x10] sm:$0xff]   ;;  %v164_v4 = vld [vmem:[%s231_s1 + $0x18] sm:$0xff]   ;;  %v27_v5 = vld [vmem:[%s232_s0] sm:$0xff] }
   0x3   :  { %149 = vmatprep.subr.bf16.mxu0 %v165_v0  ;;  %v28_v6 = vld [vmem:[%s232_s0 + $0x8] sm:$0xff]  ;;  %v141_v16 = vld [vmem:[%s233_s2] ss:$0 sm:$0xff] }
   0x4   :  { %v29_v7 = vpack.c.bf16 %v28_v6, %v27_v5  ;;  %v126_v18 = vld [vmem:[%s234_s3] sm:$0xff]  ;;  %v127_v20 = vld [vmem:[%s234_s3 + $0x8] sm:$0xff] }
   0x6   :  { %150 = vmatpush3.bf16.msra.mxu0 %v162_v2 }
   0x7   :  { %151 = vmatprep.subr.bf16.mxu0 %v165_v0 }
   0x8   :  { %v25_v8 = vld [vmem:[#allocation2] sm:$0xff]  ;;  %v26_v10 = vld [vmem:[#allocation2 + $0x8] sm:$0xff] }
   0xa   :  { %152 = vmatpush3.bf16.msra.mxu0 %v163_v3 }
   0xb   :  { %153 = vmatprep.subr.bf16.mxu0 %v165_v0 }
   0xe   :  { %154 = vmatpush3.bf16.msra.mxu0 %v164_v4 }
  0x11   :  { %156 = vmatmul.mubr.msk.bf16.vlgmr.msra.gmra.mrb[0].mxu0 %vm62_vm2, %v29_v7 }
  0xe4   :  { %v100_v9 = vpop.f32.mrb[0].mxu0 }
  0xe5   :  { %v107_v11 = vadd.f32 %v100_v9, %v25_v8  ;;  %v157_v12 = vpop.f32.mrb[1].mxu0 }
  0xe6   :  { %v103_v13 = vpop.f32.mrb[2].mxu0 }
  0xe7   :  { %110 = vst.msk [vmem:[#allocation2] sm:$0xff] %vm22_vm0, %v107_v11  ;;  %v108_v14 = vadd.f32 %v103_v13, %v26_v10  ;;  %v158_v15 = vpop.f32.mrb[3].mxu0 }
  0xe9   :  { %111 = vst.msk [vmem:[#allocation2 + $0x8] sm:$0xff] %vm22_vm0, %v108_v14 }
  0xee   :  { %v115_v17 = vld [vmem:[#allocation2] sm:$0xff] }
  0xef   :  { %v124_v19 = vadd.f32 %v141_v16, %v115_v17 }
  0xf0   :  { %v116_v21 = vld [vmem:[#allocation2 + $0x8] sm:$0xff] }
  0xf1   :  { %v128_v22 = vadd.f32 %v126_v18, %v124_v19  ;;  %v125_v23 = vadd.f32 %v141_v16, %v116_v21 }
  0xf3   :  { %130 = vst.msk [vmem:[%s235_s4] sm:$0xff] %vm22_vm0, %v128_v22  ;;  %v129_v24 = vadd.f32 %v127_v20, %v125_v23 }
  0xf5   :  { %131 = vst.msk [vmem:[%s235_s4 + $0x8] sm:$0xff] %vm22_vm0, %v129_v24 }

// kernel: mamba_transformer_block.25
= control target key start
LH: loop header
LB: loop body
LE: loop exit
PB: predicated region body
PF: predicated region fallthrough
CT: control target
= control target key end

     0   :  { %vm19_vm0 = vcmask 392192   ;;  %v132_v0 = vmov 0.0   ;;  %vm133_vm1 = vmmov 0   ;;  %vm43_vm2 = vcmask 261120   ;;  %s181_s1 = inlined_call_operand.vmem [shape: bf16[32,48], index: 1, kind: input, shape index: {}]   ;;  %s182_s0 = inlined_call_operand.vmem [shape: f32[16,32], index: 0, kind: input, shape index: {}]   ;;  %s183_s2 = inlined_call_operand.vmem [shape: f32[1,48], index: 2, kind: input, shape index: {}]   ;;  %s184_s3 = inlined_call_operand.vmem [shape: f32[16,48], index: 3, kind: output, shape index: {}]  }
   0x1   :  { %120 = vmatprep.subr.bf16.mxu0 %v132_v0  ;;  %v130_v1 = vld [vmem:[%s181_s1] sm:$0xff]   ;;  %124 = vmatprep.mubr.msk.bf16.mxu0 %vm133_vm1, %v132_v0  ;;  %20 = vst.msk [vmem:[#allocation2] sm:$0xff] %vm19_vm0, %v132_v0  ;;  %21 = vst.msk [vmem:[#allocation2 + $0x8] sm:$0xff] %vm19_vm0, %v132_v0  ;;  %v131_v2 = vld [vmem:[%s181_s1 + $0x8] sm:$0xff]  }
   0x2   :  { %121 = vmatpush3.bf16.msra.mxu0 %v130_v1  ;;  %v24_v3 = vld [vmem:[%s182_s0] sm:$0xff]  ;;  %v25_v4 = vld [vmem:[%s182_s0 + $0x8] sm:$0xff] }
   0x3   :  { %122 = vmatprep.subr.bf16.mxu0 %v132_v0  ;;  %v26_v5 = vpack.c.bf16 %v25_v4, %v24_v3  ;;  %v116_v14 = vld [vmem:[%s183_s2] ss:$0 sm:$0xff] }
   0x6   :  { %123 = vmatpush3.bf16.msra.mxu0 %v131_v2 }
   0x8   :  { %v22_v6 = vld [vmem:[#allocation2] sm:$0xff]  ;;  %v23_v8 = vld [vmem:[#allocation2 + $0x8] sm:$0xff] }
   0x9   :  { %125 = vmatmul.mubr.msk.bf16.vlgmr.msra.gmra.mrb[0].mxu0 %vm43_vm2, %v26_v5 }
  0xdc   :  { %v81_v7 = vpop.f32.mrb[0].mxu0 }
  0xdd   :  { %v88_v9 = vadd.f32 %v81_v7, %v22_v6  ;;  %v126_v10 = vpop.f32.mrb[1].mxu0 }
  0xde   :  { %v84_v11 = vpop.f32.mrb[2].mxu0 }
  0xdf   :  { %91 = vst.msk [vmem:[#allocation2] sm:$0xff] %vm19_vm0, %v88_v9  ;;  %v89_v12 = vadd.f32 %v84_v11, %v23_v8  ;;  %v127_v13 = vpop.f32.mrb[3].mxu0 }
  0xe1   :  { %92 = vst.msk [vmem:[#allocation2 + $0x8] sm:$0xff] %vm19_vm0, %v89_v12 }
  0xe6   :  { %v96_v15 = vld [vmem:[#allocation2] sm:$0xff] }
  0xe7   :  { %v105_v16 = vadd.f32 %v116_v14, %v96_v15 }
  0xe8   :  { %v97_v17 = vld [vmem:[#allocation2 + $0x8] sm:$0xff] }
  0xe9   :  { %107 = vst.msk [vmem:[%s184_s3] sm:$0xff] %vm19_vm0, %v105_v16  ;;  %v106_v18 = vadd.f32 %v116_v14, %v97_v17 }
  0xeb   :  { %108 = vst.msk [vmem:[%s184_s3 + $0x8] sm:$0xff] %vm19_vm0, %v106_v18 }

// kernel: mamba_transformer_block.27
= control target key start
LH: loop header
LB: loop body
LE: loop exit
PB: predicated region body
PF: predicated region fallthrough
CT: control target
= control target key end

     0   :  { %vm19_vm0 = vcmask 261120   ;;  %v131_v0 = vmov 0.0   ;;  %vm132_vm1 = vmmov 0   ;;  %s181_s1 = inlined_call_operand.vmem [shape: bf16[32,32], index: 1, kind: input, shape index: {}]   ;;  %s182_s0 = inlined_call_operand.vmem [shape: f32[16,32], index: 0, kind: input, shape index: {}]   ;;  %s183_s2 = inlined_call_operand.vmem [shape: f32[1,32], index: 2, kind: input, shape index: {}]   ;;  %s184_s3 = inlined_call_operand.vmem [shape: f32[16,32], index: 3, kind: output, shape index: {}]  }
   0x1   :  { %119 = vmatprep.subr.bf16.mxu0 %v131_v0  ;;  %v129_v1 = vld [vmem:[%s181_s1] sm:$0xff]   ;;  %123 = vmatprep.mubr.msk.bf16.mxu0 %vm132_vm1, %v131_v0  ;;  %20 = vst.msk [vmem:[#allocation2] sm:$0xff] %vm19_vm0, %v131_v0  ;;  %21 = vst.msk [vmem:[#allocation2 + $0x8] sm:$0xff] %vm19_vm0, %v131_v0  ;;  %v130_v2 = vld [vmem:[%s181_s1 + $0x8] sm:$0xff]  }
   0x2   :  { %120 = vmatpush3.bf16.msra.mxu0 %v129_v1  ;;  %v24_v3 = vld [vmem:[%s182_s0] sm:$0xff]  ;;  %v25_v4 = vld [vmem:[%s182_s0 + $0x8] sm:$0xff] }
   0x3   :  { %121 = vmatprep.subr.bf16.mxu0 %v131_v0  ;;  %v26_v5 = vpack.c.bf16 %v25_v4, %v24_v3  ;;  %v115_v14 = vld [vmem:[%s183_s2] ss:$0 sm:$0xff] }
   0x6   :  { %122 = vmatpush3.bf16.msra.mxu0 %v130_v2 }
   0x8   :  { %v22_v6 = vld [vmem:[#allocation2] sm:$0xff]  ;;  %v23_v8 = vld [vmem:[#allocation2 + $0x8] sm:$0xff] }
   0x9   :  { %124 = vmatmul.mubr.msk.bf16.vlgmr.msra.gmra.mrb[0].mxu0 %vm19_vm0, %v26_v5 }
  0xdc   :  { %v81_v7 = vpop.f32.mrb[0].mxu0 }
  0xdd   :  { %v88_v9 = vadd.f32 %v81_v7, %v22_v6  ;;  %v125_v10 = vpop.f32.mrb[1].mxu0 }
  0xde   :  { %v84_v11 = vpop.f32.mrb[2].mxu0 }
  0xdf   :  { %90 = vst.msk [vmem:[#allocation2] sm:$0xff] %vm19_vm0, %v88_v9  ;;  %v89_v12 = vadd.f32 %v84_v11, %v23_v8  ;;  %v126_v13 = vpop.f32.mrb[3].mxu0 }
  0xe1   :  { %91 = vst.msk [vmem:[#allocation2 + $0x8] sm:$0xff] %vm19_vm0, %v89_v12 }
  0xe6   :  { %v95_v15 = vld [vmem:[#allocation2] sm:$0xff] }
  0xe7   :  { %v104_v16 = vadd.f32 %v115_v14, %v95_v15 }
  0xe8   :  { %v96_v17 = vld [vmem:[#allocation2 + $0x8] sm:$0xff] }
  0xe9   :  { %106 = vst.msk [vmem:[%s184_s3] sm:$0xff] %vm19_vm0, %v104_v16  ;;  %v105_v18 = vadd.f32 %v115_v14, %v96_v17 }
  0xeb   :  { %107 = vst.msk [vmem:[%s184_s3 + $0x8] sm:$0xff] %vm19_vm0, %v105_v18 }

// kernel: mamba_transformer_block.22
= control target key start
LH: loop header
LB: loop body
LE: loop exit
PB: predicated region body
PF: predicated region fallthrough
CT: control target
= control target key end

     0   :  { %v51_v0 = vlaneseq  ;;  %vm30_vm0 = vcmask 523264   ;;  %v1738_v1 = vmov 1966171168   ;;  %v1739_v3 = vmov 0.0   ;;  %s2595_s3 = inlined_call_operand.vmem [shape: f32[8,2,16], index: 3, kind: input, shape index: {}]   ;;  %s2596_s4 = inlined_call_operand.vmem [shape: f32[8,2,16], index: 4, kind: input, shape index: {}]   ;;  %s2597_s1 = inlined_call_operand.vmem [shape: f32[8,2,64], index: 1, kind: input, shape index: {}]   ;;  %s2598_s0 = inlined_call_operand.vmem [shape: f32[8,2,64], index: 0, kind: input, shape index: {}]   ;;  %s2599_s5 = inlined_call_operand.vmem [shape: f32[1,64], index: 5, kind: input, shape index: {}]   ;;  %s2600_s2 = inlined_call_operand.vmem [shape: f32[16,64], index: 2, kind: input, shape index: {}]   ;;  %s2601_s6 = inlined_call_operand.vmem [shape: f32[8,2,64], index: 6, kind: input, shape index: {}]   ;;  %s2602_s7 = inlined_call_operand.vmem [shape: f32[8,2,64], index: 7, kind: output, shape index: {}]  }
   0x1   :  { %v49_v2 = vunpack.c.l.s4 %v1738_v1  ;;  %32 = vst.msk [vmem:[#allocation2 + $0x8] sm:$0xff] %vm30_vm0, %v1739_v3  ;;  %31 = vst.msk [vmem:[#allocation2] sm:$0xff] %vm30_vm0, %v1739_v3  ;;  %v44_v5 = vld [vmem:[%s2595_s3] sm:$0x3]  ;;  %v1636_v12 = vld [vmem:[%s2595_s3 + $0xe] sm:$0x3] }
   0x2   :  { %33 = vst.msk [vmem:[#allocation2 + $0x10] sm:$0xff] %vm30_vm0, %v1739_v3  ;;  %34 = vst.msk [vmem:[#allocation2 + $0x18] sm:$0xff] %vm30_vm0, %v1739_v3  ;;  %v52_v4 = vshrl.u32 %v51_v0, 7  ;;  %v45_v11 = vld [vmem:[%s2596_s4] sm:$0x3]  ;;  %vm233_vm1 = vcmask 1041409  }
   0x3   :  { %v50_v8 = vunpack.c.0.s8 %v49_v2  ;;  %v1601_v13 = vld [vmem:[%s2596_s4 + $0x2] sm:$0x3]  ;;  %v1607_v14 = vld [vmem:[%s2596_s4 + $0x4] sm:$0x3]  ;;  %v1613_v15 = vld [vmem:[%s2596_s4 + $0x6] sm:$0x3] }
   0x4   :  { %v1787_v6 = vsub.s32 0, %v52_v4  ;;  %v1789_v7 = vsub.s32 1, %v52_v4  ;;  %v1619_v16 = vld [vmem:[%s2596_s4 + $0x8] sm:$0x3]  ;;  %v1625_v17 = vld [vmem:[%s2596_s4 + $0xa] sm:$0x3] }
   0x5   :  { %v1814_v18 = vsub.s32 %v50_v8, %v52_v4  ;;  %v1631_v19 = vld [vmem:[%s2596_s4 + $0xc] sm:$0x3]  ;;  %v1637_v20 = vld [vmem:[%s2596_s4 + $0xe] sm:$0x3]  ;;  %v42_v25 = vld [vmem:[%s2597_s1] sm:$0x3] }
   0x6   :  { %v130_v9 = vrot.slane %v44_v5, %v1789_v7  ;;  %v119_v10 = vrot.slane %v44_v5, %v1787_v6  ;;  %v163_v21 = vrot.slane %v45_v11, %v1787_v6  ;;  %v1824_v22 = vrot.slane %v1636_v12, %v1789_v7  ;;  %v1850_v30 = vld [vmem:[%s2598_s0] sm:$0x3]  ;;  %v1874_v38 = vld [vmem:[%s2598_s0 + $0x2] sm:$0x3]  ;;  %v1604_v62 = vld [vmem:[%s2597_s1 + $0x4] sm:$0x3] }
   0x7   :  { %v1827_v23 = vrot.slane %v1636_v12, %v1787_v6  ;;  %v1830_v24 = vrot.slane %v1601_v13, %v1789_v7  ;;  %v1836_v26 = vrot.slane %v1607_v14, %v1789_v7  ;;  %v1839_v27 = vrot.slane %v1613_v15, %v1789_v7  ;;  %v1598_v42 = vld [vmem:[%s2597_s1 + $0x2] sm:$0x3]  ;;  %v1605_v0 = vld [vmem:[%s2598_s0 + $0x4] sm:$0x3]  ;;  %v1610_v1 = vld [vmem:[%s2597_s1 + $0x6] sm:$0x3] }
   0x8   :  { %132 = vbcast.lane.b32.xlu1 %v130_v9, 256  ;;  %121 = vbcast.lane.b32.xlu0 %v119_v10, 256  ;;  %v1842_v28 = vrot.slane %v1619_v16, %v1789_v7  ;;  %v1845_v29 = vrot.slane %v1625_v17, %v1789_v7  ;;  %v1853_v31 = vrot.slane %v1631_v19, %v1789_v7  ;;  %v1600_v47 = vld [vmem:[%s2595_s3 + $0x2] sm:$0x3]  ;;  %v1606_v4 = vld [vmem:[%s2595_s3 + $0x4] sm:$0x3] }
   0x9   :  { %v1856_v32 = vrot.slane %v1637_v20, %v1789_v7  ;;  %v1859_v33 = vrot.slane %v1601_v13, %v1787_v6  ;;  %v1862_v34 = vrot.slane %v1607_v14, %v1787_v6  ;;  %v1865_v35 = vrot.slane %v1613_v15, %v1787_v6  ;;  %v1616_v13 = vld [vmem:[%s2597_s1 + $0x8] sm:$0x3] }
   0xa   :  { %v1868_v36 = vrot.slane %v1619_v16, %v1787_v6  ;;  %v54_v37 = vrot.slane %v42_v25, %v1814_v18  ;;  %v92_v39 = vmul.f32 %v1850_v30, %v42_v25  ;;  %v1878_v40 = vrot.slane %v1625_v17, %v1787_v6 }
   0xb   :  { %v1881_v41 = vrot.slane %v1631_v19, %v1787_v6  ;;  %v1888_v45 = vrot.slane %v1637_v20, %v1787_v6  ;;  %v174_v46 = vrot.slane %v45_v11, %v1789_v7  ;;  %v293_v49 = vmul.f32 %v1874_v38, %v1598_v42  ;;  %v1611_v11 = vld [vmem:[%s2598_s0 + $0x6] sm:$0x3] }
   0xc   :  { %136 = vbcast.lane.b32.xlu1 %v130_v9, 264  ;;  %125 = vbcast.lane.b32.xlu0 %v119_v10, 264  ;;  %v55_v43 = vcombine.high %v54_v37, %v54_v37  ;;  %v62_v44 = vrot.slane %v54_v37, %v1814_v18  ;;  %v100_v48 = vrot.slane %v92_v39, %v1814_v18  ;;  %vm236_vm2 = vcmask 517120  }
   0xd   :  { %v1901_v52 = vrot.slane %v1598_v42, %v1814_v18  ;;  %v331_v55 = vrot.slane %v1600_v47, %v1789_v7  ;;  %v320_v56 = vrot.slane %v1600_v47, %v1787_v6  ;;  %v301_v61 = vrot.slane %v293_v49, %v1814_v18  ;;  %v1974_v47 = vld [vmem:[%s2599_s5] ss:$0 sm:$0xff] }
   0xe   :  { %v69_v50 = vrot.slane %v55_v43, %v1814_v18  ;;  %v1898_v51 = vrot.slane %v62_v44, %v1787_v6  ;;  %v101_v53 = vcombine.high %v100_v48, %v100_v48  ;;  %v108_v54 = vrot.slane %v100_v48, %v1814_v18 }
   0xf   :  { %v263_v58 = vrot.slane %v1901_v52, %v1814_v18  ;;  %v448_v3 = vrot.slane %v1604_v62, %v1814_v18  ;;  %v302_v5 = vcombine.high %v301_v61, %v301_v61  ;;  %v309_v8 = vrot.slane %v301_v61, %v1814_v18 }
  0x10   :  { %169 = vbcast.lane.b32.xlu1 %v163_v21, 264  ;;  %165 = vbcast.lane.b32.xlu0 %v163_v21, 256  ;;  %v1907_v57 = vrot.slane %v69_v50, %v1787_v6  ;;  %v115_v59 = vrot.slane %v101_v53, %v1814_v18  ;;  %v1913_v60 = vrot.slane %v108_v54, %v1787_v6  ;;  %v1617_v53 = vld [vmem:[%s2598_s0 + $0x8] sm:$0x3] }
  0x11   :  { %v1929_v2 = vrot.slane %v263_v58, %v1787_v6  ;;  %v456_v9 = vrot.slane %v448_v3, %v1814_v18  ;;  %v486_v10 = vmul.f32 %v1605_v0, %v1604_v62  ;;  %v1941_v12 = vrot.slane %v1610_v1, %v1814_v18 }
  0x12   :  { %v1920_v63 = vrot.slane %v115_v59, %v1787_v6  ;;  %v316_v14 = vrot.slane %v302_v5, %v1814_v18  ;;  %v1948_v15 = vrot.slane %v309_v8, %v1787_v6  ;;  %v524_v16 = vrot.slane %v1606_v4, %v1789_v7  ;;  %v1622_v59 = vld [vmem:[%s2597_s1 + $0xa] sm:$0x3] }
  0x13   :  { %v1952_v17 = vrot.slane %v456_v9, %v1787_v6  ;;  %v494_v19 = vrot.slane %v486_v10, %v1814_v18  ;;  %v649_v20 = vrot.slane %v1941_v12, %v1814_v18  ;;  %v679_v25 = vmul.f32 %v1611_v11, %v1610_v1 }
  0x14   :  { %180 = vbcast.lane.b32.xlu1 %v174_v46, 264  ;;  %176 = vbcast.lane.b32.xlu0 %v174_v46, 256  ;;  %v1958_v21 = vrot.slane %v316_v14, %v1787_v6  ;;  %v1961_v37 = vrot.slane %v1616_v13, %v1814_v18  ;;  %v513_v39 = vrot.slane %v1606_v4, %v1787_v6  ;;  %v1612_v46 = vld [vmem:[%s2595_s3 + $0x6] sm:$0x3] }
  0x15   :  { %v495_v42 = vcombine.high %v494_v19, %v494_v19  ;;  %v502_v43 = vrot.slane %v494_v19, %v1814_v18  ;;  %v1966_v44 = vrot.slane %v649_v20, %v1787_v6  ;;  %v256_v48 = vcombine.high %v1901_v52, %v1901_v52 }
  0x16   :  { %v449_v49 = vcombine.high %v448_v3, %v448_v3  ;;  %v687_v50 = vrot.slane %v679_v25, %v1814_v18  ;;  %v842_v54 = vrot.slane %v1961_v37, %v1814_v18  ;;  %v1990_v58 = vmul.f32 %v1605_v0, %v1974_v47  ;;  %v1623_v0 = vld [vmem:[%s2598_s0 + $0xa] sm:$0x3]  ;;  %v1634_v25 = vld [vmem:[%s2597_s1 + $0xe] sm:$0x3] }
  0x17   :  { %v1993_v52 = vrot.slane %v502_v43, %v1787_v6  ;;  %v1999_v62 = vmul.f32 %v1611_v11, %v1974_v47  ;;  %v717_v1 = vrot.slane %v1612_v46, %v1789_v7  ;;  %v872_v5 = vmul.f32 %v1617_v53, %v1616_v13  ;;  %v1628_v13 = vld [vmem:[%s2597_s1 + $0xc] sm:$0x3] }
  0x18   :  { %333 = vbcast.lane.b32.xlu1 %v331_v55, 256  ;;  %322 = vbcast.lane.b32.xlu0 %v320_v56, 256  ;;  %2610 = vst [vmem:[#allocation4_spill] sm:$0xff] %v1990_v58  ;;  %v688_v61 = vcombine.high %v687_v50, %v687_v50  ;;  %v2010_v4 = vrot.slane %v842_v54, %v1787_v6 }
  0x19   :  { %2611 = vst [vmem:[#allocation5_spill] sm:$0xff] %v1999_v62  ;;  %v706_v8 = vrot.slane %v1612_v46, %v1787_v6  ;;  %v1027_v11 = vrot.slane %v1622_v59, %v1814_v18  ;;  %v270_v14 = vrot.slane %v256_v48, %v1814_v18  ;;  %v2021_v19 = vmul.f32 %v1617_v53, %v1974_v47 }
  0x1a   :  { %v702_v9 = vrot.slane %v688_v61, %v1814_v18  ;;  %v1065_v20 = vmul.f32 %v1623_v0, %v1622_v59  ;;  %v642_v43 = vcombine.high %v1941_v12, %v1941_v12  ;;  %v835_v48 = vcombine.high %v1961_v37, %v1961_v37 }
  0x1b   :  { %2612 = vst [vmem:[#allocation6_spill] sm:$0xff] %v2021_v19  ;;  %v1035_v54 = vrot.slane %v1027_v11, %v1814_v18  ;;  %v2050_v37 = vrot.slane %v270_v14, %v1787_v6  ;;  %v2071_v58 = vmul.f32 %v1623_v0, %v1974_v47 }
  0x1c   :  { %326 = vbcast.lane.b32.xlu1 %v320_v56, 264  ;;  %337 = vbcast.lane.b32.xlu0 %v331_v55, 264  ;;  %v1986_v55 = vmul.f32 %v1874_v38, %v1974_v47  ;;  %v509_v56 = vrot.slane %v495_v42, %v1814_v18  ;;  %v695_v38 = vrot.slane %v687_v50, %v1814_v18 }
  0x1d   :  { %v463_v42 = vrot.slane %v449_v49, %v1814_v18  ;;  %v2033_v46 = vrot.slane %v702_v9, %v1787_v6  ;;  %v1073_v59 = vrot.slane %v1065_v20, %v1814_v18  ;;  %v1413_v49 = vrot.slane %v1634_v25, %v1814_v18  ;;  %v1629_v9 = vld [vmem:[%s2598_s0 + $0xc] sm:$0x3]  ;;  %v1618_v20 = vld [vmem:[%s2595_s3 + $0x8] sm:$0x3]  ;;  %2613 = vst [vmem:[#allocation7_spill] sm:$0xff] %v2071_v58 }
  0x1e   :  { %2609 = vst [vmem:[#allocation3_spill] sm:$0xff] %v1986_v55  ;;  %v2007_v3 = vrot.slane %v509_v56, %v1787_v6  ;;  %v2015_v10 = vrot.slane %v695_v38, %v1787_v6  ;;  %v1028_v56 = vcombine.high %v1027_v11, %v1027_v11  ;;  %v2047_v38 = vrot.slane %v1035_v54, %v1787_v6 }
  0x20   :  { %530 = vbcast.lane.b32.xlu1 %v524_v16, 264  ;;  %526 = vbcast.lane.b32.xlu0 %v524_v16, 256  ;;  %v880_v16 = vrot.slane %v872_v5, %v1814_v18  ;;  %v1074_v5 = vcombine.high %v1073_v59, %v1073_v59  ;;  %v1042_v54 = vrot.slane %v1028_v56, %v1814_v18 }
  0x22   :  { %v881_v50 = vcombine.high %v880_v16, %v880_v16  ;;  %v888_v53 = vrot.slane %v880_v16, %v1814_v18  ;;  %v1088_v19 = vrot.slane %v1074_v5, %v1814_v18 }
  0x24   :  { %519 = vbcast.lane.b32.xlu1 %v513_v39, 264  ;;  %515 = vbcast.lane.b32.xlu0 %v513_v39, 256  ;;  %v1220_v39 = vrot.slane %v1628_v13, %v1814_v18  ;;  %v895_v12 = vrot.slane %v881_v50, %v1814_v18  ;;  %v2044_v61 = vrot.slane %v888_v53, %v1787_v6 }
  0x25   :  { %v656_v50 = vrot.slane %v642_v43, %v1814_v18  ;;  %v849_v53 = vrot.slane %v835_v48, %v1814_v18  ;;  %v1081_v43 = vrot.slane %v1073_v59, %v1814_v18  ;;  %v2078_v56 = vrot.slane %v1088_v19, %v1787_v6 }
  0x26   :  { %v1221_v11 = vcombine.high %v1220_v39, %v1220_v39  ;;  %v1228_v16 = vrot.slane %v1220_v39, %v1814_v18  ;;  %v2062_v14 = vrot.slane %v895_v12, %v1787_v6  ;;  %v1421_v39 = vrot.slane %v1413_v49, %v1814_v18 }
  0x27   :  { %v2087_v59 = vrot.slane %v463_v42, %v1787_v6  ;;  %v1635_v42 = vld [vmem:[%s2598_s0 + $0xe] sm:$0x3] }
  0x28   :  { %723 = vbcast.lane.b32.xlu1 %v717_v1, 264  ;;  %719 = vbcast.lane.b32.xlu0 %v717_v1, 256  ;;  %v1258_v1 = vmul.f32 %v1629_v9, %v1628_v13  ;;  %v2067_v62 = vrot.slane %v1228_v16, %v1787_v6  ;;  %v1235_v48 = vrot.slane %v1221_v11, %v1814_v18 }
  0x29   :  { %v910_v13 = vrot.slane %v1618_v20, %v1789_v7  ;;  %v2081_v5 = vrot.slane %v1421_v39, %v1787_v6  ;;  %v2084_v16 = vrot.slane %v1081_v43, %v1787_v6  ;;  %v2090_v11 = vrot.slane %v656_v50, %v1787_v6  ;;  %v1624_v50 = vld [vmem:[%s2595_s3 + $0xa] sm:$0x3] }
  0x2a   :  { %v1266_v12 = vrot.slane %v1258_v1, %v1814_v18  ;;  %v2096_v1 = vrot.slane %v1042_v54, %v1787_v6  ;;  %v2100_v39 = vrot.slane %v1235_v48, %v1787_v6  ;;  %v899_v43 = vrot.slane %v1618_v20, %v1787_v6 }
  0x2b   :  { %2614 = vst [vmem:[#allocation8_spill] sm:$0xff] %v2084_v16  ;;  %v1414_v54 = vcombine.high %v1413_v49, %v1413_v49  ;;  %v2113_v48 = vmul.f32 %v1629_v9, %v1974_v47  ;;  %v1103_v58 = vrot.slane %v1624_v50, %v1789_v7  ;;  %v1630_v9 = vld [vmem:[%s2595_s3 + $0xc] sm:$0x3] }
  0x2c   :  { %712 = vbcast.lane.b32.xlu1 %v706_v8, 264  ;;  %708 = vbcast.lane.b32.xlu0 %v706_v8, 256  ;;  %v1267_v0 = vcombine.high %v1266_v12, %v1266_v12  ;;  %v2093_v8 = vrot.slane %v849_v53, %v1787_v6 }
  0x2d   :  { %v1428_v16 = vrot.slane %v1414_v54, %v1814_v18 }
  0x2e   :  { %v1281_v19 = vrot.slane %v1267_v0, %v1814_v18  ;;  %v1451_v0 = vmul.f32 %v1635_v42, %v1634_v25  ;;  %v1092_v25 = vrot.slane %v1624_v50, %v1787_v6 }
  0x30   :  { %916 = vbcast.lane.b32.xlu1 %v910_v13, 264  ;;  %912 = vbcast.lane.b32.xlu0 %v910_v13, 256  ;;  %v2110_v53 = vrot.slane %v1281_v19, %v1787_v6  ;;  %v1274_v13 = vrot.slane %v1266_v12, %v1814_v18  ;;  %v1459_v20 = vrot.slane %v1451_v0, %v1814_v18 }
  0x31   :  { %v2134_v0 = vmul.f32 %v1635_v42, %v1974_v47 }
  0x32   :  { %v2119_v55 = vrot.slane %v1274_v13, %v1787_v6  ;;  %v1460_v19 = vcombine.high %v1459_v20, %v1459_v20  ;;  %v1467_v54 = vrot.slane %v1459_v20, %v1814_v18  ;;  %v1285_v13 = vrot.slane %v1630_v9, %v1787_v6 }
  0x34   :  { %905 = vbcast.lane.b32.xlu1 %v899_v43, 264  ;;  %901 = vbcast.lane.b32.xlu0 %v899_v43, 256  ;;  %v1474_v49 = vrot.slane %v1460_v19, %v1814_v18  ;;  %v2131_v43 = vrot.slane %v1428_v16, %v1787_v6  ;;  %v2139_v50 = vrot.slane %v1467_v54, %v1787_v6  ;;  %v2169_v18 = vld [vmem:[%s2600_s2 + $0x8] sm:$0xff]  ;;  %v38_v54 = vld [vmem:[#allocation2] sm:$0xff] }
  0x36   :  { %v2128_v12 = vrot.slane %v1474_v49, %v1787_v6  ;;  %v2159_v6 = vld [vmem:[%s2600_s2] sm:$0xff] }
  0x37   :  { %v281_v20 = vmul.f32 %v1929_v2, %v2159_v6 }
  0x38   :  { %1109 = vbcast.lane.b32.xlu1 %v1103_v58, 264  ;;  %1105 = vbcast.lane.b32.xlu0 %v1103_v58, 256  ;;  %v1296_v58 = vrot.slane %v1630_v9, %v1789_v7  ;;  %v2164_v7 = vld [vmem:[%s2601_s6] sm:$0x3] }
  0x39   :  { %v285_v49 = vmul.f32 1.442695, %v281_v20 }
  0x3c   :  { %1098 = vbcast.lane.b32.xlu1 %v1092_v25, 264  ;;  %1094 = vbcast.lane.b32.xlu0 %v1092_v25, 256 }
  0x40   :  { %1302 = vbcast.lane.b32.xlu1 %v1296_v58, 264  ;;  %1298 = vbcast.lane.b32.xlu0 %v1296_v58, 256  ;;  %v40_v58 = vld [vmem:[#allocation2 + $0x10] sm:$0xff] }
  0x44   :  { %1291 = vbcast.lane.b32.xlu1 %v1285_v13, 264  ;;  %1287 = vbcast.lane.b32.xlu0 %v1285_v13, 256 }
  0x48   :  { %1495 = vbcast.lane.b32.xlu1 %v1824_v22, 264  ;;  %1491 = vbcast.lane.b32.xlu0 %v1824_v22, 256  ;;  %v80_v22 = vmul.f32 %v1898_v51, %v2159_v6 }
  0x4c   :  { %1484 = vbcast.lane.b32.xlu1 %v1827_v23, 264  ;;  %1480 = vbcast.lane.b32.xlu0 %v1827_v23, 256  ;;  %v82_v23 = vmul.f32 %v1907_v57, %v2159_v6 }
  0x50   :  { %381 = vbcast.lane.b32.xlu1 %v1830_v24, 264  ;;  %377 = vbcast.lane.b32.xlu0 %v1830_v24, 256  ;;  %v218_v24 = vsub.f32 0.0, %v2164_v7 }
  0x52   :  { %v219_v16 = vmul.f32 1.442695, %v218_v24  ;;  %v41_v24 = vld [vmem:[#allocation2 + $0x18] sm:$0xff] }
  0x54   :  { %574 = vbcast.lane.b32.xlu1 %v1836_v26, 264  ;;  %570 = vbcast.lane.b32.xlu0 %v1836_v26, 256  ;;  %v81_v26 = vmul.f32 %v1898_v51, %v2169_v18 }
  0x56   :  { %v86_v42 = vmul.f32 1.442695, %v81_v26 }
  0x58   :  { %767 = vbcast.lane.b32.xlu1 %v1839_v27, 264  ;;  %763 = vbcast.lane.b32.xlu0 %v1839_v27, 256  ;;  %v84_v27 = vmul.f32 1.442695, %v80_v22  ;;  %v39_v22 = vld [vmem:[#allocation2 + $0x8] sm:$0xff] }
  0x5a   :  { %1642 = vpow2.f32 %v84_v27 }
  0x5c   :  { %960 = vbcast.lane.b32.xlu1 %v1842_v28, 264  ;;  %956 = vbcast.lane.b32.xlu0 %v1842_v28, 256  ;;  %v83_v28 = vmul.f32 %v1907_v57, %v2169_v18  ;;  %v282_v57 = vmul.f32 %v1929_v2, %v2169_v18 }
  0x5e   :  { %v90_v19 = vmul.f32 1.442695, %v83_v28  ;;  %v287_v9 = vmul.f32 1.442695, %v282_v57 }
  0x60   :  { %1153 = vbcast.lane.b32.xlu1 %v1845_v29, 264  ;;  %1149 = vbcast.lane.b32.xlu0 %v1845_v29, 256  ;;  %v88_v29 = vmul.f32 1.442695, %v82_v23 }
  0x62   :  { %1644 = vpow2.f32 %v88_v29  ;;  %v474_v29 = vmul.f32 %v1952_v17, %v2159_v6 }
  0x63   :  { %1646 = vpow2.f32 %v219_v16 }
  0x64   :  { %1346 = vbcast.lane.b32.xlu1 %v1853_v31, 264  ;;  %1342 = vbcast.lane.b32.xlu0 %v1853_v31, 256  ;;  %v283_v31 = vmul.f32 %v2050_v37, %v2159_v6  ;;  %1648 = vpow2.f32 %v86_v42 }
  0x65   :  { %1650 = vpow2.f32 %v90_v19 }
  0x66   :  { %v289_v51 = vmul.f32 1.442695, %v283_v31 }
  0x68   :  { %1539 = vbcast.lane.b32.xlu1 %v1856_v32, 264  ;;  %1535 = vbcast.lane.b32.xlu0 %v1856_v32, 256  ;;  %v284_v32 = vmul.f32 %v2050_v37, %v2169_v18  ;;  %1652 = vpow2.f32 %v289_v51 }
  0x69   :  { %1654 = vpow2.f32 %v285_v49  ;;  %v477_v49 = vmul.f32 %v2087_v59, %v2169_v18 }
  0x6a   :  { %v291_v25 = vmul.f32 1.442695, %v284_v32 }
  0x6c   :  { %370 = vbcast.lane.b32.xlu1 %v1859_v33, 264  ;;  %366 = vbcast.lane.b32.xlu0 %v1859_v33, 256  ;;  %v1643_v33 = vpop.eup %1642  ;;  %1656 = vpow2.f32 %v291_v25 }
  0x6d   :  { %v1645_v37 = vpop.eup %1644  ;;  %1658 = vpow2.f32 %v287_v9  ;;  %v152_v23 = vmul.f32 %v1643_v33, %v38_v54  ;;  %v478_v54 = vmul.f32 1.442695, %v474_v29 }
  0x6e   :  { %v1647_v2 = vpop.eup %1646  ;;  %v154_v26 = vmul.f32 %v1645_v37, %v40_v58  ;;  %v475_v37 = vmul.f32 %v1952_v17, %v2169_v18  ;;  %v484_v17 = vmul.f32 1.442695, %v477_v49 }
  0x6f   :  { %v1649_v13 = vpop.eup %1648  ;;  %v221_v19 = vadd.f32 1.0, %v1647_v2 }
  0x70   :  { %563 = vbcast.lane.b32.xlu1 %v1862_v34, 264  ;;  %559 = vbcast.lane.b32.xlu0 %v1862_v34, 256  ;;  %v1651_v34 = vpop.eup %1650 }
  0x71   :  { %v155_v32 = vmul.f32 %v1651_v34, %v41_v24  ;;  %1660 = vrcp.f32 %v221_v19 }
  0x72   :  { %v1653_v16 = vpop.eup %1652 }
  0x73   :  { %v1655_v20 = vpop.eup %1654 }
  0x74   :  { %756 = vbcast.lane.b32.xlu1 %v1865_v35, 264  ;;  %752 = vbcast.lane.b32.xlu0 %v1865_v35, 256  ;;  %v476_v35 = vmul.f32 %v2087_v59, %v2159_v6  ;;  %v670_v59 = vmul.f32 %v2090_v11, %v2169_v18 }
  0x76   :  { %v482_v25 = vmul.f32 1.442695, %v476_v35  ;;  %v1657_v58 = vpop.eup %1656 }
  0x77   :  { %v1659_v34 = vpop.eup %1658 }
  0x78   :  { %949 = vbcast.lane.b32.xlu1 %v1868_v36, 264  ;;  %945 = vbcast.lane.b32.xlu0 %v1868_v36, 256  ;;  %v153_v36 = vmul.f32 %v1649_v13, %v39_v22  ;;  %1662 = vpow2.f32 %v482_v25 }
  0x79   :  { %1664 = vpow2.f32 %v478_v54 }
  0x7a   :  { %v133_v27 = vpop.permute.xlu1 %132  ;;  %v122_v28 = vpop.permute.xlu0 %121  ;;  %1666 = vpow2.f32 %v484_v17 }
  0x7b   :  { %v150_v31 = vmul.f32 %v1920_v63, %v133_v27  ;;  %v148_v42 = vmul.f32 %v1913_v60, %v122_v28 }
  0x7c   :  { %1142 = vbcast.lane.b32.xlu1 %v1878_v40, 264  ;;  %1138 = vbcast.lane.b32.xlu0 %v1878_v40, 256 }
  0x7d   :  { %v156_v51 = vadd.f32 %v152_v23, %v148_v42  ;;  %v158_v57 = vadd.f32 %v154_v26, %v150_v31 }
  0x7e   :  { %v137_v9 = vpop.permute.xlu1 %136  ;;  %v126_v33 = vpop.permute.xlu0 %125 }
  0x7f   :  { %v151_v27 = vmul.f32 %v1920_v63, %v137_v9  ;;  %v149_v40 = vmul.f32 %v1913_v60, %v126_v33  ;;  %v355_v13 = vmul.f32 %v1653_v16, %v158_v57  ;;  %v353_v2 = vmul.f32 %v1655_v20, %v156_v51 }
  0x80   :  { %1335 = vbcast.lane.b32.xlu1 %v1881_v41, 264  ;;  %1331 = vbcast.lane.b32.xlu0 %v1881_v41, 256  ;;  %v669_v60 = vmul.f32 %v2090_v11, %v2159_v6  ;;  %v480_v63 = vmul.f32 1.442695, %v475_v37  ;;  %v677_v41 = vmul.f32 1.442695, %v670_v59  ;;  %v668_v20 = vmul.f32 %v1966_v44, %v2169_v18 }
  0x81   :  { %v157_v22 = vadd.f32 %v153_v36, %v149_v40  ;;  %v159_v23 = vadd.f32 %v155_v32, %v151_v27  ;;  %v863_v33 = vmul.f32 %v2093_v8, %v2169_v18  ;;  %v862_v37 = vmul.f32 %v2093_v8, %v2159_v6 }
  0x82   :  { %v170_v24 = vpop.permute.xlu1 %169  ;;  %v166_v26 = vpop.permute.xlu0 %165  ;;  %v675_v32 = vmul.f32 1.442695, %v669_v60  ;;  %1668 = vpow2.f32 %v480_v63  ;;  %v673_v27 = vmul.f32 1.442695, %v668_v20 }
  0x83   :  { %v183_v35 = vmul.f32 %v170_v24, %v157_v22  ;;  %v182_v28 = vmul.f32 %v166_v26, %v156_v51  ;;  %v356_v29 = vmul.f32 %v1657_v58, %v159_v23  ;;  %v354_v16 = vmul.f32 %v1659_v34, %v157_v22 }
  0x84   :  { %1528 = vbcast.lane.b32.xlu1 %v1888_v45, 264  ;;  %1524 = vbcast.lane.b32.xlu0 %v1888_v45, 256  ;;  %v667_v51 = vmul.f32 %v1966_v44, %v2159_v6  ;;  %v2230_v45 = vmul.f32 %v1974_v47, %v1850_v30  ;;  %1670 = vpow2.f32 %v677_v41  ;;  %v1661_v44 = vpop.eup %1660  ;;  %v870_v60 = vmul.f32 1.442695, %v863_v33 }
  0x85   :  { %v188_v31 = vsel %vm30_vm0, %v183_v35, 0.0  ;;  %v187_v42 = vsel %vm30_vm0, %v182_v28, 0.0  ;;  %1672 = vpow2.f32 %v675_v32  ;;  %v1663_v47 = vpop.eup %1662  ;;  %v868_v63 = vmul.f32 1.442695, %v862_v37 }
  0x86   :  { %v189_v11 = vadd.f32 %v188_v31, %v187_v42  ;;  %v181_v36 = vpop.permute.xlu1 %180  ;;  %v177_v19 = vpop.permute.xlu0 %176  ;;  %v671_v30 = vmul.f32 1.442695, %v667_v51  ;;  %v213_v22 = vrot.slane %v2230_v45, 1  ;;  %1674 = vpow2.f32 %v673_v27 }
  0x87   :  { %v185_v49 = vmul.f32 %v181_v36, %v159_v23  ;;  %v184_v25 = vmul.f32 %v177_v19, %v158_v57  ;;  %v1665_v17 = vpop.eup %1664  ;;  %v861_v41 = vmul.f32 %v2010_v4, %v2169_v18  ;;  %v860_v36 = vmul.f32 %v2010_v4, %v2159_v6 }
  0x88   :  { %v190_v9 = vrot.slane %v189_v11, 4  ;;  %1676 = vpow2.f32 %v671_v30  ;;  %v1667_v19 = vpop.eup %1666  ;;  %v1056_v37 = vmul.f32 %v2096_v1, %v2169_v18 }
  0x89   :  { %v197_v54 = vsel %vm30_vm0, %v185_v49, 0.0  ;;  %v196_v58 = vsel %vm30_vm0, %v184_v25, 0.0  ;;  %v223_v25 = vmul.f32 %v1661_v44, %v2164_v7  ;;  %1678 = vpow2.f32 %v870_v60 }
  0x8a   :  { %v191_v40 = vadd.f32 %v190_v9, %v189_v11  ;;  %v198_v57 = vadd.f32 %v197_v54, %v196_v58  ;;  %v334_v34 = vpop.permute.xlu1 %333  ;;  %v323_v59 = vpop.permute.xlu0 %322  ;;  %1680 = vpow2.f32 %v868_v63 }
  0x8b   :  { %v351_v23 = vmul.f32 %v1958_v21, %v334_v34  ;;  %v349_v8 = vmul.f32 %v1948_v15, %v323_v59 }
  0x8c   :  { %v192_v24 = vrot.slane %v191_v40, 2  ;;  %v199_v26 = vrot.slane %v198_v57, 4  ;;  %v1669_v49 = vpop.eup %1668 }
  0x8d   :  { %v2241_v35 = vadd.f32 %v355_v13, %v351_v23  ;;  %v2243_v28 = vadd.f32 %v353_v2, %v349_v8  ;;  %v1063_v8 = vmul.f32 1.442695, %v1056_v37 }
  0x8e   :  { %v193_v31 = vadd.f32 %v192_v24, %v191_v40  ;;  %v200_v42 = vadd.f32 %v199_v26, %v198_v57  ;;  %v327_v20 = vpop.permute.xlu1 %326  ;;  %v338_v11 = vpop.permute.xlu0 %337  ;;  %v1055_v40 = vmul.f32 %v2096_v1, %v2159_v6  ;;  %v864_v57 = vmul.f32 1.442695, %v860_v36 }
  0x8f   :  { %v350_v32 = vmul.f32 %v1948_v15, %v327_v20  ;;  %v352_v13 = vmul.f32 %v1958_v21, %v338_v11  ;;  %v548_v2 = vmul.f32 %v1663_v47, %v2241_v35  ;;  %v546_v51 = vmul.f32 %v1665_v17, %v2243_v28  ;;  %v1671_v7 = vpop.eup %1670 }
  0x90   :  { %v194_v9 = vrot.slane %v193_v31, 1  ;;  %v201_v33 = vrot.slane %v200_v42, 2  ;;  %v866_v15 = vmul.f32 1.442695, %v861_v41  ;;  %v225_v47 = vrot.slane %v223_v25, 1 }
  0x91   :  { %v2256_v54 = vadd.f32 %v356_v29, %v352_v13  ;;  %v2258_v4 = vadd.f32 %v354_v16, %v350_v32  ;;  %v1673_v16 = vpop.eup %1672  ;;  %v1054_v1 = vmul.f32 %v2047_v38, %v2169_v18  ;;  %v1061_v63 = vmul.f32 1.442695, %v1055_v40 }
  0x92   :  { %v202_v58 = vadd.f32 %v201_v33, %v200_v42  ;;  %v531_v21 = vpop.permute.xlu1 %530  ;;  %v527_v27 = vpop.permute.xlu0 %526  ;;  %v195_v30 = vadd.f32 %v194_v9, %v193_v31  ;;  %1682 = vpow2.f32 %v866_v15  ;;  %v1053_v41 = vmul.f32 %v2047_v38, %v2159_v6 }
  0x93   :  { %v545_v44 = vmul.f32 %v2007_v3, %v531_v21  ;;  %v544_v34 = vmul.f32 %v2007_v3, %v527_v27  ;;  %v549_v29 = vmul.f32 %v1667_v19, %v2256_v54  ;;  %v547_v59 = vmul.f32 %v1669_v49, %v2258_v4  ;;  %v1675_v31 = vpop.eup %1674 }
  0x94   :  { %v203_v23 = vrot.slane %v202_v58, 1  ;;  %1684 = vpow2.f32 %v864_v57  ;;  %v1677_v19 = vpop.eup %1676  ;;  %v216_v32 = vadd.f32 %v2230_v45, %v195_v30  ;;  %v1248_v15 = vmul.f32 %v2100_v39, %v2159_v6 }
  0x95   :  { %v2266_v17 = vadd.f32 %v549_v29, %v545_v44  ;;  %v2268_v24 = vadd.f32 %v548_v2, %v544_v34  ;;  %v1249_v2 = vmul.f32 %v2100_v39, %v2169_v18  ;;  %1686 = vpow2.f32 %v1063_v8  ;;  %v1679_v21 = vpop.eup %1678 }
  0x96   :  { %v204_v26 = vadd.f32 %v203_v23, %v202_v58  ;;  %v520_v60 = vpop.permute.xlu1 %519  ;;  %v516_v3 = vpop.permute.xlu0 %515  ;;  %1688 = vpow2.f32 %v1061_v63  ;;  %v1057_v58 = vmul.f32 1.442695, %v1053_v41  ;;  %v228_v57 = vmul.f32 %v223_v25, %v216_v32 }
  0x97   :  { %v543_v42 = vmul.f32 %v1993_v52, %v520_v60  ;;  %v542_v20 = vmul.f32 %v1993_v52, %v516_v3  ;;  %v742_v11 = vmul.f32 %v1671_v7, %v2266_v17  ;;  %v741_v36 = vmul.f32 %v1673_v16, %v2268_v24 }
  0x98   :  { %v217_v13 = vadd.f32 %v213_v22, %v204_v26  ;;  %v1059_v52 = vmul.f32 1.442695, %v1054_v1  ;;  %v1256_v44 = vmul.f32 1.442695, %v1249_v2  ;;  %v1247_v39 = vmul.f32 %v2067_v62, %v2169_v18 }
  0x99   :  { %v2283_v38 = vadd.f32 %v547_v59, %v543_v42  ;;  %v2285_v49 = vadd.f32 %v546_v51, %v542_v20  ;;  %v1681_v51 = vpop.eup %1680  ;;  %v1254_v30 = vmul.f32 1.442695, %v1248_v15  ;;  %v1246_v25 = vmul.f32 %v2067_v62, %v2159_v6 }
  0x9a   :  { %v229_v9 = vmul.f32 %v225_v47, %v217_v13  ;;  %v724_v33 = vpop.permute.xlu1 %723  ;;  %v720_v37 = vpop.permute.xlu0 %719  ;;  %1690 = vpow2.f32 %v1059_v52  ;;  %v1442_v3 = vmul.f32 %v2131_v43, %v2169_v18  ;;  %v1252_v41 = vmul.f32 1.442695, %v1247_v39 }
  0x9b   :  { %v738_v45 = vmul.f32 %v2033_v46, %v724_v33  ;;  %v737_v22 = vmul.f32 %v2033_v46, %v720_v37  ;;  %v740_v27 = vmul.f32 %v1675_v31, %v2283_v38  ;;  %v739_v40 = vmul.f32 %v1677_v19, %v2285_v49 }
  0x9c   :  { %v232_v7 = vrot.slane %v229_v9, 7  ;;  %1692 = vpow2.f32 %v1057_v58  ;;  %v1683_v47 = vpop.eup %1682  ;;  %v1250_v20 = vmul.f32 1.442695, %v1246_v25  ;;  %v1449_v52 = vmul.f32 1.442695, %v1442_v3 }
  0x9d   :  { %v2293_v34 = vadd.f32 %v742_v11, %v738_v45  ;;  %v2295_v29 = vadd.f32 %v741_v36, %v737_v22  ;;  %1694 = vpow2.f32 %v1256_v44 }
  0x9e   :  { %v234_v59 = vsel %vm233_vm1, %v232_v7, %v228_v57  ;;  %v713_v46 = vpop.permute.xlu1 %712  ;;  %v709_v16 = vpop.permute.xlu0 %708  ;;  %1696 = vpow2.f32 %v1254_v30 }
  0x9f   :  { %237 = vst.msk [vmem:[%s2602_s7] sm:$0x3] %vm236_vm2, %v234_v59  ;;  %v736_v23 = vmul.f32 %v2015_v10, %v713_v46  ;;  %v735_v8 = vmul.f32 %v2015_v10, %v709_v16  ;;  %v935_v1 = vmul.f32 %v1679_v21, %v2293_v34  ;;  %v934_v26 = vmul.f32 %v1681_v51, %v2295_v29  ;;  %v1685_v60 = vpop.eup %1684 }
  0xa0   :  { %v1441_v10 = vmul.f32 %v2131_v43, %v2159_v6  ;;  %v1687_v11 = vpop.eup %1686  ;;  %1698 = vpow2.f32 %v1252_v41  ;;  %v1440_v43 = vmul.f32 %v2081_v5, %v2169_v18 }
  0xa1   :  { %v2312_v62 = vadd.f32 %v740_v27, %v736_v23  ;;  %v2314_v63 = vadd.f32 %v739_v40, %v735_v8  ;;  %v1689_v2 = vpop.eup %1688  ;;  %1700 = vpow2.f32 %v1250_v20 }
  0xa2   :  { %v917_v31 = vpop.permute.xlu1 %916  ;;  %v913_v42 = vpop.permute.xlu0 %912  ;;  %v1447_v58 = vmul.f32 1.442695, %v1441_v10  ;;  %1702 = vpow2.f32 %v1449_v52  ;;  %v1445_v7 = vmul.f32 1.442695, %v1440_v43  ;;  %v2365_v52 = vld [vmem:[%s2601_s6 + $0x4] sm:$0x3] }
  0xa3   :  { %v931_v36 = vmul.f32 %v2062_v14, %v917_v31  ;;  %v930_v19 = vmul.f32 %v2062_v14, %v913_v42  ;;  %v933_v32 = vmul.f32 %v1683_v47, %v2312_v62  ;;  %v932_v13 = vmul.f32 %v1685_v60, %v2314_v63 }
  0xa4   :  { %v1439_v14 = vmul.f32 %v2081_v5, %v2159_v6  ;;  %v1691_v21 = vpop.eup %1690  ;;  %1704 = vpow2.f32 %v1447_v58 }
  0xa5   :  { %v2322_v9 = vadd.f32 %v935_v1, %v931_v36  ;;  %v2324_v33 = vadd.f32 %v934_v26, %v930_v19  ;;  %1706 = vpow2.f32 %v1445_v7  ;;  %v2615_v26 = vld [vmem:[#allocation8_spill] sm:$0xff] }
  0xa6   :  { %v906_v37 = vpop.permute.xlu1 %905  ;;  %v902_v15 = vpop.permute.xlu0 %901  ;;  %v1443_v5 = vmul.f32 1.442695, %v1439_v14 }
  0xa7   :  { %v929_v45 = vmul.f32 %v2044_v61, %v906_v37  ;;  %v928_v22 = vmul.f32 %v2044_v61, %v902_v15  ;;  %v1128_v27 = vmul.f32 %v1687_v11, %v2322_v9  ;;  %v1127_v40 = vmul.f32 %v1689_v2, %v2324_v33  ;;  %v1693_v51 = vpop.eup %1692 }
  0xa8   :  { %v1695_v6 = vpop.eup %1694  ;;  %1708 = vpow2.f32 %v1443_v5  ;;  %v2381_v5 = vld [vmem:[%s2601_s6 + $0x6] sm:$0x3] }
  0xa9   :  { %v2334_v57 = vadd.f32 %v933_v32, %v929_v45  ;;  %v2336_v18 = vadd.f32 %v932_v13, %v928_v22  ;;  %v1697_v30 = vpop.eup %1696 }
  0xaa   :  { %v1110_v44 = vpop.permute.xlu1 %1109  ;;  %v1106_v39 = vpop.permute.xlu0 %1105 }
  0xab   :  { %v1124_v59 = vmul.f32 %v2078_v56, %v1110_v44  ;;  %v1123_v61 = vmul.f32 %v2078_v56, %v1106_v39  ;;  %v1126_v46 = vmul.f32 %v1691_v21, %v2334_v57  ;;  %v1125_v16 = vmul.f32 %v1693_v51, %v2336_v18  ;;  %v1699_v1 = vpop.eup %1698  ;;  %v2351_v56 = vld [vmem:[%s2601_s6 + $0x2] sm:$0x3] }
  0xac   :  { %v1701_v42 = vpop.eup %1700  ;;  %v412_v19 = vsub.f32 0.0, %v2351_v56 }
  0xad   :  { %v2342_v25 = vadd.f32 %v1128_v27, %v1124_v59  ;;  %v2344_v47 = vadd.f32 %v1127_v40, %v1123_v61  ;;  %v1703_v32 = vpop.eup %1702  ;;  %v605_v27 = vsub.f32 0.0, %v2365_v52 }
  0xae   :  { %v1099_v23 = vpop.permute.xlu1 %1098  ;;  %v1095_v8 = vpop.permute.xlu0 %1094  ;;  %v413_v22 = vmul.f32 1.442695, %v412_v19 }
  0xaf   :  { %v1122_v60 = vmul.f32 %v2615_v26, %v1099_v23  ;;  %v1121_v3 = vmul.f32 %v2615_v26, %v1095_v8  ;;  %v1321_v41 = vmul.f32 %v1695_v6, %v2342_v25  ;;  %v1320_v31 = vmul.f32 %v1697_v30, %v2344_v47  ;;  %v1705_v15 = vpop.eup %1704 }
  0xb0   :  { %1710 = vpow2.f32 %v413_v22 }
  0xb1   :  { %v2355_v10 = vadd.f32 %v1126_v46, %v1122_v60  ;;  %v2357_v20 = vadd.f32 %v1125_v16, %v1121_v3  ;;  %v606_v16 = vmul.f32 1.442695, %v605_v27 }
  0xb2   :  { %v1303_v11 = vpop.permute.xlu1 %1302  ;;  %v1299_v36 = vpop.permute.xlu0 %1298 }
  0xb3   :  { %v1317_v13 = vmul.f32 %v2110_v53, %v1303_v11  ;;  %v1316_v2 = vmul.f32 %v2110_v53, %v1299_v36  ;;  %v1319_v43 = vmul.f32 %v1699_v1, %v2355_v10  ;;  %v1318_v37 = vmul.f32 %v1701_v42, %v2357_v20  ;;  %v1707_v53 = vpop.eup %1706 }
  0xb4   :  { %v1709_v39 = vpop.eup %1708  ;;  %v798_v1 = vsub.f32 0.0, %v2381_v5  ;;  %1712 = vpow2.f32 %v606_v16 }
  0xb5   :  { %v2369_v58 = vadd.f32 %v1321_v41, %v1317_v13  ;;  %v2371_v14 = vadd.f32 %v1320_v31, %v1316_v2  ;;  %v2399_v31 = vld [vmem:[%s2601_s6 + $0x8] sm:$0x3] }
  0xb6   :  { %v1292_v21 = vpop.permute.xlu1 %1291  ;;  %v1288_v45 = vpop.permute.xlu0 %1287  ;;  %v799_v11 = vmul.f32 1.442695, %v798_v1  ;;  %v991_v36 = vsub.f32 0.0, %v2399_v31 }
  0xb7   :  { %v1315_v40 = vmul.f32 %v2119_v55, %v1292_v21  ;;  %v1314_v51 = vmul.f32 %v2119_v55, %v1288_v45  ;;  %v1514_v7 = vmul.f32 %v1703_v32, %v2369_v58  ;;  %v1513_v44 = vmul.f32 %v1705_v15, %v2371_v14 }
  0xb8   :  { %1714 = vpow2.f32 %v799_v11  ;;  %v992_v22 = vmul.f32 1.442695, %v991_v36 }
  0xb9   :  { %v2383_v6 = vadd.f32 %v1319_v43, %v1315_v40  ;;  %v2385_v59 = vadd.f32 %v1318_v37, %v1314_v51  ;;  %v2415_v43 = vld [vmem:[%s2601_s6 + $0xa] sm:$0x3] }
  0xba   :  { %v1496_v61 = vpop.permute.xlu1 %1495  ;;  %v1492_v46 = vpop.permute.xlu0 %1491  ;;  %v1184_v27 = vsub.f32 0.0, %v2415_v43  ;;  %1716 = vpow2.f32 %v992_v22 }
  0xbb   :  { %v1510_v55 = vmul.f32 %v2128_v12, %v1496_v61  ;;  %v1509_v30 = vmul.f32 %v2128_v12, %v1492_v46  ;;  %v1512_v23 = vmul.f32 %v1707_v53, %v2383_v6  ;;  %v1511_v8 = vmul.f32 %v1709_v39, %v2385_v59  ;;  %v1711_v15 = vpop.eup %1710  ;;  %v2431_v61 = vld [vmem:[%s2601_s6 + $0xc] sm:$0x3] }
  0xbd   :  { %v2392_v26 = vadd.f32 %v1514_v7, %v1510_v55  ;;  %v2394_v60 = vadd.f32 %v1513_v44, %v1509_v30  ;;  %v415_v44 = vadd.f32 1.0, %v1711_v15  ;;  %v1185_v55 = vmul.f32 1.442695, %v1184_v27 }
  0xbe   :  { %v1485_v3 = vpop.permute.xlu1 %1484  ;;  %v1481_v41 = vpop.permute.xlu0 %1480 }
  0xbf   :  { %v1508_v12 = vmul.f32 %v2139_v50, %v1485_v3  ;;  %v1507_v42 = vmul.f32 %v2139_v50, %v1481_v41  ;;  %1592 = vst.msk [vmem:[#allocation2 + $0x18] sm:$0xff] %vm30_vm0, %v2392_v26  ;;  %1591 = vst.msk [vmem:[#allocation2 + $0x10] sm:$0xff] %vm30_vm0, %v2394_v60  ;;  %v1713_v7 = vpop.eup %1712  ;;  %v1377_v41 = vsub.f32 0.0, %v2431_v61  ;;  %1718 = vrcp.f32 %v415_v44 }
  0xc0   :  { %v608_v1 = vadd.f32 1.0, %v1713_v7  ;;  %1720 = vpow2.f32 %v1185_v55 }
  0xc1   :  { %v2408_v19 = vadd.f32 %v1512_v23, %v1508_v12  ;;  %v2410_v32 = vadd.f32 %v1511_v8, %v1507_v42  ;;  %v1378_v22 = vmul.f32 1.442695, %v1377_v41 }
  0xc2   :  { %v382_v13 = vpop.permute.xlu1 %381  ;;  %v378_v2 = vpop.permute.xlu0 %377  ;;  %1722 = vrcp.f32 %v608_v1 }
  0xc3   :  { %v386_v50 = vmul.f32 %v382_v13, %v2256_v54  ;;  %v385_v37 = vmul.f32 %v378_v2, %v2241_v35  ;;  %1590 = vst.msk [vmem:[#allocation2 + $0x8] sm:$0xff] %vm30_vm0, %v2408_v19  ;;  %1589 = vst.msk [vmem:[#allocation2] sm:$0xff] %vm30_vm0, %v2410_v32  ;;  %v1715_v13 = vpop.eup %1714  ;;  %1724 = vpow2.f32 %v1378_v22 }
  0xc5   :  { %v397_v21 = vsel %vm30_vm0, %v386_v50, 0.0  ;;  %v396_v45 = vsel %vm30_vm0, %v385_v37, 0.0 }
  0xc6   :  { %v398_v53 = vadd.f32 %v397_v21, %v396_v45  ;;  %v575_v40 = vpop.permute.xlu1 %574  ;;  %v571_v54 = vpop.permute.xlu0 %570 }
  0xc7   :  { %v579_v35 = vmul.f32 %v575_v40, %v2266_v17  ;;  %v578_v51 = vmul.f32 %v571_v54, %v2268_v24 }
  0xc8   :  { %v399_v39 = vrot.slane %v398_v53, 4 }
  0xc9   :  { %v590_v46 = vsel %vm30_vm0, %v579_v35, 0.0  ;;  %v589_v16 = vsel %vm30_vm0, %v578_v51, 0.0  ;;  %v801_v51 = vadd.f32 1.0, %v1715_v13 }
  0xca   :  { %v400_v30 = vadd.f32 %v399_v39, %v398_v53  ;;  %v591_v23 = vadd.f32 %v590_v46, %v589_v16  ;;  %v768_v8 = vpop.permute.xlu1 %767  ;;  %v764_v17 = vpop.permute.xlu0 %763  ;;  %v2616_v53 = vld [vmem:[#allocation3_spill] sm:$0xff] }
  0xcb   :  { %v772_v24 = vmul.f32 %v768_v8, %v2293_v34  ;;  %v771_v3 = vmul.f32 %v764_v17, %v2295_v29  ;;  %v2443_v34 = vld [vmem:[%s2601_s6 + $0xe] sm:$0x3]  ;;  %v407_v40 = vrot.slane %v2616_v53, 1  ;;  %1726 = vrcp.f32 %v801_v51 }
  0xcc   :  { %v401_v12 = vrot.slane %v400_v30, 2  ;;  %v592_v42 = vrot.slane %v591_v23, 4  ;;  %v1570_v39 = vsub.f32 0.0, %v2443_v34  ;;  %v2617_v8 = vld [vmem:[#allocation4_spill] sm:$0xff] }
  0xcd   :  { %v783_v11 = vsel %vm30_vm0, %v772_v24, 0.0  ;;  %v782_v36 = vsel %vm30_vm0, %v771_v3, 0.0  ;;  %v600_v17 = vrot.slane %v2617_v8, 1 }
  0xce   :  { %v402_v2 = vadd.f32 %v401_v12, %v400_v30  ;;  %v593_v50 = vadd.f32 %v592_v42, %v591_v23  ;;  %v784_v37 = vadd.f32 %v783_v11, %v782_v36  ;;  %v961_v15 = vpop.permute.xlu1 %960  ;;  %v957_v21 = vpop.permute.xlu0 %956 }
  0xcf   :  { %v965_v29 = vmul.f32 %v961_v15, %v2322_v9  ;;  %v964_v45 = vmul.f32 %v957_v21, %v2324_v33  ;;  %v1717_v33 = vpop.eup %1716 }
  0xd0   :  { %v403_v27 = vrot.slane %v402_v2, 1  ;;  %v594_v54 = vrot.slane %v593_v50, 2  ;;  %v785_v35 = vrot.slane %v784_v37, 4  ;;  %v1719_v13 = vpop.eup %1718 }
  0xd1   :  { %v976_v7 = vsel %vm30_vm0, %v965_v29, 0.0  ;;  %v975_v44 = vsel %vm30_vm0, %v964_v45, 0.0  ;;  %v1721_v29 = vpop.eup %1720 }
  0xd2   :  { %v404_v46 = vadd.f32 %v403_v27, %v402_v2  ;;  %v595_v16 = vadd.f32 %v594_v54, %v593_v50  ;;  %v786_v55 = vadd.f32 %v785_v35, %v784_v37  ;;  %v977_v30 = vadd.f32 %v976_v7, %v975_v44  ;;  %v1154_v9 = vpop.permute.xlu1 %1153  ;;  %v1150_v23 = vpop.permute.xlu0 %1149  ;;  %v2618_v35 = vld [vmem:[#allocation5_spill] sm:$0xff] }
  0xd3   :  { %v1158_v1 = vmul.f32 %v1154_v9, %v2342_v25  ;;  %v1157_v24 = vmul.f32 %v1150_v23, %v2344_v47  ;;  %v994_v37 = vadd.f32 1.0, %v1717_v33  ;;  %v1571_v27 = vmul.f32 1.442695, %v1570_v39  ;;  %v1723_v44 = vpop.eup %1722 }
  0xd4   :  { %v2454_v3 = vadd.f32 %v407_v40, %v404_v46  ;;  %v596_v41 = vrot.slane %v595_v16, 1  ;;  %v787_v12 = vrot.slane %v786_v55, 2  ;;  %v978_v42 = vrot.slane %v977_v30, 4 }
  0xd5   :  { %v1169_v11 = vsel %vm30_vm0, %v1158_v1, 0.0  ;;  %v1168_v36 = vsel %vm30_vm0, %v1157_v24, 0.0  ;;  %v793_v51 = vrot.slane %v2618_v35, 1  ;;  %v2464_v46 = vmul.f32 %v1719_v13, %v2351_v56 }
  0xd6   :  { %v597_v2 = vadd.f32 %v596_v41, %v595_v16  ;;  %v788_v50 = vadd.f32 %v787_v12, %v786_v55  ;;  %v979_v15 = vadd.f32 %v978_v42, %v977_v30  ;;  %v1347_v21 = vpop.permute.xlu1 %1346  ;;  %v1343_v25 = vpop.permute.xlu0 %1342  ;;  %v1170_v47 = vadd.f32 %v1169_v11, %v1168_v36  ;;  %v2619_v12 = vld [vmem:[#allocation6_spill] sm:$0xff] }
  0xd7   :  { %v1351_v45 = vmul.f32 %v1347_v21, %v2369_v58  ;;  %v1350_v22 = vmul.f32 %v1343_v25, %v2371_v14  ;;  %v1187_v23 = vadd.f32 1.0, %v1721_v29  ;;  %1728 = vrcp.f32 %v994_v37  ;;  %v1725_v36 = vpop.eup %1724 }
  0xd8   :  { %v2460_v40 = vadd.f32 %v600_v17, %v597_v2  ;;  %v789_v54 = vrot.slane %v788_v50, 1  ;;  %v980_v7 = vrot.slane %v979_v15, 2  ;;  %v1171_v16 = vrot.slane %v1170_v47, 4 }
  0xd9   :  { %v1362_v55 = vsel %vm30_vm0, %v1351_v45, 0.0  ;;  %v1361_v30 = vsel %vm30_vm0, %v1350_v22, 0.0  ;;  %v986_v42 = vrot.slane %v2619_v12, 1  ;;  %1730 = vpow2.f32 %v1571_v27 }
  0xda   :  { %v790_v9 = vadd.f32 %v789_v54, %v788_v50  ;;  %v981_v58 = vadd.f32 %v980_v7, %v979_v15  ;;  %v1363_v14 = vadd.f32 %v1362_v55, %v1361_v30  ;;  %v1540_v39 = vpop.permute.xlu1 %1539  ;;  %v1536_v33 = vpop.permute.xlu0 %1535  ;;  %v1172_v17 = vadd.f32 %v1171_v16, %v1170_v47  ;;  %v2620_v55 = vld [vmem:[#allocation7_spill] sm:$0xff] }
  0xdb   :  { %v1544_v1 = vmul.f32 %v1540_v39, %v2392_v26  ;;  %v1543_v24 = vmul.f32 %v1536_v33, %v2394_v60  ;;  %1732 = vrcp.f32 %v1187_v23  ;;  %v1727_v60 = vpop.eup %1726  ;;  %v419_v29 = vrot.slane %v2464_v46, 1 }
  0xdc   :  { %v2470_v41 = vadd.f32 %v793_v51, %v790_v9  ;;  %v982_v56 = vrot.slane %v981_v58, 1  ;;  %v1364_v11 = vrot.slane %v1363_v14, 4  ;;  %v1173_v13 = vrot.slane %v1172_v17, 2 }
  0xdd   :  { %v1555_v2 = vsel %vm30_vm0, %v1544_v1, 0.0  ;;  %v1554_v50 = vsel %vm30_vm0, %v1543_v24, 0.0  ;;  %v1380_v51 = vadd.f32 1.0, %v1725_v36  ;;  %v1179_v30 = vrot.slane %v2620_v55, 1 }
  0xde   :  { %v983_v15 = vadd.f32 %v982_v56, %v981_v58  ;;  %v1365_v37 = vadd.f32 %v1364_v11, %v1363_v14  ;;  %v1556_v21 = vadd.f32 %v1555_v2, %v1554_v50  ;;  %v371_v26 = vpop.permute.xlu1 %370  ;;  %v367_v25 = vpop.permute.xlu0 %366  ;;  %v1174_v47 = vadd.f32 %v1173_v13, %v1172_v17 }
  0xdf   :  { %v384_v45 = vmul.f32 %v371_v26, %v2258_v4  ;;  %v383_v22 = vmul.f32 %v367_v25, %v2243_v28  ;;  %v2484_v23 = vmul.f32 %v1723_v44, %v2365_v52  ;;  %v2487_v17 = vmul.f32 %v1727_v60, %v2381_v5 }
  0xe0   :  { %v2478_v54 = vadd.f32 %v986_v42, %v983_v15  ;;  %v1366_v27 = vrot.slane %v1365_v37, 2  ;;  %v1557_v7 = vrot.slane %v1556_v21, 4  ;;  %v1175_v16 = vrot.slane %v1174_v47, 1 }
  0xe1   :  { %v388_v9 = vsel %vm30_vm0, %v384_v45, 0.0  ;;  %v387_v58 = vsel %vm30_vm0, %v383_v22, 0.0  ;;  %v1372_v11 = vrot.slane %v2113_v48, 1  ;;  %v1729_v52 = vpop.eup %1728  ;;  %1734 = vrcp.f32 %v1380_v51 }
  0xe2   :  { %v1367_v14 = vadd.f32 %v1366_v27, %v1365_v37  ;;  %v1558_v39 = vadd.f32 %v1557_v7, %v1556_v21  ;;  %v389_v4 = vadd.f32 %v388_v9, %v387_v58  ;;  %v564_v33 = vpop.permute.xlu1 %563  ;;  %v560_v28 = vpop.permute.xlu0 %559  ;;  %v1176_v1 = vadd.f32 %v1175_v16, %v1174_v47 }
  0xe3   :  { %v577_v24 = vmul.f32 %v564_v33, %v2283_v38  ;;  %v576_v56 = vmul.f32 %v560_v28, %v2285_v49  ;;  %v1731_v49 = vpop.eup %1730  ;;  %v612_v25 = vrot.slane %v2484_v23, 1  ;;  %v1565_v60 = vrot.slane %v2134_v0, 1 }
  0xe4   :  { %v1368_v42 = vrot.slane %v1367_v14, 1  ;;  %v1559_v36 = vrot.slane %v1558_v39, 2  ;;  %v390_v13 = vrot.slane %v389_v4, 4  ;;  %v2492_v44 = vadd.f32 %v1179_v30, %v1176_v1 }
  0xe5   :  { %v581_v2 = vsel %vm30_vm0, %v577_v24, 0.0  ;;  %v580_v50 = vsel %vm30_vm0, %v576_v56, 0.0  ;;  %v1733_v22 = vpop.eup %1732  ;;  %v805_v30 = vrot.slane %v2487_v17, 1  ;;  %v2504_v9 = vmul.f32 %v1729_v52, %v2399_v31 }
  0xe6   :  { %v1369_v5 = vadd.f32 %v1368_v42, %v1367_v14  ;;  %v1560_v15 = vadd.f32 %v1559_v36, %v1558_v39  ;;  %v391_v37 = vadd.f32 %v390_v13, %v389_v4  ;;  %v582_v21 = vadd.f32 %v581_v2, %v580_v50  ;;  %v757_v38 = vpop.permute.xlu1 %756  ;;  %v753_v26 = vpop.permute.xlu0 %752 }
  0xe7   :  { %v770_v47 = vmul.f32 %v757_v38, %v2312_v62  ;;  %v769_v45 = vmul.f32 %v753_v26, %v2314_v63  ;;  %v1573_v39 = vadd.f32 1.0, %v1731_v49  ;;  %v2509_v1 = vmul.f32 %v1733_v22, %v2415_v43 }
  0xe8   :  { %v2500_v51 = vadd.f32 %v1372_v11, %v1369_v5  ;;  %v1561_v27 = vrot.slane %v1560_v15, 1  ;;  %v392_v7 = vrot.slane %v391_v37, 2  ;;  %v583_v16 = vrot.slane %v582_v21, 4 }
  0xe9   :  { %v774_v58 = vsel %vm30_vm0, %v770_v47, 0.0  ;;  %v773_v14 = vsel %vm30_vm0, %v769_v45, 0.0  ;;  %v423_v31 = vmul.f32 %v419_v29, %v2454_v3  ;;  %v998_v52 = vrot.slane %v2504_v9, 1 }
  0xea   :  { %v1562_v4 = vadd.f32 %v1561_v27, %v1560_v15  ;;  %v393_v62 = vadd.f32 %v392_v7, %v391_v37  ;;  %v584_v33 = vadd.f32 %v583_v16, %v582_v21  ;;  %v950_v63 = vpop.permute.xlu1 %949  ;;  %v946_v28 = vpop.permute.xlu0 %945  ;;  %v775_v24 = vadd.f32 %v774_v58, %v773_v14 }
  0xeb   :  { %v963_v56 = vmul.f32 %v950_v63, %v2334_v57  ;;  %v962_v42 = vmul.f32 %v946_v28, %v2336_v18  ;;  %1736 = vrcp.f32 %v1573_v39  ;;  %v1735_v18 = vpop.eup %1734  ;;  %v1191_v3 = vrot.slane %v2509_v1, 1 }
  0xec   :  { %v2514_v11 = vadd.f32 %v1565_v60, %v1562_v4  ;;  %v394_v36 = vrot.slane %v393_v62, 1  ;;  %v585_v13 = vrot.slane %v584_v33, 2  ;;  %v776_v2 = vrot.slane %v775_v24, 4 }
  0xed   :  { %v967_v50 = vsel %vm30_vm0, %v963_v56, 0.0  ;;  %v966_v5 = vsel %vm30_vm0, %v962_v42, 0.0  ;;  %v426_v49 = vrot.slane %v423_v31, 7  ;;  %v616_v22 = vmul.f32 %v612_v25, %v2460_v40 }
  0xee   :  { %v395_v43 = vadd.f32 %v394_v36, %v393_v62  ;;  %v586_v15 = vadd.f32 %v585_v13, %v584_v33  ;;  %v968_v37 = vadd.f32 %v967_v50, %v966_v5  ;;  %v1143_v57 = vpop.permute.xlu1 %1142  ;;  %v1139_v21 = vpop.permute.xlu0 %1138  ;;  %v777_v29 = vadd.f32 %v776_v2, %v775_v24 }
  0xef   :  { %v1156_v38 = vmul.f32 %v1143_v57, %v2355_v10  ;;  %v1155_v26 = vmul.f32 %v1139_v21, %v2357_v20  ;;  %v2528_v20 = vmul.f32 %v1735_v18, %v2431_v61  ;;  %v809_v2 = vmul.f32 %v805_v30, %v2470_v41 }
  0xf0   :  { %v410_v60 = vadd.f32 %v2616_v53, %v395_v43  ;;  %v587_v47 = vrot.slane %v586_v15, 1  ;;  %v969_v45 = vrot.slane %v968_v37, 4  ;;  %v778_v27 = vrot.slane %v777_v29, 2 }
  0xf1   :  { %v1160_v7 = vsel %vm30_vm0, %v1156_v38, 0.0  ;;  %v1159_v16 = vsel %vm30_vm0, %v1155_v26, 0.0  ;;  %v1002_v18 = vmul.f32 %v998_v52, %v2478_v54 }
  0xf2   :  { %v422_v58 = vmul.f32 %v2464_v46, %v410_v60  ;;  %v588_v14 = vadd.f32 %v587_v47, %v586_v15  ;;  %v970_v39 = vadd.f32 %v969_v45, %v968_v37  ;;  %v1161_v4 = vadd.f32 %v1160_v7, %v1159_v16  ;;  %v1336_v10 = vpop.permute.xlu1 %1335  ;;  %v1332_v62 = vpop.permute.xlu0 %1331 }
  0xf3   :  { %v779_v53 = vadd.f32 %v778_v27, %v777_v29  ;;  %v1349_v33 = vmul.f32 %v1336_v10, %v2383_v6  ;;  %v1348_v40 = vmul.f32 %v1332_v62, %v2385_v59  ;;  %v619_v46 = vrot.slane %v616_v22, 7 }
  0xf4   :  { %v427_v25 = vsel %vm233_vm1, %v426_v49, %v422_v58  ;;  %v603_v63 = vadd.f32 %v2617_v8, %v588_v14  ;;  %v971_v28 = vrot.slane %v970_v39, 2  ;;  %v1162_v24 = vrot.slane %v1161_v4, 4 }
  0xf5   :  { %1603 = vst.msk [vmem:[%s2602_s7 + $0x2] sm:$0x3] %vm236_vm2, %v427_v25  ;;  %v780_v56 = vrot.slane %v779_v53, 1  ;;  %v1353_v61 = vsel %vm30_vm0, %v1349_v33, 0.0  ;;  %v1352_v42 = vsel %vm30_vm0, %v1348_v40, 0.0  ;;  %v1737_v15 = vpop.eup %1736  ;;  %v812_v49 = vrot.slane %v809_v2, 7 }
  0xf6   :  { %v615_v6 = vmul.f32 %v2484_v23, %v603_v63  ;;  %v972_v59 = vadd.f32 %v971_v28, %v970_v39  ;;  %v1163_v31 = vadd.f32 %v1162_v24, %v1161_v4  ;;  %v1354_v36 = vadd.f32 %v1353_v61, %v1352_v42  ;;  %v1529_v13 = vpop.permute.xlu1 %1528  ;;  %v1525_v8 = vpop.permute.xlu0 %1524 }
  0xf7   :  { %v781_v50 = vadd.f32 %v780_v56, %v779_v53  ;;  %v1542_v5 = vmul.f32 %v1529_v13, %v2408_v19  ;;  %v1541_v43 = vmul.f32 %v1525_v8, %v2410_v32  ;;  %v1384_v60 = vrot.slane %v2528_v20, 1 }
  0xf8   :  { %v620_v37 = vsel %vm233_vm1, %v619_v46, %v615_v6  ;;  %v973_v57 = vrot.slane %v972_v59, 1  ;;  %v1164_v21 = vrot.slane %v1163_v31, 2  ;;  %v1355_v23 = vrot.slane %v1354_v36, 4 }
  0xf9   :  { %1609 = vst.msk [vmem:[%s2602_s7 + $0x4] sm:$0x3] %vm236_vm2, %v620_v37  ;;  %v796_v41 = vadd.f32 %v2618_v35, %v781_v50  ;;  %v1546_v30 = vsel %vm30_vm0, %v1542_v5, 0.0  ;;  %v1545_v19 = vsel %vm30_vm0, %v1541_v43, 0.0  ;;  %v1005_v27 = vrot.slane %v1002_v18, 7 }
  0xfa   :  { %v974_v32 = vadd.f32 %v973_v57, %v972_v59  ;;  %v1165_v29 = vadd.f32 %v1164_v21, %v1163_v31  ;;  %v1356_v38 = vadd.f32 %v1355_v23, %v1354_v36  ;;  %v1547_v26 = vadd.f32 %v1546_v30, %v1545_v19 }
  0xfb   :  { %v808_v54 = vmul.f32 %v2487_v17, %v796_v41  ;;  %v1195_v35 = vmul.f32 %v1191_v3, %v2492_v44  ;;  %v1575_v7 = vmul.f32 %v1737_v15, %v2443_v34  ;;  %v1388_v62 = vmul.f32 %v1384_v60, %v2500_v51 }
  0xfc   :  { %v989_v52 = vadd.f32 %v2619_v12, %v974_v32  ;;  %v1166_v47 = vrot.slane %v1165_v29, 1  ;;  %v1357_v45 = vrot.slane %v1356_v38, 2  ;;  %v1548_v22 = vrot.slane %v1547_v26, 4 }
  0xfd   :  { %v813_v16 = vsel %vm233_vm1, %v812_v49, %v808_v54  ;;  %v1198_v3 = vrot.slane %v1195_v35, 7  ;;  %v1577_v34 = vrot.slane %v1575_v7, 1  ;;  %v1391_v63 = vrot.slane %v1388_v62, 7 }
  0xfe   :  { %1615 = vst.msk [vmem:[%s2602_s7 + $0x6] sm:$0x3] %vm236_vm2, %v813_v16  ;;  %v1001_v17 = vmul.f32 %v2504_v9, %v989_v52  ;;  %v1167_v12 = vadd.f32 %v1166_v47, %v1165_v29  ;;  %v1358_v58 = vadd.f32 %v1357_v45, %v1356_v38  ;;  %v1549_v14 = vadd.f32 %v1548_v22, %v1547_v26 }
  0xff   :  { %v1581_v28 = vmul.f32 %v1577_v34, %v2514_v11 }
 0x100   :  { %v1006_v39 = vsel %vm233_vm1, %v1005_v27, %v1001_v17  ;;  %v1182_v4 = vadd.f32 %v2620_v55, %v1167_v12  ;;  %v1359_v10 = vrot.slane %v1358_v58, 1  ;;  %v1550_v44 = vrot.slane %v1549_v14, 2 }
 0x101   :  { %1621 = vst.msk [vmem:[%s2602_s7 + $0x8] sm:$0x3] %vm236_vm2, %v1006_v39 }
 0x102   :  { %v1194_v9 = vmul.f32 %v2509_v1, %v1182_v4  ;;  %v1360_v53 = vadd.f32 %v1359_v10, %v1358_v58  ;;  %v1551_v33 = vadd.f32 %v1550_v44, %v1549_v14 }
 0x104   :  { %v1199_v40 = vsel %vm233_vm1, %v1198_v3, %v1194_v9  ;;  %v1375_v25 = vadd.f32 %v2113_v48, %v1360_v53  ;;  %v1552_v55 = vrot.slane %v1551_v33, 1  ;;  %v1584_v48 = vrot.slane %v1581_v28, 7 }
 0x105   :  { %1627 = vst.msk [vmem:[%s2602_s7 + $0xa] sm:$0x3] %vm236_vm2, %v1199_v40 }
 0x106   :  { %v1387_v24 = vmul.f32 %v2528_v20, %v1375_v25  ;;  %v1553_v51 = vadd.f32 %v1552_v55, %v1551_v33 }
 0x108   :  { %v1392_v1 = vsel %vm233_vm1, %v1391_v63, %v1387_v24  ;;  %v1568_v46 = vadd.f32 %v2134_v0, %v1553_v51 }
 0x109   :  { %1633 = vst.msk [vmem:[%s2602_s7 + $0xc] sm:$0x3] %vm236_vm2, %v1392_v1 }
 0x10a   :  { %v1580_v56 = vmul.f32 %v1575_v7, %v1568_v46 }
 0x10c   :  { %v1585_v61 = vsel %vm233_vm1, %v1584_v48, %v1580_v56 }
 0x10d   :  { %1639 = vst.msk [vmem:[%s2602_s7 + $0xe] sm:$0x3] %vm236_vm2, %v1585_v61 }

// kernel: mamba_transformer_block.29
= control target key start
LH: loop header
LB: loop body
LE: loop exit
PB: predicated region body
PF: predicated region fallthrough
CT: control target
= control target key end

     0   :  { %v152_v0 = vmov 0.0   ;;  %vm153_vm0 = vmmov 0   ;;  %vm42_vm1 = vcmask 261120   ;;  %s195_s1 = inlined_call_operand.vmem [shape: bf16[32,128], index: 1, kind: input, shape index: {}]   ;;  %s196_s0 = inlined_call_operand.vmem [shape: f32[16,32], index: 0, kind: input, shape index: {}]   ;;  %s197_s2 = inlined_call_operand.vmem [shape: f32[1,128], index: 2, kind: input, shape index: {}]   ;;  %s198_s3 = inlined_call_operand.vmem [shape: f32[16,128], index: 3, kind: output, shape index: {}]  }
   0x1   :  { %136 = vmatprep.subr.bf16.mxu0 %v152_v0  ;;  %v146_v1 = vld [vmem:[%s195_s1] sm:$0xff]   ;;  %140 = vmatprep.mubr.msk.bf16.mxu0 %vm153_vm0, %v152_v0  ;;  %v147_v2 = vld [vmem:[%s195_s1 + $0x8] sm:$0xff]  }
   0x2   :  { %137 = vmatpush3.bf16.msra.mxu0 %v146_v1  ;;  %v23_v3 = vld [vmem:[%s196_s0] sm:$0xff]  ;;  %v24_v4 = vld [vmem:[%s196_s0 + $0x8] sm:$0xff] }
   0x3   :  { %138 = vmatprep.subr.bf16.mxu0 %v152_v0  ;;  %v25_v5 = vpack.c.bf16 %v24_v4, %v23_v3  ;;  %v132_v6 = vld [vmem:[%s197_s2] ss:$0 sm:$0xff] }
   0x6   :  { %139 = vmatpush3.bf16.msra.mxu0 %v147_v2 }
   0x9   :  { %141 = vmatmul.mubr.msk.bf16.vlgmr.msra.gmra.mrb[0].mxu0 %vm42_vm1, %v25_v5 }
  0xdc   :  { %v80_v7 = vpop.f32.mrb[0].mxu0 }
  0xdd   :  { %v103_v8 = vadd.f32 %v132_v6, %v80_v7  ;;  %v142_v9 = vpop.f32.mrb[1].mxu0 }
  0xde   :  { %v83_v10 = vpop.f32.mrb[2].mxu0 }
  0xdf   :  { %v107_v11 = vmul.f32 0.044715, %v103_v8  ;;  %v104_v12 = vadd.f32 %v132_v6, %v83_v10  ;;  %v143_v13 = vpop.f32.mrb[3].mxu0  ;;  %v105_v24 = vmul.f32 0.5, %v103_v8 }
  0xe1   :  { %v109_v14 = vmul.f32 %v107_v11, %v103_v8  ;;  %v108_v15 = vmul.f32 0.044715, %v104_v12  ;;  %v106_v28 = vmul.f32 0.5, %v104_v12 }
  0xe3   :  { %v111_v16 = vmul.f32 %v109_v14, %v103_v8  ;;  %v110_v17 = vmul.f32 %v108_v15, %v104_v12 }
  0xe5   :  { %v113_v18 = vadd.f32 %v111_v16, %v103_v8  ;;  %v112_v19 = vmul.f32 %v110_v17, %v104_v12 }
  0xe7   :  { %v115_v20 = vmul.f32 0.7978846, %v113_v18  ;;  %v114_v21 = vadd.f32 %v112_v19, %v104_v12 }
  0xe9   :  { %148 = vtanh.f32 %v115_v20  ;;  %v116_v22 = vmul.f32 0.7978846, %v114_v21 }
  0xeb   :  { %150 = vtanh.f32 %v116_v22 }
  0xf3   :  { %v149_v23 = vpop.eup %148 }
  0xf4   :  { %v119_v25 = vadd.f32 1.0, %v149_v23 }
  0xf5   :  { %v151_v26 = vpop.eup %150 }
  0xf6   :  { %v121_v27 = vmul.f32 %v119_v25, %v105_v24  ;;  %v120_v29 = vadd.f32 1.0, %v151_v26 }
  0xf8   :  { %123 = vst [vmem:[%s198_s3] sm:$0xff] %v121_v27  ;;  %v122_v30 = vmul.f32 %v120_v29, %v106_v28 }
  0xfa   :  { %124 = vst [vmem:[%s198_s3 + $0x8] sm:$0xff] %v122_v30 }

// kernel: mamba_transformer_block.26
= control target key start
LH: loop header
LB: loop body
LE: loop exit
PB: predicated region body
PF: predicated region fallthrough
CT: control target
= control target key end

     0   :  { %s750_s12 = smov 0   ;;  %s752_s13 = smov 0   ;;  %s834_s0 = inlined_call_operand.vmem [shape: f32[2,4,8,8], index: 0, kind: input, shape index: {}]   ;;  %s835_s1 = inlined_call_operand.vmem [shape: f32[2,8,8], index: 1, kind: input, shape index: {}]   ;;  %s836_s2 = inlined_call_operand.vmem [shape: f32[2,8,8], index: 2, kind: input, shape index: {}]   ;;  %s837_s3 = inlined_call_operand.vmem [shape: f32[2,4,8,8], index: 3, kind: output, shape index: {}]  }
   0x1   :  { %s754_s14 = smov 0   ;;  %s756_s15 = smov 0  }
   0x2   :  { %s758_s16 = smov 0  }
   0x3 LB: > { %s35_s17 = sadd.s32 1, %s716_s14  ;;  %s39_s18 = sadd.s32 1, %s720_s15  ;;  %s724_s16 = sphi %s758_s16, %s13_s16   ;;  %s720_s15 = sphi %s756_s15, %s841_s15   ;;  %s716_s14 = sphi %s754_s14, %s840_s14   ;;  %s712_s13 = sphi %s752_s13, %s839_s13   ;;  %s708_s12 = sphi %s750_s12, %s838_s12  }
   0x4   : > { %p37_p0 = scmp.ge.s32.totalorder %s35_s17, 4  ;;  %p607_p1 = scmp.ge.s32.totalorder %s724_s16, 1 }
   0x5   : > { %p205_p2 = scmp.lt.s32.totalorder %s724_s16, 9 }
   0x6   : > { %s843_s17 = smov (%p37_p0, %s35_s17), 0  ;;  %s845_s18 = smov (!%p37_p0, %s39_s18), %s720_s15 }
   0x7   : > { %p206_p3 = pnand %p607_p1, %p205_p2  ;;  %p41_p4 = scmp.ge.s32.totalorder %s845_s18, 2 }
   0x8   : > { %p255_p5 = scmp.lt.s32.totalorder (!%p206_p3), %s712_s13, 1  ;;  %p257_p6 = scmp.lt.s32.totalorder (!%p206_p3), %s708_s12, 3  ;;  %vm299_vm0 = vcmask (!%p206_p3), 64512   ;;  %v726_v0 = vmov (!%p206_p3), 0.0   ;;  %vm727_vm1 = vmmov (!%p206_p3), 0   ;;  %vm296_vm2 = vcmask (!%p206_p3), 7168  }
   0x9   : > { %s847_s18 = smov (%p41_p4, %s845_s18), 0  ;;  %209 = sbr.rel (%p206_p3) target bundleno = 828 (0x33c), region = 32 }
   0xa   : > { %622 = vmatprep.subr.bf16.mxu0 (!%p206_p3), %v726_v0  ;;  %300 = vst.msk [vmem:[#allocation4] sm:$0xff] (!%p206_p3), %vm299_vm0, %v726_v0  ;;  %624 = vmatprep.mubr.msk.bf16.mxu0 (!%p206_p3), %vm727_vm1, %v726_v0  ;;  %v728_v6 = vmov (!%p206_p3), -1e+30   ;;  %v360_v7 = vlaneseq (!%p206_p3)  ;;  %v729_v17 = vmov (!%p206_p3), 0   ;;  %vm407_vm4 = vcmask (!%p206_p3), 1043456  }
   0xb   : > { %628 = vmatprep.subr.bf16.mxu1 (!%p206_p3), %v726_v0  ;;  %630 = vmatprep.mubr.msk.bf16.mxu1 (!%p206_p3), %vm727_vm1, %v726_v0  ;;  %297 = vst.msk [vmem:[#allocation2] sm:$0xff] (!%p206_p3), %vm296_vm2, %v728_v6  ;;  %298 = vst.msk [vmem:[#allocation3] sm:$0xff] (!%p206_p3), %vm296_vm2, %v726_v0 }
   0xc   : > { %v361_v8 = vshrl.u32 (!%p206_p3), %v360_v7, 7  ;;  %v365_v9 = vand.u32 (!%p206_p3), 127, %v360_v7  ;;  %678 = vset.pattern.permute.xlu0 (!%p206_p3), %v729_v17  ;;  %679 = vset.pattern.permute.xlu1 (!%p206_p3), %v729_v17 }
   0xe   : > { %vm368_vm3 = vcmp.gt.s32.totalorder (!%p206_p3), %v365_v9, %v361_v8 }
  0x10   : > { %s849_s13 = smov (!%p255_p5, %s712_s13), 1  ;;  %s851_s12 = smov (!%p257_p6, %s708_s12), 3 }
  0x11   : > { %s608_s19 = sshll.u32 %s849_s13, 2  ;;  %s610_s20 = sshll.u32 %s849_s13, 3  ;;  %v394_v39 = vld [vmem:[#allocation4] sm:$0xff] }
  0x12   : > { %s785_s21 = sadd.s32 %s608_s19, %s851_s12  ;;  %s272_s24 = scalar_lea.vmem %s835_s1, %s610_s20  ;;  %v370_v18 = vld [vmem:[#allocation2] sm:$0xff]  ;;  %v386_v33 = vld [vmem:[#allocation3] sm:$0xff] }
  0x13   : > { %v310_v1 = vld [vmem:[%s272_s24] sm:$0xff]  ;;  %s609_s25 = sshll.u32 %s785_s21, 3  ;;  %s279_s4 = scalar_lea.vmem %s836_s2, %s610_s20 }
  0x14   : > { %v311_v2 = vpack.c.bf16 %v310_v1, %v310_v1  ;;  %s265_s28 = scalar_lea.vmem %s834_s0, %s609_s25  ;;  %v402_v22 = vld [vmem:[%s279_s4] sm:$0xff]  ;;  %s290_s7 = scalar_lea.vmem %s837_s3, %s609_s25 }
  0x15   : > { %v308_v4 = vld [vmem:[%s265_s28] sm:$0xff]  ;;  %v403_v23 = vpack.c.bf16 %v402_v22, %v402_v22 }
  0x16   : > { %v317_v3 = vsel %vm299_vm0, %v311_v2, 0  ;;  %v309_v5 = vpack.c.bf16 %v308_v4, %v308_v4 }
  0x17   : > { %623 = vmatpush3.bf16.xpose.msra.mxu0 %v317_v3  ;;  %v409_v24 = vsel %vm407_vm4, %v403_v23, 0 }
  0x18   : > { %629 = vmatpush3.bf16.msra.mxu1 %v409_v24 }
  0x1e   : > { %625 = vmatmul.mubr.msk.bf16.vlgmr.msra.gmra.mrb[0].mxu0 %vm299_vm0, %v309_v5 }
  0xf1   : > { %v353_v10 = vpop.f32.mrb[0].mxu0 }
  0xf2   : > { %v359_v11 = vmul.f32 0.35355338, %v353_v10  ;;  %v626_v12 = vpop.f32.mrb[1].mxu0 }
  0xf3   : > { %v356_v13 = vpop.f32.mrb[2].mxu0 }
  0xf4   : > { %v627_v14 = vpop.f32.mrb[3].mxu0  ;;  %v369_v15 = vsel %vm368_vm3, -1e+30, %v359_v11 }
  0xf5   : > { %v371_v16 = vsel %vm299_vm0, %v369_v15, -inf }
  0xf6   : > { %372 = vmax.xlane.f32.xlu0 %v371_v16 }
 0x183   : > { %v373_v19 = vpop.xlane.xlu0 %372 }
 0x184   : > { %v374_v20 = vmax.f32 %v370_v18, %v373_v19 }
 0x186   : > { %v375_v21 = vsub.f32 %v370_v18, %v374_v20  ;;  %453 = vst.msk [vmem:[#allocation2] sm:$0xff] %vm296_vm2, %v374_v20  ;;  %380 = vperm.xlu0 %678, %v374_v20  }
 0x188   : > { %v376_v31 = vmul.f32 1.442695, %v375_v21 }
 0x205   : > { %v381_v25 = vpop.permute.xlu0 %380 }
 0x206   : > { %v383_v26 = vsub.f32 %v369_v15, %v381_v25 }
 0x208   : > { %v384_v27 = vmul.f32 1.442695, %v383_v26 }
 0x20a   : > { %680 = vpow2.f32 %v384_v27 }
 0x20b   : > { %682 = vpow2.f32 %v376_v31 }
 0x214   : > { %v681_v28 = vpop.eup %680 }
 0x215   : > { %v388_v29 = vsel %vm299_vm0, %v681_v28, 0.0  ;;  %v401_v30 = vpack.c.bf16 %v681_v28, %v681_v28  ;;  %v683_v32 = vpop.eup %682 }
 0x216   : > { %389 = vadd.xlane.f32.xlu1 %v388_v29  ;;  %v387_v34 = vmul.f32 %v683_v32, %v386_v33 }
 0x217   : > { %631 = vmatmul.mubr.msk.bf16.vlgmr.msra.gmra.mrb[0].mxu1 %vm299_vm0, %v401_v30 }
 0x227   : > { %397 = vperm.xlu1 %679, %v683_v32  }
 0x2a3   : > { %v390_v35 = vpop.xlane.xlu1 %389 }
 0x2a4   : > { %v391_v36 = vadd.f32 %v390_v35, %v387_v34 }
 0x2a6   : > { %393 = vst.msk [vmem:[#allocation3] sm:$0xff] %vm296_vm2, %v391_v36 }
 0x2a7   : > { %v398_v40 = vpop.permute.xlu1 %397 }
 0x2a8   : > { %v400_v41 = vmul.f32 %v398_v40, %v394_v39 }
 0x2ad   : > { %v458_v37 = vld [vmem:[#allocation3] sm:$0xff] }
 0x2ae   : > { %684 = vrcp.f32 %v458_v37 }
 0x2b8   : > { %v685_v38 = vpop.eup %684 }
 0x2b9   : > { %462 = vperm.xlu1 %679, %v685_v38  }
 0x2ea   : > { %v445_v42 = vpop.f32.mrb[0].mxu1 }
 0x2eb   : > { %v451_v43 = vadd.f32 %v445_v42, %v400_v41  ;;  %v632_v44 = vpop.f32.mrb[1].mxu1 }
 0x2ec   : > { %v448_v45 = vpop.f32.mrb[2].mxu1 }
 0x2ed   : > { %452 = vst.msk [vmem:[#allocation4] sm:$0xff] %vm299_vm0, %v451_v43  ;;  %v633_v46 = vpop.f32.mrb[3].mxu1 }
 0x2f4   : > { %v457_v47 = vld [vmem:[#allocation4] sm:$0xff] }
 0x338   : > { %v463_v48 = vpop.permute.xlu1 %462 }
 0x339   : > { %v465_v49 = vmul.f32 %v463_v48, %v457_v47 }
 0x33b   : > { %467 = vst.msk [vmem:[%s290_s7] sm:$0xff] %vm299_vm0, %v465_v49 }
 0x33c PF: > { %s13_s16 = sadd.s32 1, %s724_s16   ;;  %s838_s12 = smov %s716_s14 }
 0x33d   : > { %p10_p7 = scmp.ge.s32.totalorder %s13_s16, 10   ;;  %s839_s13 = smov %s720_s15 }
 0x33e   : > { %s840_s14 = smov %s843_s17  ;;  %s841_s15 = smov %s847_s18 }
 0x33f   :  { %12 = sbr.rel (!%p10_p7) target bundleno = 3 (0x3), region = 80 }

// kernel: mamba_transformer_block.30
= control target key start
LH: loop header
LB: loop body
LE: loop exit
PB: predicated region body
PF: predicated region fallthrough
CT: control target
= control target key end

     0   :  { %vm22_vm0 = vcmask 261120   ;;  %v212_v0 = vmov 0.0   ;;  %vm213_vm1 = vmmov 0   ;;  %s290_s1 = inlined_call_operand.vmem [shape: bf16[128,32], index: 1, kind: input, shape index: {}]   ;;  %s291_s0 = inlined_call_operand.vmem [shape: f32[16,128], index: 0, kind: input, shape index: {}]   ;;  %s292_s2 = inlined_call_operand.vmem [shape: f32[1,32], index: 2, kind: input, shape index: {}]   ;;  %s293_s3 = inlined_call_operand.vmem [shape: f32[16,32], index: 3, kind: input, shape index: {}]   ;;  %s294_s4 = inlined_call_operand.vmem [shape: f32[16,32], index: 4, kind: output, shape index: {}]  }
   0x1   :  { %182 = vmatprep.subr.bf16.mxu0 %v212_v0  ;;  %v204_v1 = vld [vmem:[%s290_s1] sm:$0xff]   ;;  %198 = vmatprep.mubr.msk.bf16.mxu0 %vm213_vm1, %v212_v0  ;;  %23 = vst.msk [vmem:[#allocation2] sm:$0xff] %vm22_vm0, %v212_v0  ;;  %24 = vst.msk [vmem:[#allocation2 + $0x8] sm:$0xff] %vm22_vm0, %v212_v0  ;;  %v205_v2 = vld [vmem:[%s290_s1 + $0x8] sm:$0xff]  }
   0x2   :  { %183 = vmatpush3.bf16.msra.mxu0 %v204_v1  ;;  %v206_v3 = vld [vmem:[%s290_s1 + $0x10] sm:$0xff]   ;;  %v207_v4 = vld [vmem:[%s290_s1 + $0x18] sm:$0xff]   ;;  %v208_v5 = vld [vmem:[%s290_s1 + $0x20] sm:$0xff]  }
   0x3   :  { %184 = vmatprep.subr.bf16.mxu0 %v212_v0  ;;  %v209_v6 = vld [vmem:[%s290_s1 + $0x28] sm:$0xff]   ;;  %v210_v7 = vld [vmem:[%s290_s1 + $0x30] sm:$0xff]   ;;  %v211_v8 = vld [vmem:[%s290_s1 + $0x38] sm:$0xff]  }
   0x4   :  { %v27_v9 = vld [vmem:[%s291_s0] sm:$0xff]  ;;  %v28_v10 = vld [vmem:[%s291_s0 + $0x8] sm:$0xff] }
   0x5   :  { %v29_v11 = vpack.c.bf16 %v28_v10, %v27_v9  ;;  %v172_v20 = vld [vmem:[%s292_s2] ss:$0 sm:$0xff]  ;;  %v155_v24 = vld [vmem:[%s293_s3 + $0x8] sm:$0xff] }
   0x6   :  { %185 = vmatpush3.bf16.msra.mxu0 %v205_v2  ;;  %v154_v22 = vld [vmem:[%s293_s3] sm:$0xff] }
   0x7   :  { %186 = vmatprep.subr.bf16.mxu0 %v212_v0 }
   0x8   :  { %v25_v12 = vld [vmem:[#allocation2] sm:$0xff]  ;;  %v26_v14 = vld [vmem:[#allocation2 + $0x8] sm:$0xff] }
   0xa   :  { %187 = vmatpush3.bf16.msra.mxu0 %v206_v3 }
   0xb   :  { %188 = vmatprep.subr.bf16.mxu0 %v212_v0 }
   0xe   :  { %189 = vmatpush3.bf16.msra.mxu0 %v207_v4 }
   0xf   :  { %190 = vmatprep.subr.bf16.mxu0 %v212_v0 }
  0x12   :  { %191 = vmatpush3.bf16.msra.mxu0 %v208_v5 }
  0x13   :  { %192 = vmatprep.subr.bf16.mxu0 %v212_v0 }
  0x16   :  { %193 = vmatpush3.bf16.msra.mxu0 %v209_v6 }
  0x17   :  { %194 = vmatprep.subr.bf16.mxu0 %v212_v0 }
  0x1a   :  { %195 = vmatpush3.bf16.msra.mxu0 %v210_v7 }
  0x1b   :  { %196 = vmatprep.subr.bf16.mxu0 %v212_v0 }
  0x1e   :  { %197 = vmatpush3.bf16.msra.mxu0 %v211_v8 }
  0x21   :  { %199 = vmatmul.mubr.bf16.vlgmr.msra.gmra.mrb[0].mxu0 %v29_v11 }
  0xf4   :  { %v128_v13 = vpop.f32.mrb[0].mxu0 }
  0xf5   :  { %v135_v15 = vadd.f32 %v128_v13, %v25_v12  ;;  %v200_v16 = vpop.f32.mrb[1].mxu0 }
  0xf6   :  { %v131_v17 = vpop.f32.mrb[2].mxu0 }
  0xf7   :  { %138 = vst.msk [vmem:[#allocation2] sm:$0xff] %vm22_vm0, %v135_v15  ;;  %v136_v18 = vadd.f32 %v131_v17, %v26_v14  ;;  %v201_v19 = vpop.f32.mrb[3].mxu0 }
  0xf9   :  { %139 = vst.msk [vmem:[#allocation2 + $0x8] sm:$0xff] %vm22_vm0, %v136_v18 }
  0xfe   :  { %v143_v21 = vld [vmem:[#allocation2] sm:$0xff] }
  0xff   :  { %v152_v23 = vadd.f32 %v172_v20, %v143_v21 }
 0x100   :  { %v144_v25 = vld [vmem:[#allocation2 + $0x8] sm:$0xff] }
 0x101   :  { %v156_v26 = vadd.f32 %v154_v22, %v152_v23  ;;  %v153_v27 = vadd.f32 %v172_v20, %v144_v25 }
 0x103   :  { %158 = vst.msk [vmem:[%s294_s4] sm:$0xff] %vm22_vm0, %v156_v26  ;;  %v157_v28 = vadd.f32 %v155_v24, %v153_v27 }
 0x105   :  { %159 = vst.msk [vmem:[%s294_s4 + $0x8] sm:$0xff] %vm22_vm0, %v157_v28 }

// kernel: mamba_transformer_block.33
= control target key start
LH: loop header
LB: loop body
LE: loop exit
PB: predicated region body
PF: predicated region fallthrough
CT: control target
= control target key end

     0   :  { %v252_v1 = vmov 0.0   ;;  %vm253_vm0 = vmmov 0   ;;  %vm23_vm1 = vcmask 261120   ;;  %s339_s0 = inlined_call_operand.vmem [shape: f32[16,128], index: 0, kind: input, shape index: {}]   ;;  %s340_s1 = inlined_call_operand.vmem [shape: bf16[128,32], index: 1, kind: input, shape index: {}]   ;;  %s341_s2 = inlined_call_operand.vmem [shape: f32[1,32], index: 2, kind: input, shape index: {}]   ;;  %s342_s3 = inlined_call_operand.vmem [shape: f32[16,32], index: 3, kind: input, shape index: {}]   ;;  %s343_s4 = inlined_call_operand.hbm [shape: f32[16,32], index: 4, kind: output, shape index: {}]  }
   0x1   :  { %v220_v0 = vld [vmem:[%s340_s1] sm:$0xff]   ;;  %195 = vmatprep.subr.bf16.mxu0 %v252_v1  ;;  %v221_v2 = vld [vmem:[%s340_s1 + $0x8] sm:$0xff]   ;;  %211 = vmatprep.mubr.msk.bf16.mxu0 %vm253_vm0, %v252_v1  ;;  %24 = vst.msk [vmem:[#allocation2] sm:$0xff] %vm23_vm1, %v252_v1  ;;  %25 = vst.msk [vmem:[#allocation2 + $0x8] sm:$0xff] %vm23_vm1, %v252_v1 }
   0x2   :  { %196 = vmatpush3.bf16.msra.mxu0 %v220_v0  ;;  %v222_v3 = vld [vmem:[%s340_s1 + $0x10] sm:$0xff]  }
   0x3   :  { %197 = vmatprep.subr.bf16.mxu0 %v252_v1 }
   0x6   :  { %198 = vmatpush3.bf16.msra.mxu0 %v221_v2 }
   0x7   :  { %199 = vmatprep.subr.bf16.mxu0 %v252_v1 }
   0x8   :  { %9 = vsyncpa [#allocation4], 0  ;;  %v223_v4 = vld [vmem:[%s340_s1 + $0x18] sm:$0xff]   ;;  %v224_v5 = vld [vmem:[%s340_s1 + $0x20] sm:$0xff]   ;;  %s254_s11 = smov [#allocation3]  }
   0x9   :  { %v225_v6 = vld [vmem:[%s340_s1 + $0x28] sm:$0xff]   ;;  %v226_v7 = vld [vmem:[%s340_s1 + $0x30] sm:$0xff]   ;;  %v227_v8 = vld [vmem:[%s340_s1 + $0x38] sm:$0xff]   ;;  %s166_s12 = sshll.u32 %s254_s11, 4  ;;  %s167_s12 = int_to_ptr.vmem [resolvable:$true] %s166_s12 }
   0xa   :  { %200 = vmatpush3.bf16.msra.mxu0 %v222_v3  ;;  %v28_v9 = vld [vmem:[%s339_s0] sm:$0xff]  ;;  %v29_v10 = vld [vmem:[%s339_s0 + $0x8] sm:$0xff]  ;;  %p233_p1 = scmp.lt.s32.totalorder %s167_s12, %s167_s12 }
   0xb   :  { %201 = vmatprep.subr.bf16.mxu0 %v252_v1  ;;  %v30_v11 = vpack.c.bf16 %v29_v10, %v28_v9  ;;  %v26_v12 = vld [vmem:[#allocation2] sm:$0xff]  ;;  %v27_v14 = vld [vmem:[#allocation2 + $0x8] sm:$0xff] }
   0xc   :  { %v185_v20 = vld [vmem:[%s341_s2] ss:$0 sm:$0xff]  ;;  %v156_v25 = vld [vmem:[%s342_s3 + $0x8] sm:$0xff]  ;;  %s228_s2 = scalar_lea.vmem %s167_s12, 256 }
   0xd   :  { %v155_v22 = vld [vmem:[%s342_s3] sm:$0xff]  ;;  %p229_p0 = scmp.ne.s32.totalorder %s167_s12, %s228_s2  ;;  %p234_p2 = scmp.lt.s32.totalorder %s228_s2, %s228_s2 }
   0xe   :  { %202 = vmatpush3.bf16.msra.mxu0 %v223_v4 }
   0xf   :  { %203 = vmatprep.subr.bf16.mxu0 %v252_v1  ;;  %p235_p3 = por %p234_p2, %p233_p1 }
  0x11   :  { %p236_p4 = pnand %p235_p3, %p229_p0 }
  0x12   :  { %204 = vmatpush3.bf16.msra.mxu0 %v224_v5 }
  0x13   :  { %205 = vmatprep.subr.bf16.mxu0 %v252_v1 }
  0x16   :  { %206 = vmatpush3.bf16.msra.mxu0 %v225_v6 }
  0x17   :  { %207 = vmatprep.subr.bf16.mxu0 %v252_v1 }
  0x1a   :  { %208 = vmatpush3.bf16.msra.mxu0 %v226_v7 }
  0x1b   :  { %209 = vmatprep.subr.bf16.mxu0 %v252_v1 }
  0x1e   :  { %210 = vmatpush3.bf16.msra.mxu0 %v227_v8 }
  0x21   :  { %212 = vmatmul.mubr.bf16.vlgmr.msra.gmra.mrb[0].mxu0 %v30_v11 }
  0xf4   :  { %v129_v13 = vpop.f32.mrb[0].mxu0 }
  0xf5   :  { %v136_v15 = vadd.f32 %v129_v13, %v26_v12  ;;  %v213_v16 = vpop.f32.mrb[1].mxu0 }
  0xf6   :  { %v132_v17 = vpop.f32.mrb[2].mxu0 }
  0xf7   :  { %139 = vst.msk [vmem:[#allocation2] sm:$0xff] %vm23_vm1, %v136_v15  ;;  %v137_v18 = vadd.f32 %v132_v17, %v27_v14  ;;  %v214_v19 = vpop.f32.mrb[3].mxu0 }
  0xf9   :  { %140 = vst.msk [vmem:[#allocation2 + $0x8] sm:$0xff] %vm23_vm1, %v137_v18 }
  0xfe   :  { %v144_v21 = vld [vmem:[#allocation2] sm:$0xff] }
  0xff   :  { %v153_v23 = vadd.f32 %v185_v20, %v144_v21 }
 0x100   :  { %v145_v24 = vld [vmem:[#allocation2 + $0x8] sm:$0xff] }
 0x101   :  { %v154_v26 = vadd.f32 %v185_v20, %v145_v24  ;;  %v157_v27 = vadd.f32 %v155_v22, %v153_v23 }
 0x103   :  { %v158_v28 = vadd.f32 %v156_v25, %v154_v26  ;;  %159 = vst.msk [vmem:[#allocation3] sm:$0xff] %vm23_vm1, %v157_v27 }
 0x105   :  { %160 = vst.msk [vmem:[#allocation3 + $0x8] sm:$0xff] %vm23_vm1, %v158_v28 }
 0x106   :  { %239 = shalt.err (!%p236_p4)
}
 0x107   :  { %s240_s17 = scalar_lea.hbm %s343_s4, 256 }
 0x108   :  { %p241_p5 = scmp.ne.s32.totalorder %s343_s4, %s240_s17  ;;  %p244_p6 = scmp.lt.u32.totalorder %s240_s17, %s343_s4 }
 0x10a   :  { %p246_p7 = pnand %p244_p6, %p241_p5 }
 0x10c   :  { %249 = shalt.err (!%p246_p7)
}
 0x10d   :  { %s255_s21 = smov 128   ;;  %s256_s22 = smov 8  }
 0x10e   :  { %172 = dma.vmem_to_hbm [thread:$0]  %s167_s12, 256, %s343_s4, [#allocation4], %s255_s21, %s255_s21, %s256_s22  }
 0x10f   :  { %250 = dma.done.wait [#allocation4], 256  }
 0x110   :  { %251 = vsyncadd [#allocation4], 4294967040 }
 0x111   :  { %176 = vsyncpa [#allocation4], 1 }

</bundles_post_ra>
